<compile_context>
chip_gen: v6e
topology: v6e:2x2x1
jax: 0.10.0
libtpu: 0.0.40
codegen_flags: <defaults>
</compile_context>

<pallas_src>
import functools
import math

import jax
import jax.numpy as jnp
from jax import lax
from jax.experimental import pallas as pl
from jax.experimental.pallas import tpu as pltpu


# ---------------------------------------------------------------------------
# Pallas kernel
# ---------------------------------------------------------------------------

def _layernorm(x, g, b, eps=1e-5):
    mu = jnp.mean(x, axis=-1, keepdims=True)
    var = jnp.mean((x - mu) ** 2, axis=-1, keepdims=True)
    return (x - mu) * lax.rsqrt(var + eps) * g + b


def decoder_kernel(x_ref, pe_ref,
                   wqkv_ref, bqkv_ref, wo_ref, bo_ref, g1_ref, b1_ref,
                   w1_ref, c1_ref, w2_ref, c2_ref, g2_ref, b2_ref,
                   out_ref,
                   act_ref, attn_ref, ypad_ref, hpad_ref,
                   *, n_heads, k_size):
    blk = pl.program_id(1)
    Bc, T, D = x_ref.shape
    BT = Bc * T
    dh = D // n_heads
    H = w1_ref.shape[-1]
    pad = k_size // 2

    # Positional encoding fused into the first block step; the activation then
    # lives (flattened to (Bc*T, D)) in VMEM scratch for the entire block stack.
    @pl.when(blk == 0)
    def _():
        act_ref[...] = (x_ref[...] + pe_ref[...]).reshape(BT, D)

    x = act_ref[...]                                   # (BT, D) f32
    x_bf = x.astype(jnp.bfloat16)

    # ---- multi-head self-attention (bf16 on the MXU, f32 accumulation) ----
    # One fused QKV projection; 1/sqrt(dh) is pre-folded into the Q columns.
    qkv = jnp.dot(x_bf, wqkv_ref[...], preferred_element_type=jnp.float32)
    qkv = (qkv + bqkv_ref[...]).astype(jnp.bfloat16)   # (BT, 3D)

    # TODO(synk): key-padding-mask path and flash-style (q-tile, kv-tile) inner
    # pipeline for long sequences; this forward matches the module with mask=None.
    for h in range(n_heads):                           # static unroll over heads
        lo = h * dh
        qh = qkv[:, lo:lo + dh].reshape(Bc, T, dh)
        kh = qkv[:, D + lo:D + lo + dh].reshape(Bc, T, dh)
        vh = qkv[:, 2 * D + lo:2 * D + lo + dh].reshape(Bc, T, dh)
        s = jnp.einsum('bqd,bkd->bqk', qh, kh,
                       preferred_element_type=jnp.float32)       # (Bc, T, T)
        s = s - jnp.max(s, axis=-1, keepdims=True)
        e = jnp.exp(s)
        p = e * pl.reciprocal(jnp.sum(e, axis=-1, keepdims=True), approx=True)
        oh = jnp.einsum('bqk,bkd->bqd', p.astype(jnp.bfloat16), vh,
                        preferred_element_type=jnp.float32)      # (Bc, T, dh)
        attn_ref[:, lo:lo + dh] = oh.reshape(BT, dh).astype(jnp.bfloat16)

    # Single full-width output projection (one (BT,D)@(D,D) MXU matmul).
    attn = jnp.dot(attn_ref[...], wo_ref[...],
                   preferred_element_type=jnp.float32) + bo_ref[...]

    y = _layernorm(x + attn, g1_ref[...], b1_ref[...])

    # ---- position-wise conv feed-forward (conv1d k -> ReLU -> conv1d k) ----
    # "same" conv via zero-padded resident VMEM buffers (per batch row along T);
    # each tap j is a plain (BT, Cin) @ (Cin, Cout) matmul, no concatenated copies.
    ypad_ref[:, :pad, :] = jnp.zeros((Bc, pad, D), jnp.bfloat16)
    ypad_ref[:, pad + T:, :] = jnp.zeros((Bc, pad, D), jnp.bfloat16)
    ypad_ref[:, pad:pad + T, :] = y.astype(jnp.bfloat16).reshape(Bc, T, D)
    acc1 = jnp.zeros((BT, H), jnp.float32)
    for j in range(k_size):                            # static unroll over taps
        tap = ypad_ref[:, j:j + T, :].reshape(BT, D)
        acc1 = acc1 + jnp.dot(tap, w1_ref[j], preferred_element_type=jnp.float32)
    h1 = jnp.maximum(acc1 + c1_ref[...], 0.0)

    hpad_ref[:, :pad, :] = jnp.zeros((Bc, pad, H), jnp.bfloat16)
    hpad_ref[:, pad + T:, :] = jnp.zeros((Bc, pad, H), jnp.bfloat16)
    hpad_ref[:, pad:pad + T, :] = h1.astype(jnp.bfloat16).reshape(Bc, T, H)
    acc2 = jnp.zeros((BT, D), jnp.float32)
    for j in range(k_size):
        tap = hpad_ref[:, j:j + T, :].reshape(BT, H)
        acc2 = acc2 + jnp.dot(tap, w2_ref[j], preferred_element_type=jnp.float32)
    ff = acc2 + c2_ref[...]

    new_x = _layernorm(y + ff, g2_ref[...], b2_ref[...])
    act_ref[...] = new_x

    @pl.when(blk == pl.num_programs(1) - 1)
    def _():
        out_ref[...] = new_x.reshape(Bc, T, D)


# ---------------------------------------------------------------------------
# Wrappers (glue)
# ---------------------------------------------------------------------------

def cosine_positional_encoding(T, D):
    pos = jnp.arange(T, dtype=jnp.float32)[:, None]
    i = jnp.arange(D, dtype=jnp.float32)[None, :]
    angle = pos / jnp.power(10000.0, (2.0 * jnp.floor(i / 2.0)) / D)
    return jnp.where((jnp.arange(D)[None, :] % 2) == 0,
                     jnp.sin(angle), jnp.cos(angle)).astype(jnp.float32)


def _stacked_spec(arr):
    # per-block parameter stacked along a leading n_blocks dim; select block n.
    return pl.BlockSpec((None,) + arr.shape[1:],
                        lambda b, n, _r=arr.ndim - 1: (n,) + (0,) * _r)


def _pick_batch_tile(B, target=8):
    bc = min(B, target)
    while B % bc:
        bc -= 1
    if bc == B and B > 1:      # keep >= 2 batch tiles so both v7x TCs get work
        bc = B // 2
        while B % bc:
            bc -= 1
    return max(bc, 1)


def _vmem_budget_bytes(Bc, T, D, H, k):
    pad = k // 2
    BT = Bc * T
    f32, bf16 = 4, 2
    scratch = BT * D * f32 + BT * D * bf16 + Bc * (T + 2 * pad) * (D + H) * bf16
    io = 2 * 2 * Bc * T * D * f32 + T * D * f32          # x/out (double-buffered) + pe
    per_block_w = (3 * D * D + D * D + k * D * H + k * H * D) * bf16 \
        + 10 * max(D, H) * f32
    weights = 2 * per_block_w                             # double-buffered weight stream
    temps = BT * (3 * D + 2 * H + 6 * D) * f32 + Bc * T * T * 2 * f32
    est = int((scratch + io + weights + temps) * 1.5)
    return int(min(max(est, 32 << 20), 64 << 20))         # <= 64 MiB -> valid on v7x


def decoder_forward(x, block_params, *, n_heads, k_size, batch_tile=None):
    B, T, D = x.shape
    n_blocks = len(block_params)
    assert D % n_heads == 0
    dh = D // n_heads
    H = block_params[0]["w1"].shape[-1]
    pad = k_size // 2
    pe = cosine_positional_encoding(T, D)

    Bc = batch_tile if batch_tile is not None else _pick_batch_tile(B)
    assert B % Bc == 0

    # Fused QKV weights (scale folded into Q columns); MXU operands in bf16,
    # biases / LayerNorm params stay f32.
    scale = 1.0 / math.sqrt(dh)
    wqkv = jnp.stack([jnp.concatenate([p["wq"] * scale, p["wk"], p["wv"]], axis=1)
                      for p in block_params]).astype(jnp.bfloat16)
    bqkv = jnp.stack([jnp.concatenate([p["bq"] * scale, p["bk"], p["bv"]], axis=1)
                      for p in block_params]).astype(jnp.float32)
    wo = jnp.stack([p["wo"] for p in block_params]).astype(jnp.bfloat16)
    w1 = jnp.stack([p["w1"] for p in block_params]).astype(jnp.bfloat16)
    w2 = jnp.stack([p["w2"] for p in block_params]).astype(jnp.bfloat16)

    def stack(name):
        return jnp.stack([p[name] for p in block_params]).astype(jnp.float32)

    bo, c1, c2 = stack("bo"), stack("c1"), stack("c2")
    g1, b1 = stack("ln1_g"), stack("ln1_b")
    g2, b2 = stack("ln2_g"), stack("ln2_b")

    args = [x, pe, wqkv, bqkv, wo, bo, g1, b1, w1, c1, w2, c2, g2, b2]
    in_specs = [pl.BlockSpec((Bc, T, D), lambda b, n: (b, 0, 0)),
                pl.BlockSpec((T, D), lambda b, n: (0, 0))]
    in_specs += [_stacked_spec(a) for a in args[2:]]

    kernel = functools.partial(decoder_kernel, n_heads=n_heads, k_size=k_size)
    return pl.pallas_call(
        kernel,
        out_shape=jax.ShapeDtypeStruct((B, T, D), jnp.float32),
        grid=(B // Bc, n_blocks),
        in_specs=in_specs,
        out_specs=pl.BlockSpec((Bc, T, D), lambda b, n: (b, 0, 0)),
        scratch_shapes=[
            pltpu.VMEM((Bc * T, D), jnp.float32),             # resident activation
            pltpu.VMEM((Bc * T, D), jnp.bfloat16),            # per-head attn outputs
            pltpu.VMEM((Bc, T + 2 * pad, D), jnp.bfloat16),   # padded conv1 input
            pltpu.VMEM((Bc, T + 2 * pad, H), jnp.bfloat16),   # padded conv2 input
        ],
        compiler_params=pltpu.CompilerParams(
            dimension_semantics=("parallel", "arbitrary"),
            vmem_limit_bytes=_vmem_budget_bytes(Bc, T, D, H, k_size)),
    )(*args)


def init_fft_block_params(key, in_d, hid_d, out_d, k_size):
    assert out_d == in_d, "residual connections require out_d == in_d"
    ks = jax.random.split(key, 8)
    s = 0.02
    return {
        "wq": jax.random.normal(ks[0], (in_d, in_d), jnp.float32) * s,
        "bq": jnp.zeros((1, in_d), jnp.float32),
        "wk": jax.random.normal(ks[1], (in_d, in_d), jnp.float32) * s,
        "bk": jnp.zeros((1, in_d), jnp.float32),
        "wv": jax.random.normal(ks[2], (in_d, in_d), jnp.float32) * s,
        "bv": jnp.zeros((1, in_d), jnp.float32),
        "wo": jax.random.normal(ks[3], (in_d, in_d), jnp.float32) * s,
        "bo": jnp.zeros((1, in_d), jnp.float32),
        "ln1_g": jnp.ones((1, in_d), jnp.float32),
        "ln1_b": jnp.zeros((1, in_d), jnp.float32),
        # conv weights stored as (k, in_ch, out_ch) == PyTorch (out,in,k) transposed
        "w1": jax.random.normal(ks[4], (k_size, in_d, hid_d), jnp.float32) * s,
        "c1": jnp.zeros((1, hid_d), jnp.float32),
        "w2": jax.random.normal(ks[5], (k_size, hid_d, out_d), jnp.float32) * s,
        "c2": jnp.zeros((1, out_d), jnp.float32),
        "ln2_g": jnp.ones((1, out_d), jnp.float32),
        "ln2_b": jnp.zeros((1, out_d), jnp.float32),
    }


# ---------------------------------------------------------------------------
# Demo
# ---------------------------------------------------------------------------

if __name__ == "__main__":
    # Small but lane-friendly shapes (D multiple of 128, T multiple of 8).
    B, T = 4, 16
    in_d, hid_d, out_d = 128, 256, 128
    n_blocks, n_heads, k_size = 6, 8, 3

    key = jax.random.PRNGKey(0)
    kx, kp = jax.random.split(key)
    x = jax.random.normal(kx, (B, T, in_d), jnp.float32)

    block_keys = jax.random.split(kp, n_blocks)
    block_params = [init_fft_block_params(bk, in_d, hid_d, out_d, k_size)
                    for bk in block_keys]

    out = decoder_forward(x, block_params, n_heads=n_heads, k_size=k_size)
    out = jax.block_until_ready(out)
    assert out.shape == (B, T, out_d)
    assert bool(jnp.all(jnp.isfinite(out)))
    print("KERNEL_OK")
</pallas_src>

<mosaic_0001>
module attributes {stable_mosaic.version = 11 : i64} {
  func.func @decoder_kernel(%arg0: i32, %arg1: i32, %arg2: memref<2x16x128xf32, #tpu.memory_space<vmem>>, %arg3: memref<16x128xf32, #tpu.memory_space<vmem>>, %arg4: memref<1x128x384xbf16, #tpu.memory_space<vmem>>, %arg5: memref<1x1x384xf32, #tpu.memory_space<vmem>>, %arg6: memref<1x128x128xbf16, #tpu.memory_space<vmem>>, %arg7: memref<1x1x128xf32, #tpu.memory_space<vmem>>, %arg8: memref<1x1x128xf32, #tpu.memory_space<vmem>>, %arg9: memref<1x1x128xf32, #tpu.memory_space<vmem>>, %arg10: memref<1x3x128x256xbf16, #tpu.memory_space<vmem>>, %arg11: memref<1x1x256xf32, #tpu.memory_space<vmem>>, %arg12: memref<1x3x256x128xbf16, #tpu.memory_space<vmem>>, %arg13: memref<1x1x128xf32, #tpu.memory_space<vmem>>, %arg14: memref<1x1x128xf32, #tpu.memory_space<vmem>>, %arg15: memref<1x1x128xf32, #tpu.memory_space<vmem>>, %arg16: memref<2x16x128xf32, #tpu.memory_space<vmem>>, %arg17: memref<32x128xf32, #tpu.memory_space<vmem>>, %arg18: memref<32x128xbf16, #tpu.memory_space<vmem>>, %arg19: memref<2x18x128xbf16, #tpu.memory_space<vmem>>, %arg20: memref<2x18x256xbf16, #tpu.memory_space<vmem>>) attributes {dimension_semantics = [#tpu.dimension_semantics<parallel>, #tpu.dimension_semantics<arbitrary>], iteration_bounds = array<i64: 2, 6>, scalar_prefetch = 0 : i64, scratch_operands = 4 : i64, tpu.core_type = #tpu.core_type<tc>, window_params = [{transform_indices = @transform_0, window_bounds = array<i64: 2, 16, 128>}, {pipeline_mode = #tpu.pipeline_mode<synchronous>, transform_indices = @transform_1, window_bounds = array<i64: 16, 128>}, {transform_indices = @transform_2, window_bounds = array<i64: 1, 128, 384>}, {transform_indices = @transform_3, window_bounds = array<i64: 1, 1, 384>}, {transform_indices = @transform_4, window_bounds = array<i64: 1, 128, 128>}, {transform_indices = @transform_5, window_bounds = array<i64: 1, 1, 128>}, {transform_indices = @transform_6, window_bounds = array<i64: 1, 1, 128>}, {transform_indices = @transform_7, window_bounds = array<i64: 1, 1, 128>}, {transform_indices = @transform_8, window_bounds = array<i64: 1, 3, 128, 256>}, {transform_indices = @transform_9, window_bounds = array<i64: 1, 1, 256>}, {transform_indices = @transform_10, window_bounds = array<i64: 1, 3, 256, 128>}, {transform_indices = @transform_11, window_bounds = array<i64: 1, 1, 128>}, {transform_indices = @transform_12, window_bounds = array<i64: 1, 1, 128>}, {transform_indices = @transform_13, window_bounds = array<i64: 1, 1, 128>}, {transform_indices = @transform_14, window_bounds = array<i64: 2, 16, 128>}]} {
    %c0_i32 = arith.constant 0 : i32
    %0 = arith.cmpi eq, %arg1, %c0_i32 : i32
    %1 = arith.extui %0 : i1 to i32
    %c0_i32_0 = arith.constant 0 : i32
    %2 = arith.cmpi ne, %1, %c0_i32_0 : i32
    scf.if %2 {
      %c0_159 = arith.constant 0 : index
      %c0_160 = arith.constant 0 : index
      %c0_161 = arith.constant 0 : index
      %317 = vector.load %arg2[%c0_159, %c0_160, %c0_161] : memref<2x16x128xf32, #tpu.memory_space<vmem>>, vector<2x16x128xf32>
      %c0_162 = arith.constant 0 : index
      %c0_163 = arith.constant 0 : index
      %318 = vector.load %arg3[%c0_162, %c0_163] : memref<16x128xf32, #tpu.memory_space<vmem>>, vector<16x128xf32>
      %319 = vector.shape_cast %318 : vector<16x128xf32> to vector<1x16x128xf32>
      %320 = vector.broadcast %319 : vector<1x16x128xf32> to vector<2x16x128xf32>
      %321 = arith.addf %317, %320 : vector<2x16x128xf32>
      %322 = vector.shape_cast %321 : vector<2x16x128xf32> to vector<32x128xf32>
      %c0_164 = arith.constant 0 : index
      %c0_165 = arith.constant 0 : index
      %323 = vector.load %arg17[%c0_164, %c0_165] : memref<32x128xf32, #tpu.memory_space<vmem>>, vector<32x128xf32>
      tpu.vector_store %arg17[%c0_164, %c0_165], %322 {strides = array<i32>} : memref<32x128xf32, #tpu.memory_space<vmem>>, vector<32x128xf32>,
    } else {
    }
    %c0 = arith.constant 0 : index
    %c0_1 = arith.constant 0 : index
    %3 = vector.load %arg17[%c0, %c0_1] : memref<32x128xf32, #tpu.memory_space<vmem>>, vector<32x128xf32>
    %4 = arith.truncf %3 : vector<32x128xf32> to vector<32x128xbf16>
    %c0_2 = arith.constant 0 : index
    %c0_3 = arith.constant 0 : index
    %c0_4 = arith.constant 0 : index
    %5 = vector.load %arg4[%c0_2, %c0_3, %c0_4] : memref<1x128x384xbf16, #tpu.memory_space<vmem>>, vector<1x128x384xbf16>
    %6 = vector.shape_cast %5 : vector<1x128x384xbf16> to vector<128x384xbf16>
    %cst = arith.constant dense<0.000000e+00> : vector<32x384xf32>
    %7 = tpu.matmul %4, %6, %cst {dimension_numbers = #tpu.dot_dimension_numbers<[1], [0], [0], [1], [0, 0, 1, 1], [], []>} : vector<32x128xbf16>, vector<128x384xbf16>, vector<32x384xf32> -> vector<32x384xf32>
    %c0_5 = arith.constant 0 : index
    %c0_6 = arith.constant 0 : index
    %c0_7 = arith.constant 0 : index
    %8 = vector.load %arg5[%c0_5, %c0_6, %c0_7] : memref<1x1x384xf32, #tpu.memory_space<vmem>>, vector<1x1x384xf32>
    %9 = vector.shape_cast %8 : vector<1x1x384xf32> to vector<1x384xf32>
    %10 = vector.broadcast %9 : vector<1x384xf32> to vector<32x384xf32>
    %11 = arith.addf %7, %10 : vector<32x384xf32>
    %12 = arith.truncf %11 : vector<32x384xf32> to vector<32x384xbf16>
    %13 = vector.extract_strided_slice %12 {offsets = [0, 0], sizes = [32, 16], strides = [1, 1]} : vector<32x384xbf16> to vector<32x16xbf16>
    %14 = vector.shape_cast %13 : vector<32x16xbf16> to vector<2x16x16xbf16>
    %15 = vector.extract_strided_slice %12 {offsets = [0, 128], sizes = [32, 16], strides = [1, 1]} : vector<32x384xbf16> to vector<32x16xbf16>
    %16 = vector.shape_cast %15 : vector<32x16xbf16> to vector<2x16x16xbf16>
    %17 = vector.extract_strided_slice %12 {offsets = [0, 256], sizes = [32, 16], strides = [1, 1]} : vector<32x384xbf16> to vector<32x16xbf16>
    %18 = vector.shape_cast %17 : vector<32x16xbf16> to vector<2x16x16xbf16>
    "tpu.trace_start"() <{level = 10 : i32, message = "bqd,bkd->bqk"}> : () -> ()
    %cst_8 = arith.constant dense<0.000000e+00> : vector<2x16x16xf32>
    %19 = tpu.matmul %14, %16, %cst_8 {dimension_numbers = #tpu.dot_dimension_numbers<[2], [2], [1], [1], [0, 0, 0, 1, 1, 1], [0], [0]>} : vector<2x16x16xbf16>, vector<2x16x16xbf16>, vector<2x16x16xf32> -> vector<2x16x16xf32>
    "tpu.trace_stop"() : () -> ()
    %cst_9 = arith.constant dense<0xFF800000> : vector<2x16xf32>
    %20 = vector.multi_reduction <maximumf>, %19, %cst_9 [2] : vector<2x16x16xf32> to vector<2x16xf32>
    %21 = vector.shape_cast %20 : vector<2x16xf32> to vector<2x16x1xf32>
    %22 = vector.broadcast %21 : vector<2x16x1xf32> to vector<2x16x16xf32>
    %23 = arith.subf %19, %22 : vector<2x16x16xf32>
    %24 = math.exp %23 : vector<2x16x16xf32>
    %cst_10 = arith.constant dense<0.000000e+00> : vector<2x16xf32>
    %25 = vector.multi_reduction <add>, %24, %cst_10 [2] : vector<2x16x16xf32> to vector<2x16xf32>
    %26 = vector.shape_cast %25 : vector<2x16xf32> to vector<2x16x1xf32>
    %27 = tpu.reciprocal %26 {approx = true} : vector<2x16x1xf32> -> vector<2x16x1xf32>
    %28 = vector.broadcast %27 : vector<2x16x1xf32> to vector<2x16x16xf32>
    %29 = arith.mulf %24, %28 : vector<2x16x16xf32>
    %30 = arith.truncf %29 : vector<2x16x16xf32> to vector<2x16x16xbf16>
    "tpu.trace_start"() <{level = 10 : i32, message = "bqk,bkd->bqd"}> : () -> ()
    %cst_11 = arith.constant dense<0.000000e+00> : vector<2x16x16xf32>
    %31 = tpu.matmul %30, %18, %cst_11 {dimension_numbers = #tpu.dot_dimension_numbers<[2], [1], [1], [2], [0, 0, 0, 1, 1, 2], [0], [0]>} : vector<2x16x16xbf16>, vector<2x16x16xbf16>, vector<2x16x16xf32> -> vector<2x16x16xf32>
    "tpu.trace_stop"() : () -> ()
    %32 = vector.shape_cast %31 : vector<2x16x16xf32> to vector<32x16xf32>
    %33 = arith.truncf %32 : vector<32x16xf32> to vector<32x16xbf16>
    %c0_12 = arith.constant 0 : index
    %c0_13 = arith.constant 0 : index
    %34 = vector.load %arg18[%c0_12, %c0_13] : memref<32x128xbf16, #tpu.memory_space<vmem>>, vector<32x16xbf16>
    tpu.vector_store %arg18[%c0_12, %c0_13], %33 {strides = array<i32>} : memref<32x128xbf16, #tpu.memory_space<vmem>>, vector<32x16xbf16>,
    %35 = vector.extract_strided_slice %12 {offsets = [0, 16], sizes = [32, 16], strides = [1, 1]} : vector<32x384xbf16> to vector<32x16xbf16>
    %36 = vector.shape_cast %35 : vector<32x16xbf16> to vector<2x16x16xbf16>
    %37 = vector.extract_strided_slice %12 {offsets = [0, 144], sizes = [32, 16], strides = [1, 1]} : vector<32x384xbf16> to vector<32x16xbf16>
    %38 = vector.shape_cast %37 : vector<32x16xbf16> to vector<2x16x16xbf16>
    %39 = vector.extract_strided_slice %12 {offsets = [0, 272], sizes = [32, 16], strides = [1, 1]} : vector<32x384xbf16> to vector<32x16xbf16>
    %40 = vector.shape_cast %39 : vector<32x16xbf16> to vector<2x16x16xbf16>
    "tpu.trace_start"() <{level = 10 : i32, message = "bqd,bkd->bqk"}> : () -> ()
    %cst_14 = arith.constant dense<0.000000e+00> : vector<2x16x16xf32>
    %41 = tpu.matmul %36, %38, %cst_14 {dimension_numbers = #tpu.dot_dimension_numbers<[2], [2], [1], [1], [0, 0, 0, 1, 1, 1], [0], [0]>} : vector<2x16x16xbf16>, vector<2x16x16xbf16>, vector<2x16x16xf32> -> vector<2x16x16xf32>
    "tpu.trace_stop"() : () -> ()
    %cst_15 = arith.constant dense<0xFF800000> : vector<2x16xf32>
    %42 = vector.multi_reduction <maximumf>, %41, %cst_15 [2] : vector<2x16x16xf32> to vector<2x16xf32>
    %43 = vector.shape_cast %42 : vector<2x16xf32> to vector<2x16x1xf32>
    %44 = vector.broadcast %43 : vector<2x16x1xf32> to vector<2x16x16xf32>
    %45 = arith.subf %41, %44 : vector<2x16x16xf32>
    %46 = math.exp %45 : vector<2x16x16xf32>
    %cst_16 = arith.constant dense<0.000000e+00> : vector<2x16xf32>
    %47 = vector.multi_reduction <add>, %46, %cst_16 [2] : vector<2x16x16xf32> to vector<2x16xf32>
    %48 = vector.shape_cast %47 : vector<2x16xf32> to vector<2x16x1xf32>
    %49 = tpu.reciprocal %48 {approx = true} : vector<2x16x1xf32> -> vector<2x16x1xf32>
    %50 = vector.broadcast %49 : vector<2x16x1xf32> to vector<2x16x16xf32>
    %51 = arith.mulf %46, %50 : vector<2x16x16xf32>
    %52 = arith.truncf %51 : vector<2x16x16xf32> to vector<2x16x16xbf16>
    "tpu.trace_start"() <{level = 10 : i32, message = "bqk,bkd->bqd"}> : () -> ()
    %cst_17 = arith.constant dense<0.000000e+00> : vector<2x16x16xf32>
    %53 = tpu.matmul %52, %40, %cst_17 {dimension_numbers = #tpu.dot_dimension_numbers<[2], [1], [1], [2], [0, 0, 0, 1, 1, 2], [0], [0]>} : vector<2x16x16xbf16>, vector<2x16x16xbf16>, vector<2x16x16xf32> -> vector<2x16x16xf32>
    "tpu.trace_stop"() : () -> ()
    %54 = vector.shape_cast %53 : vector<2x16x16xf32> to vector<32x16xf32>
    %55 = arith.truncf %54 : vector<32x16xf32> to vector<32x16xbf16>
    %c0_18 = arith.constant 0 : index
    %c16 = arith.constant 16 : index
    %56 = vector.load %arg18[%c0_18, %c16] : memref<32x128xbf16, #tpu.memory_space<vmem>>, vector<32x16xbf16>
    tpu.vector_store %arg18[%c0_18, %c16], %55 {strides = array<i32>} : memref<32x128xbf16, #tpu.memory_space<vmem>>, vector<32x16xbf16>,
    %57 = vector.extract_strided_slice %12 {offsets = [0, 32], sizes = [32, 16], strides = [1, 1]} : vector<32x384xbf16> to vector<32x16xbf16>
    %58 = vector.shape_cast %57 : vector<32x16xbf16> to vector<2x16x16xbf16>
    %59 = vector.extract_strided_slice %12 {offsets = [0, 160], sizes = [32, 16], strides = [1, 1]} : vector<32x384xbf16> to vector<32x16xbf16>
    %60 = vector.shape_cast %59 : vector<32x16xbf16> to vector<2x16x16xbf16>
    %61 = vector.extract_strided_slice %12 {offsets = [0, 288], sizes = [32, 16], strides = [1, 1]} : vector<32x384xbf16> to vector<32x16xbf16>
    %62 = vector.shape_cast %61 : vector<32x16xbf16> to vector<2x16x16xbf16>
    "tpu.trace_start"() <{level = 10 : i32, message = "bqd,bkd->bqk"}> : () -> ()
    %cst_19 = arith.constant dense<0.000000e+00> : vector<2x16x16xf32>
    %63 = tpu.matmul %58, %60, %cst_19 {dimension_numbers = #tpu.dot_dimension_numbers<[2], [2], [1], [1], [0, 0, 0, 1, 1, 1], [0], [0]>} : vector<2x16x16xbf16>, vector<2x16x16xbf16>, vector<2x16x16xf32> -> vector<2x16x16xf32>
    "tpu.trace_stop"() : () -> ()
    %cst_20 = arith.constant dense<0xFF800000> : vector<2x16xf32>
    %64 = vector.multi_reduction <maximumf>, %63, %cst_20 [2] : vector<2x16x16xf32> to vector<2x16xf32>
    %65 = vector.shape_cast %64 : vector<2x16xf32> to vector<2x16x1xf32>
    %66 = vector.broadcast %65 : vector<2x16x1xf32> to vector<2x16x16xf32>
    %67 = arith.subf %63, %66 : vector<2x16x16xf32>
    %68 = math.exp %67 : vector<2x16x16xf32>
    %cst_21 = arith.constant dense<0.000000e+00> : vector<2x16xf32>
    %69 = vector.multi_reduction <add>, %68, %cst_21 [2] : vector<2x16x16xf32> to vector<2x16xf32>
    %70 = vector.shape_cast %69 : vector<2x16xf32> to vector<2x16x1xf32>
    %71 = tpu.reciprocal %70 {approx = true} : vector<2x16x1xf32> -> vector<2x16x1xf32>
    %72 = vector.broadcast %71 : vector<2x16x1xf32> to vector<2x16x16xf32>
    %73 = arith.mulf %68, %72 : vector<2x16x16xf32>
    %74 = arith.truncf %73 : vector<2x16x16xf32> to vector<2x16x16xbf16>
    "tpu.trace_start"() <{level = 10 : i32, message = "bqk,bkd->bqd"}> : () -> ()
    %cst_22 = arith.constant dense<0.000000e+00> : vector<2x16x16xf32>
    %75 = tpu.matmul %74, %62, %cst_22 {dimension_numbers = #tpu.dot_dimension_numbers<[2], [1], [1], [2], [0, 0, 0, 1, 1, 2], [0], [0]>} : vector<2x16x16xbf16>, vector<2x16x16xbf16>, vector<2x16x16xf32> -> vector<2x16x16xf32>
    "tpu.trace_stop"() : () -> ()
    %76 = vector.shape_cast %75 : vector<2x16x16xf32> to vector<32x16xf32>
    %77 = arith.truncf %76 : vector<32x16xf32> to vector<32x16xbf16>
    %c0_23 = arith.constant 0 : index
    %c32 = arith.constant 32 : index
    %78 = vector.load %arg18[%c0_23, %c32] : memref<32x128xbf16, #tpu.memory_space<vmem>>, vector<32x16xbf16>
    tpu.vector_store %arg18[%c0_23, %c32], %77 {strides = array<i32>} : memref<32x128xbf16, #tpu.memory_space<vmem>>, vector<32x16xbf16>,
    %79 = vector.extract_strided_slice %12 {offsets = [0, 48], sizes = [32, 16], strides = [1, 1]} : vector<32x384xbf16> to vector<32x16xbf16>
    %80 = vector.shape_cast %79 : vector<32x16xbf16> to vector<2x16x16xbf16>
    %81 = vector.extract_strided_slice %12 {offsets = [0, 176], sizes = [32, 16], strides = [1, 1]} : vector<32x384xbf16> to vector<32x16xbf16>
    %82 = vector.shape_cast %81 : vector<32x16xbf16> to vector<2x16x16xbf16>
    %83 = vector.extract_strided_slice %12 {offsets = [0, 304], sizes = [32, 16], strides = [1, 1]} : vector<32x384xbf16> to vector<32x16xbf16>
    %84 = vector.shape_cast %83 : vector<32x16xbf16> to vector<2x16x16xbf16>
    "tpu.trace_start"() <{level = 10 : i32, message = "bqd,bkd->bqk"}> : () -> ()
    %cst_24 = arith.constant dense<0.000000e+00> : vector<2x16x16xf32>
    %85 = tpu.matmul %80, %82, %cst_24 {dimension_numbers = #tpu.dot_dimension_numbers<[2], [2], [1], [1], [0, 0, 0, 1, 1, 1], [0], [0]>} : vector<2x16x16xbf16>, vector<2x16x16xbf16>, vector<2x16x16xf32> -> vector<2x16x16xf32>
    "tpu.trace_stop"() : () -> ()
    %cst_25 = arith.constant dense<0xFF800000> : vector<2x16xf32>
    %86 = vector.multi_reduction <maximumf>, %85, %cst_25 [2] : vector<2x16x16xf32> to vector<2x16xf32>
    %87 = vector.shape_cast %86 : vector<2x16xf32> to vector<2x16x1xf32>
    %88 = vector.broadcast %87 : vector<2x16x1xf32> to vector<2x16x16xf32>
    %89 = arith.subf %85, %88 : vector<2x16x16xf32>
    %90 = math.exp %89 : vector<2x16x16xf32>
    %cst_26 = arith.constant dense<0.000000e+00> : vector<2x16xf32>
    %91 = vector.multi_reduction <add>, %90, %cst_26 [2] : vector<2x16x16xf32> to vector<2x16xf32>
    %92 = vector.shape_cast %91 : vector<2x16xf32> to vector<2x16x1xf32>
    %93 = tpu.reciprocal %92 {approx = true} : vector<2x16x1xf32> -> vector<2x16x1xf32>
    %94 = vector.broadcast %93 : vector<2x16x1xf32> to vector<2x16x16xf32>
    %95 = arith.mulf %90, %94 : vector<2x16x16xf32>
    %96 = arith.truncf %95 : vector<2x16x16xf32> to vector<2x16x16xbf16>
    "tpu.trace_start"() <{level = 10 : i32, message = "bqk,bkd->bqd"}> : () -> ()
    %cst_27 = arith.constant dense<0.000000e+00> : vector<2x16x16xf32>
    %97 = tpu.matmul %96, %84, %cst_27 {dimension_numbers = #tpu.dot_dimension_numbers<[2], [1], [1], [2], [0, 0, 0, 1, 1, 2], [0], [0]>} : vector<2x16x16xbf16>, vector<2x16x16xbf16>, vector<2x16x16xf32> -> vector<2x16x16xf32>
    "tpu.trace_stop"() : () -> ()
    %98 = vector.shape_cast %97 : vector<2x16x16xf32> to vector<32x16xf32>
    %99 = arith.truncf %98 : vector<32x16xf32> to vector<32x16xbf16>
    %c0_28 = arith.constant 0 : index
    %c48 = arith.constant 48 : index
    %100 = vector.load %arg18[%c0_28, %c48] : memref<32x128xbf16, #tpu.memory_space<vmem>>, vector<32x16xbf16>
    tpu.vector_store %arg18[%c0_28, %c48], %99 {strides = array<i32>} : memref<32x128xbf16, #tpu.memory_space<vmem>>, vector<32x16xbf16>,
    %101 = vector.extract_strided_slice %12 {offsets = [0, 64], sizes = [32, 16], strides = [1, 1]} : vector<32x384xbf16> to vector<32x16xbf16>
    %102 = vector.shape_cast %101 : vector<32x16xbf16> to vector<2x16x16xbf16>
    %103 = vector.extract_strided_slice %12 {offsets = [0, 192], sizes = [32, 16], strides = [1, 1]} : vector<32x384xbf16> to vector<32x16xbf16>
    %104 = vector.shape_cast %103 : vector<32x16xbf16> to vector<2x16x16xbf16>
    %105 = vector.extract_strided_slice %12 {offsets = [0, 320], sizes = [32, 16], strides = [1, 1]} : vector<32x384xbf16> to vector<32x16xbf16>
    %106 = vector.shape_cast %105 : vector<32x16xbf16> to vector<2x16x16xbf16>
    "tpu.trace_start"() <{level = 10 : i32, message = "bqd,bkd->bqk"}> : () -> ()
    %cst_29 = arith.constant dense<0.000000e+00> : vector<2x16x16xf32>
    %107 = tpu.matmul %102, %104, %cst_29 {dimension_numbers = #tpu.dot_dimension_numbers<[2], [2], [1], [1], [0, 0, 0, 1, 1, 1], [0], [0]>} : vector<2x16x16xbf16>, vector<2x16x16xbf16>, vector<2x16x16xf32> -> vector<2x16x16xf32>
    "tpu.trace_stop"() : () -> ()
    %cst_30 = arith.constant dense<0xFF800000> : vector<2x16xf32>
    %108 = vector.multi_reduction <maximumf>, %107, %cst_30 [2] : vector<2x16x16xf32> to vector<2x16xf32>
    %109 = vector.shape_cast %108 : vector<2x16xf32> to vector<2x16x1xf32>
    %110 = vector.broadcast %109 : vector<2x16x1xf32> to vector<2x16x16xf32>
    %111 = arith.subf %107, %110 : vector<2x16x16xf32>
    %112 = math.exp %111 : vector<2x16x16xf32>
    %cst_31 = arith.constant dense<0.000000e+00> : vector<2x16xf32>
    %113 = vector.multi_reduction <add>, %112, %cst_31 [2] : vector<2x16x16xf32> to vector<2x16xf32>
    %114 = vector.shape_cast %113 : vector<2x16xf32> to vector<2x16x1xf32>
    %115 = tpu.reciprocal %114 {approx = true} : vector<2x16x1xf32> -> vector<2x16x1xf32>
    %116 = vector.broadcast %115 : vector<2x16x1xf32> to vector<2x16x16xf32>
    %117 = arith.mulf %112, %116 : vector<2x16x16xf32>
    %118 = arith.truncf %117 : vector<2x16x16xf32> to vector<2x16x16xbf16>
    "tpu.trace_start"() <{level = 10 : i32, message = "bqk,bkd->bqd"}> : () -> ()
    %cst_32 = arith.constant dense<0.000000e+00> : vector<2x16x16xf32>
    %119 = tpu.matmul %118, %106, %cst_32 {dimension_numbers = #tpu.dot_dimension_numbers<[2], [1], [1], [2], [0, 0, 0, 1, 1, 2], [0], [0]>} : vector<2x16x16xbf16>, vector<2x16x16xbf16>, vector<2x16x16xf32> -> vector<2x16x16xf32>
    "tpu.trace_stop"() : () -> ()
    %120 = vector.shape_cast %119 : vector<2x16x16xf32> to vector<32x16xf32>
    %121 = arith.truncf %120 : vector<32x16xf32> to vector<32x16xbf16>
    %c0_33 = arith.constant 0 : index
    %c64 = arith.constant 64 : index
    %122 = vector.load %arg18[%c0_33, %c64] : memref<32x128xbf16, #tpu.memory_space<vmem>>, vector<32x16xbf16>
    tpu.vector_store %arg18[%c0_33, %c64], %121 {strides = array<i32>} : memref<32x128xbf16, #tpu.memory_space<vmem>>, vector<32x16xbf16>,
    %123 = vector.extract_strided_slice %12 {offsets = [0, 80], sizes = [32, 16], strides = [1, 1]} : vector<32x384xbf16> to vector<32x16xbf16>
    %124 = vector.shape_cast %123 : vector<32x16xbf16> to vector<2x16x16xbf16>
    %125 = vector.extract_strided_slice %12 {offsets = [0, 208], sizes = [32, 16], strides = [1, 1]} : vector<32x384xbf16> to vector<32x16xbf16>
    %126 = vector.shape_cast %125 : vector<32x16xbf16> to vector<2x16x16xbf16>
    %127 = vector.extract_strided_slice %12 {offsets = [0, 336], sizes = [32, 16], strides = [1, 1]} : vector<32x384xbf16> to vector<32x16xbf16>
    %128 = vector.shape_cast %127 : vector<32x16xbf16> to vector<2x16x16xbf16>
    "tpu.trace_start"() <{level = 10 : i32, message = "bqd,bkd->bqk"}> : () -> ()
    %cst_34 = arith.constant dense<0.000000e+00> : vector<2x16x16xf32>
    %129 = tpu.matmul %124, %126, %cst_34 {dimension_numbers = #tpu.dot_dimension_numbers<[2], [2], [1], [1], [0, 0, 0, 1, 1, 1], [0], [0]>} : vector<2x16x16xbf16>, vector<2x16x16xbf16>, vector<2x16x16xf32> -> vector<2x16x16xf32>
    "tpu.trace_stop"() : () -> ()
    %cst_35 = arith.constant dense<0xFF800000> : vector<2x16xf32>
    %130 = vector.multi_reduction <maximumf>, %129, %cst_35 [2] : vector<2x16x16xf32> to vector<2x16xf32>
    %131 = vector.shape_cast %130 : vector<2x16xf32> to vector<2x16x1xf32>
    %132 = vector.broadcast %131 : vector<2x16x1xf32> to vector<2x16x16xf32>
    %133 = arith.subf %129, %132 : vector<2x16x16xf32>
    %134 = math.exp %133 : vector<2x16x16xf32>
    %cst_36 = arith.constant dense<0.000000e+00> : vector<2x16xf32>
    %135 = vector.multi_reduction <add>, %134, %cst_36 [2] : vector<2x16x16xf32> to vector<2x16xf32>
    %136 = vector.shape_cast %135 : vector<2x16xf32> to vector<2x16x1xf32>
    %137 = tpu.reciprocal %136 {approx = true} : vector<2x16x1xf32> -> vector<2x16x1xf32>
    %138 = vector.broadcast %137 : vector<2x16x1xf32> to vector<2x16x16xf32>
    %139 = arith.mulf %134, %138 : vector<2x16x16xf32>
    %140 = arith.truncf %139 : vector<2x16x16xf32> to vector<2x16x16xbf16>
    "tpu.trace_start"() <{level = 10 : i32, message = "bqk,bkd->bqd"}> : () -> ()
    %cst_37 = arith.constant dense<0.000000e+00> : vector<2x16x16xf32>
    %141 = tpu.matmul %140, %128, %cst_37 {dimension_numbers = #tpu.dot_dimension_numbers<[2], [1], [1], [2], [0, 0, 0, 1, 1, 2], [0], [0]>} : vector<2x16x16xbf16>, vector<2x16x16xbf16>, vector<2x16x16xf32> -> vector<2x16x16xf32>
    "tpu.trace_stop"() : () -> ()
    %142 = vector.shape_cast %141 : vector<2x16x16xf32> to vector<32x16xf32>
    %143 = arith.truncf %142 : vector<32x16xf32> to vector<32x16xbf16>
    %c0_38 = arith.constant 0 : index
    %c80 = arith.constant 80 : index
    %144 = vector.load %arg18[%c0_38, %c80] : memref<32x128xbf16, #tpu.memory_space<vmem>>, vector<32x16xbf16>
    tpu.vector_store %arg18[%c0_38, %c80], %143 {strides = array<i32>} : memref<32x128xbf16, #tpu.memory_space<vmem>>, vector<32x16xbf16>,
    %145 = vector.extract_strided_slice %12 {offsets = [0, 96], sizes = [32, 16], strides = [1, 1]} : vector<32x384xbf16> to vector<32x16xbf16>
    %146 = vector.shape_cast %145 : vector<32x16xbf16> to vector<2x16x16xbf16>
    %147 = vector.extract_strided_slice %12 {offsets = [0, 224], sizes = [32, 16], strides = [1, 1]} : vector<32x384xbf16> to vector<32x16xbf16>
    %148 = vector.shape_cast %147 : vector<32x16xbf16> to vector<2x16x16xbf16>
    %149 = vector.extract_strided_slice %12 {offsets = [0, 352], sizes = [32, 16], strides = [1, 1]} : vector<32x384xbf16> to vector<32x16xbf16>
    %150 = vector.shape_cast %149 : vector<32x16xbf16> to vector<2x16x16xbf16>
    "tpu.trace_start"() <{level = 10 : i32, message = "bqd,bkd->bqk"}> : () -> ()
    %cst_39 = arith.constant dense<0.000000e+00> : vector<2x16x16xf32>
    %151 = tpu.matmul %146, %148, %cst_39 {dimension_numbers = #tpu.dot_dimension_numbers<[2], [2], [1], [1], [0, 0, 0, 1, 1, 1], [0], [0]>} : vector<2x16x16xbf16>, vector<2x16x16xbf16>, vector<2x16x16xf32> -> vector<2x16x16xf32>
    "tpu.trace_stop"() : () -> ()
    %cst_40 = arith.constant dense<0xFF800000> : vector<2x16xf32>
    %152 = vector.multi_reduction <maximumf>, %151, %cst_40 [2] : vector<2x16x16xf32> to vector<2x16xf32>
    %153 = vector.shape_cast %152 : vector<2x16xf32> to vector<2x16x1xf32>
    %154 = vector.broadcast %153 : vector<2x16x1xf32> to vector<2x16x16xf32>
    %155 = arith.subf %151, %154 : vector<2x16x16xf32>
    %156 = math.exp %155 : vector<2x16x16xf32>
    %cst_41 = arith.constant dense<0.000000e+00> : vector<2x16xf32>
    %157 = vector.multi_reduction <add>, %156, %cst_41 [2] : vector<2x16x16xf32> to vector<2x16xf32>
    %158 = vector.shape_cast %157 : vector<2x16xf32> to vector<2x16x1xf32>
    %159 = tpu.reciprocal %158 {approx = true} : vector<2x16x1xf32> -> vector<2x16x1xf32>
    %160 = vector.broadcast %159 : vector<2x16x1xf32> to vector<2x16x16xf32>
    %161 = arith.mulf %156, %160 : vector<2x16x16xf32>
    %162 = arith.truncf %161 : vector<2x16x16xf32> to vector<2x16x16xbf16>
    "tpu.trace_start"() <{level = 10 : i32, message = "bqk,bkd->bqd"}> : () -> ()
    %cst_42 = arith.constant dense<0.000000e+00> : vector<2x16x16xf32>
    %163 = tpu.matmul %162, %150, %cst_42 {dimension_numbers = #tpu.dot_dimension_numbers<[2], [1], [1], [2], [0, 0, 0, 1, 1, 2], [0], [0]>} : vector<2x16x16xbf16>, vector<2x16x16xbf16>, vector<2x16x16xf32> -> vector<2x16x16xf32>
    "tpu.trace_stop"() : () -> ()
    %164 = vector.shape_cast %163 : vector<2x16x16xf32> to vector<32x16xf32>
    %165 = arith.truncf %164 : vector<32x16xf32> to vector<32x16xbf16>
    %c0_43 = arith.constant 0 : index
    %c96 = arith.constant 96 : index
    %166 = vector.load %arg18[%c0_43, %c96] : memref<32x128xbf16, #tpu.memory_space<vmem>>, vector<32x16xbf16>
    tpu.vector_store %arg18[%c0_43, %c96], %165 {strides = array<i32>} : memref<32x128xbf16, #tpu.memory_space<vmem>>, vector<32x16xbf16>,
    %167 = vector.extract_strided_slice %12 {offsets = [0, 112], sizes = [32, 16], strides = [1, 1]} : vector<32x384xbf16> to vector<32x16xbf16>
    %168 = vector.shape_cast %167 : vector<32x16xbf16> to vector<2x16x16xbf16>
    %169 = vector.extract_strided_slice %12 {offsets = [0, 240], sizes = [32, 16], strides = [1, 1]} : vector<32x384xbf16> to vector<32x16xbf16>
    %170 = vector.shape_cast %169 : vector<32x16xbf16> to vector<2x16x16xbf16>
    %171 = vector.extract_strided_slice %12 {offsets = [0, 368], sizes = [32, 16], strides = [1, 1]} : vector<32x384xbf16> to vector<32x16xbf16>
    %172 = vector.shape_cast %171 : vector<32x16xbf16> to vector<2x16x16xbf16>
    "tpu.trace_start"() <{level = 10 : i32, message = "bqd,bkd->bqk"}> : () -> ()
    %cst_44 = arith.constant dense<0.000000e+00> : vector<2x16x16xf32>
    %173 = tpu.matmul %168, %170, %cst_44 {dimension_numbers = #tpu.dot_dimension_numbers<[2], [2], [1], [1], [0, 0, 0, 1, 1, 1], [0], [0]>} : vector<2x16x16xbf16>, vector<2x16x16xbf16>, vector<2x16x16xf32> -> vector<2x16x16xf32>
    "tpu.trace_stop"() : () -> ()
    %cst_45 = arith.constant dense<0xFF800000> : vector<2x16xf32>
    %174 = vector.multi_reduction <maximumf>, %173, %cst_45 [2] : vector<2x16x16xf32> to vector<2x16xf32>
    %175 = vector.shape_cast %174 : vector<2x16xf32> to vector<2x16x1xf32>
    %176 = vector.broadcast %175 : vector<2x16x1xf32> to vector<2x16x16xf32>
    %177 = arith.subf %173, %176 : vector<2x16x16xf32>
    %178 = math.exp %177 : vector<2x16x16xf32>
    %cst_46 = arith.constant dense<0.000000e+00> : vector<2x16xf32>
    %179 = vector.multi_reduction <add>, %178, %cst_46 [2] : vector<2x16x16xf32> to vector<2x16xf32>
    %180 = vector.shape_cast %179 : vector<2x16xf32> to vector<2x16x1xf32>
    %181 = tpu.reciprocal %180 {approx = true} : vector<2x16x1xf32> -> vector<2x16x1xf32>
    %182 = vector.broadcast %181 : vector<2x16x1xf32> to vector<2x16x16xf32>
    %183 = arith.mulf %178, %182 : vector<2x16x16xf32>
    %184 = arith.truncf %183 : vector<2x16x16xf32> to vector<2x16x16xbf16>
    "tpu.trace_start"() <{level = 10 : i32, message = "bqk,bkd->bqd"}> : () -> ()
    %cst_47 = arith.constant dense<0.000000e+00> : vector<2x16x16xf32>
    %185 = tpu.matmul %184, %172, %cst_47 {dimension_numbers = #tpu.dot_dimension_numbers<[2], [1], [1], [2], [0, 0, 0, 1, 1, 2], [0], [0]>} : vector<2x16x16xbf16>, vector<2x16x16xbf16>, vector<2x16x16xf32> -> vector<2x16x16xf32>
    "tpu.trace_stop"() : () -> ()
    %186 = vector.shape_cast %185 : vector<2x16x16xf32> to vector<32x16xf32>
    %187 = arith.truncf %186 : vector<32x16xf32> to vector<32x16xbf16>
    %c0_48 = arith.constant 0 : index
    %c112 = arith.constant 112 : index
    %188 = vector.load %arg18[%c0_48, %c112] : memref<32x128xbf16, #tpu.memory_space<vmem>>, vector<32x16xbf16>
    tpu.vector_store %arg18[%c0_48, %c112], %187 {strides = array<i32>} : memref<32x128xbf16, #tpu.memory_space<vmem>>, vector<32x16xbf16>,
    %c0_49 = arith.constant 0 : index
    %c0_50 = arith.constant 0 : index
    %189 = vector.load %arg18[%c0_49, %c0_50] : memref<32x128xbf16, #tpu.memory_space<vmem>>, vector<32x128xbf16>
    %c0_51 = arith.constant 0 : index
    %c0_52 = arith.constant 0 : index
    %c0_53 = arith.constant 0 : index
    %190 = vector.load %arg6[%c0_51, %c0_52, %c0_53] : memref<1x128x128xbf16, #tpu.memory_space<vmem>>, vector<1x128x128xbf16>
    %191 = vector.shape_cast %190 : vector<1x128x128xbf16> to vector<128x128xbf16>
    %cst_54 = arith.constant dense<0.000000e+00> : vector<32x128xf32>
    %192 = tpu.matmul %189, %191, %cst_54 {dimension_numbers = #tpu.dot_dimension_numbers<[1], [0], [0], [1], [0, 0, 1, 1], [], []>} : vector<32x128xbf16>, vector<128x128xbf16>, vector<32x128xf32> -> vector<32x128xf32>
    %c0_55 = arith.constant 0 : index
    %c0_56 = arith.constant 0 : index
    %c0_57 = arith.constant 0 : index
    %193 = vector.load %arg7[%c0_55, %c0_56, %c0_57] : memref<1x1x128xf32, #tpu.memory_space<vmem>>, vector<1x1x128xf32>
    %194 = vector.shape_cast %193 : vector<1x1x128xf32> to vector<1x128xf32>
    %195 = vector.broadcast %194 : vector<1x128xf32> to vector<32x128xf32>
    %196 = arith.addf %192, %195 : vector<32x128xf32>
    %197 = arith.addf %3, %196 : vector<32x128xf32>
    %c0_58 = arith.constant 0 : index
    %c0_59 = arith.constant 0 : index
    %c0_60 = arith.constant 0 : index
    %198 = vector.load %arg8[%c0_58, %c0_59, %c0_60] : memref<1x1x128xf32, #tpu.memory_space<vmem>>, vector<1x1x128xf32>
    %199 = vector.shape_cast %198 : vector<1x1x128xf32> to vector<1x128xf32>
    %c0_61 = arith.constant 0 : index
    %c0_62 = arith.constant 0 : index
    %c0_63 = arith.constant 0 : index
    %200 = vector.load %arg9[%c0_61, %c0_62, %c0_63] : memref<1x1x128xf32, #tpu.memory_space<vmem>>, vector<1x1x128xf32>
    %201 = vector.shape_cast %200 : vector<1x1x128xf32> to vector<1x128xf32>
    %cst_64 = arith.constant dense<0.000000e+00> : vector<32xf32>
    %202 = vector.multi_reduction <add>, %197, %cst_64 [1] : vector<32x128xf32> to vector<32xf32>
    %203 = vector.shape_cast %202 : vector<32xf32> to vector<32x1xf32>
    %cst_65 = arith.constant 1.280000e+02 : f32
    %204 = vector.broadcast %cst_65 : f32 to vector<32x1xf32>
    %205 = arith.divf %203, %204 : vector<32x1xf32>
    %206 = vector.broadcast %205 : vector<32x1xf32> to vector<32x128xf32>
    %207 = arith.subf %197, %206 : vector<32x128xf32>
    %208 = arith.mulf %207, %207 : vector<32x128xf32>
    %cst_66 = arith.constant dense<0.000000e+00> : vector<32xf32>
    %209 = vector.multi_reduction <add>, %208, %cst_66 [1] : vector<32x128xf32> to vector<32xf32>
    %210 = vector.shape_cast %209 : vector<32xf32> to vector<32x1xf32>
    %cst_67 = arith.constant 1.280000e+02 : f32
    %211 = vector.broadcast %cst_67 : f32 to vector<32x1xf32>
    %212 = arith.divf %210, %211 : vector<32x1xf32>
    %213 = vector.broadcast %205 : vector<32x1xf32> to vector<32x128xf32>
    %214 = arith.subf %197, %213 : vector<32x128xf32>
    %cst_68 = arith.constant 9.99999974E-6 : f32
    %215 = vector.broadcast %cst_68 : f32 to vector<32x1xf32>
    %216 = arith.addf %212, %215 : vector<32x1xf32>
    %217 = math.rsqrt %216 : vector<32x1xf32>
    %218 = vector.broadcast %217 : vector<32x1xf32> to vector<32x128xf32>
    %219 = arith.mulf %214, %218 : vector<32x128xf32>
    %220 = vector.broadcast %199 : vector<1x128xf32> to vector<32x128xf32>
    %221 = arith.mulf %219, %220 : vector<32x128xf32>
    %222 = vector.broadcast %201 : vector<1x128xf32> to vector<32x128xf32>
    %223 = arith.addf %221, %222 : vector<32x128xf32>
    %cst_69 = arith.constant 0.000000e+00 : bf16
    %224 = vector.broadcast %cst_69 : bf16 to vector<2x1x128xbf16>
    %c0_70 = arith.constant 0 : index
    %c0_71 = arith.constant 0 : index
    %c0_72 = arith.constant 0 : index
    %225 = vector.load %arg19[%c0_70, %c0_71, %c0_72] : memref<2x18x128xbf16, #tpu.memory_space<vmem>>, vector<2x1x128xbf16>
    tpu.vector_store %arg19[%c0_70, %c0_71, %c0_72], %224 {strides = array<i32>} : memref<2x18x128xbf16, #tpu.memory_space<vmem>>, vector<2x1x128xbf16>,
    %cst_73 = arith.constant 0.000000e+00 : bf16
    %226 = vector.broadcast %cst_73 : bf16 to vector<2x1x128xbf16>
    %c0_74 = arith.constant 0 : index
    %c17 = arith.constant 17 : index
    %c0_75 = arith.constant 0 : index
    %227 = vector.load %arg19[%c0_74, %c17, %c0_75] : memref<2x18x128xbf16, #tpu.memory_space<vmem>>, vector<2x1x128xbf16>
    tpu.vector_store %arg19[%c0_74, %c17, %c0_75], %226 {strides = array<i32>} : memref<2x18x128xbf16, #tpu.memory_space<vmem>>, vector<2x1x128xbf16>,
    %228 = arith.truncf %223 : vector<32x128xf32> to vector<32x128xbf16>
    %229 = vector.shape_cast %228 : vector<32x128xbf16> to vector<2x16x128xbf16>
    %c0_76 = arith.constant 0 : index
    %c1 = arith.constant 1 : index
    %c0_77 = arith.constant 0 : index
    %230 = vector.load %arg19[%c0_76, %c1, %c0_77] : memref<2x18x128xbf16, #tpu.memory_space<vmem>>, vector<2x16x128xbf16>
    tpu.vector_store %arg19[%c0_76, %c1, %c0_77], %229 {strides = array<i32>} : memref<2x18x128xbf16, #tpu.memory_space<vmem>>, vector<2x16x128xbf16>,
    %cst_78 = arith.constant 0.000000e+00 : f32
    %231 = vector.broadcast %cst_78 : f32 to vector<32x256xf32>
    %c0_79 = arith.constant 0 : index
    %c0_80 = arith.constant 0 : index
    %c0_81 = arith.constant 0 : index
    %232 = vector.load %arg19[%c0_79, %c0_80, %c0_81] : memref<2x18x128xbf16, #tpu.memory_space<vmem>>, vector<2x16x128xbf16>
    %233 = vector.shape_cast %232 : vector<2x16x128xbf16> to vector<32x128xbf16>
    %c0_82 = arith.constant 0 : index
    %c0_83 = arith.constant 0 : index
    %c0_84 = arith.constant 0 : index
    %c0_85 = arith.constant 0 : index
    %234 = vector.load %arg10[%c0_82, %c0_83, %c0_84, %c0_85] : memref<1x3x128x256xbf16, #tpu.memory_space<vmem>>, vector<1x1x128x256xbf16>
    %235 = vector.shape_cast %234 : vector<1x1x128x256xbf16> to vector<128x256xbf16>
    %cst_86 = arith.constant dense<0.000000e+00> : vector<32x256xf32>
    %236 = tpu.matmul %233, %235, %cst_86 {dimension_numbers = #tpu.dot_dimension_numbers<[1], [0], [0], [1], [0, 0, 1, 1], [], []>} : vector<32x128xbf16>, vector<128x256xbf16>, vector<32x256xf32> -> vector<32x256xf32>
    %237 = arith.addf %231, %236 : vector<32x256xf32>
    %c0_87 = arith.constant 0 : index
    %c1_88 = arith.constant 1 : index
    %c0_89 = arith.constant 0 : index
    %238 = vector.load %arg19[%c0_87, %c1_88, %c0_89] : memref<2x18x128xbf16, #tpu.memory_space<vmem>>, vector<2x16x128xbf16>
    %239 = vector.shape_cast %238 : vector<2x16x128xbf16> to vector<32x128xbf16>
    %c0_90 = arith.constant 0 : index
    %c1_91 = arith.constant 1 : index
    %c0_92 = arith.constant 0 : index
    %c0_93 = arith.constant 0 : index
    %240 = vector.load %arg10[%c0_90, %c1_91, %c0_92, %c0_93] : memref<1x3x128x256xbf16, #tpu.memory_space<vmem>>, vector<1x1x128x256xbf16>
    %241 = vector.shape_cast %240 : vector<1x1x128x256xbf16> to vector<128x256xbf16>
    %cst_94 = arith.constant dense<0.000000e+00> : vector<32x256xf32>
    %242 = tpu.matmul %239, %241, %cst_94 {dimension_numbers = #tpu.dot_dimension_numbers<[1], [0], [0], [1], [0, 0, 1, 1], [], []>} : vector<32x128xbf16>, vector<128x256xbf16>, vector<32x256xf32> -> vector<32x256xf32>
    %243 = arith.addf %237, %242 : vector<32x256xf32>
    %c0_95 = arith.constant 0 : index
    %c2 = arith.constant 2 : index
    %c0_96 = arith.constant 0 : index
    %244 = vector.load %arg19[%c0_95, %c2, %c0_96] : memref<2x18x128xbf16, #tpu.memory_space<vmem>>, vector<2x16x128xbf16>
    %245 = vector.shape_cast %244 : vector<2x16x128xbf16> to vector<32x128xbf16>
    %c0_97 = arith.constant 0 : index
    %c2_98 = arith.constant 2 : index
    %c0_99 = arith.constant 0 : index
    %c0_100 = arith.constant 0 : index
    %246 = vector.load %arg10[%c0_97, %c2_98, %c0_99, %c0_100] : memref<1x3x128x256xbf16, #tpu.memory_space<vmem>>, vector<1x1x128x256xbf16>
    %247 = vector.shape_cast %246 : vector<1x1x128x256xbf16> to vector<128x256xbf16>
    %cst_101 = arith.constant dense<0.000000e+00> : vector<32x256xf32>
    %248 = tpu.matmul %245, %247, %cst_101 {dimension_numbers = #tpu.dot_dimension_numbers<[1], [0], [0], [1], [0, 0, 1, 1], [], []>} : vector<32x128xbf16>, vector<128x256xbf16>, vector<32x256xf32> -> vector<32x256xf32>
    %249 = arith.addf %243, %248 : vector<32x256xf32>
    %c0_102 = arith.constant 0 : index
    %c0_103 = arith.constant 0 : index
    %c0_104 = arith.constant 0 : index
    %250 = vector.load %arg11[%c0_102, %c0_103, %c0_104] : memref<1x1x256xf32, #tpu.memory_space<vmem>>, vector<1x1x256xf32>
    %251 = vector.shape_cast %250 : vector<1x1x256xf32> to vector<1x256xf32>
    %252 = vector.broadcast %251 : vector<1x256xf32> to vector<32x256xf32>
    %253 = arith.addf %249, %252 : vector<32x256xf32>
    %cst_105 = arith.constant 0.000000e+00 : f32
    %254 = vector.broadcast %cst_105 : f32 to vector<32x256xf32>
    %255 = arith.maximumf %253, %254 : vector<32x256xf32>
    %cst_106 = arith.constant 0.000000e+00 : bf16
    %256 = vector.broadcast %cst_106 : bf16 to vector<2x1x256xbf16>
    %c0_107 = arith.constant 0 : index
    %c0_108 = arith.constant 0 : index
    %c0_109 = arith.constant 0 : index
    %257 = vector.load %arg20[%c0_107, %c0_108, %c0_109] : memref<2x18x256xbf16, #tpu.memory_space<vmem>>, vector<2x1x256xbf16>
    tpu.vector_store %arg20[%c0_107, %c0_108, %c0_109], %256 {strides = array<i32>} : memref<2x18x256xbf16, #tpu.memory_space<vmem>>, vector<2x1x256xbf16>,
    %cst_110 = arith.constant 0.000000e+00 : bf16
    %258 = vector.broadcast %cst_110 : bf16 to vector<2x1x256xbf16>
    %c0_111 = arith.constant 0 : index
    %c17_112 = arith.constant 17 : index
    %c0_113 = arith.constant 0 : index
    %259 = vector.load %arg20[%c0_111, %c17_112, %c0_113] : memref<2x18x256xbf16, #tpu.memory_space<vmem>>, vector<2x1x256xbf16>
    tpu.vector_store %arg20[%c0_111, %c17_112, %c0_113], %258 {strides = array<i32>} : memref<2x18x256xbf16, #tpu.memory_space<vmem>>, vector<2x1x256xbf16>,
    %260 = arith.truncf %255 : vector<32x256xf32> to vector<32x256xbf16>
    %261 = vector.shape_cast %260 : vector<32x256xbf16> to vector<2x16x256xbf16>
    %c0_114 = arith.constant 0 : index
    %c1_115 = arith.constant 1 : index
    %c0_116 = arith.constant 0 : index
    %262 = vector.load %arg20[%c0_114, %c1_115, %c0_116] : memref<2x18x256xbf16, #tpu.memory_space<vmem>>, vector<2x16x256xbf16>
    tpu.vector_store %arg20[%c0_114, %c1_115, %c0_116], %261 {strides = array<i32>} : memref<2x18x256xbf16, #tpu.memory_space<vmem>>, vector<2x16x256xbf16>,
    %cst_117 = arith.constant 0.000000e+00 : f32
    %263 = vector.broadcast %cst_117 : f32 to vector<32x128xf32>
    %c0_118 = arith.constant 0 : index
    %c0_119 = arith.constant 0 : index
    %c0_120 = arith.constant 0 : index
    %264 = vector.load %arg20[%c0_118, %c0_119, %c0_120] : memref<2x18x256xbf16, #tpu.memory_space<vmem>>, vector<2x16x256xbf16>
    %265 = vector.shape_cast %264 : vector<2x16x256xbf16> to vector<32x256xbf16>
    %c0_121 = arith.constant 0 : index
    %c0_122 = arith.constant 0 : index
    %c0_123 = arith.constant 0 : index
    %c0_124 = arith.constant 0 : index
    %266 = vector.load %arg12[%c0_121, %c0_122, %c0_123, %c0_124] : memref<1x3x256x128xbf16, #tpu.memory_space<vmem>>, vector<1x1x256x128xbf16>
    %267 = vector.shape_cast %266 : vector<1x1x256x128xbf16> to vector<256x128xbf16>
    %cst_125 = arith.constant dense<0.000000e+00> : vector<32x128xf32>
    %268 = tpu.matmul %265, %267, %cst_125 {dimension_numbers = #tpu.dot_dimension_numbers<[1], [0], [0], [1], [0, 0, 1, 1], [], []>} : vector<32x256xbf16>, vector<256x128xbf16>, vector<32x128xf32> -> vector<32x128xf32>
    %269 = arith.addf %263, %268 : vector<32x128xf32>
    %c0_126 = arith.constant 0 : index
    %c1_127 = arith.constant 1 : index
    %c0_128 = arith.constant 0 : index
    %270 = vector.load %arg20[%c0_126, %c1_127, %c0_128] : memref<2x18x256xbf16, #tpu.memory_space<vmem>>, vector<2x16x256xbf16>
    %271 = vector.shape_cast %270 : vector<2x16x256xbf16> to vector<32x256xbf16>
    %c0_129 = arith.constant 0 : index
    %c1_130 = arith.constant 1 : index
    %c0_131 = arith.constant 0 : index
    %c0_132 = arith.constant 0 : index
    %272 = vector.load %arg12[%c0_129, %c1_130, %c0_131, %c0_132] : memref<1x3x256x128xbf16, #tpu.memory_space<vmem>>, vector<1x1x256x128xbf16>
    %273 = vector.shape_cast %272 : vector<1x1x256x128xbf16> to vector<256x128xbf16>
    %cst_133 = arith.constant dense<0.000000e+00> : vector<32x128xf32>
    %274 = tpu.matmul %271, %273, %cst_133 {dimension_numbers = #tpu.dot_dimension_numbers<[1], [0], [0], [1], [0, 0, 1, 1], [], []>} : vector<32x256xbf16>, vector<256x128xbf16>, vector<32x128xf32> -> vector<32x128xf32>
    %275 = arith.addf %269, %274 : vector<32x128xf32>
    %c0_134 = arith.constant 0 : index
    %c2_135 = arith.constant 2 : index
    %c0_136 = arith.constant 0 : index
    %276 = vector.load %arg20[%c0_134, %c2_135, %c0_136] : memref<2x18x256xbf16, #tpu.memory_space<vmem>>, vector<2x16x256xbf16>
    %277 = vector.shape_cast %276 : vector<2x16x256xbf16> to vector<32x256xbf16>
    %c0_137 = arith.constant 0 : index
    %c2_138 = arith.constant 2 : index
    %c0_139 = arith.constant 0 : index
    %c0_140 = arith.constant 0 : index
    %278 = vector.load %arg12[%c0_137, %c2_138, %c0_139, %c0_140] : memref<1x3x256x128xbf16, #tpu.memory_space<vmem>>, vector<1x1x256x128xbf16>
    %279 = vector.shape_cast %278 : vector<1x1x256x128xbf16> to vector<256x128xbf16>
    %cst_141 = arith.constant dense<0.000000e+00> : vector<32x128xf32>
    %280 = tpu.matmul %277, %279, %cst_141 {dimension_numbers = #tpu.dot_dimension_numbers<[1], [0], [0], [1], [0, 0, 1, 1], [], []>} : vector<32x256xbf16>, vector<256x128xbf16>, vector<32x128xf32> -> vector<32x128xf32>
    %281 = arith.addf %275, %280 : vector<32x128xf32>
    %c0_142 = arith.constant 0 : index
    %c0_143 = arith.constant 0 : index
    %c0_144 = arith.constant 0 : index
    %282 = vector.load %arg13[%c0_142, %c0_143, %c0_144] : memref<1x1x128xf32, #tpu.memory_space<vmem>>, vector<1x1x128xf32>
    %283 = vector.shape_cast %282 : vector<1x1x128xf32> to vector<1x128xf32>
    %284 = vector.broadcast %283 : vector<1x128xf32> to vector<32x128xf32>
    %285 = arith.addf %281, %284 : vector<32x128xf32>
    %286 = arith.addf %223, %285 : vector<32x128xf32>
    %c0_145 = arith.constant 0 : index
    %c0_146 = arith.constant 0 : index
    %c0_147 = arith.constant 0 : index
    %287 = vector.load %arg14[%c0_145, %c0_146, %c0_147] : memref<1x1x128xf32, #tpu.memory_space<vmem>>, vector<1x1x128xf32>
    %288 = vector.shape_cast %287 : vector<1x1x128xf32> to vector<1x128xf32>
    %c0_148 = arith.constant 0 : index
    %c0_149 = arith.constant 0 : index
    %c0_150 = arith.constant 0 : index
    %289 = vector.load %arg15[%c0_148, %c0_149, %c0_150] : memref<1x1x128xf32, #tpu.memory_space<vmem>>, vector<1x1x128xf32>
    %290 = vector.shape_cast %289 : vector<1x1x128xf32> to vector<1x128xf32>
    %cst_151 = arith.constant dense<0.000000e+00> : vector<32xf32>
    %291 = vector.multi_reduction <add>, %286, %cst_151 [1] : vector<32x128xf32> to vector<32xf32>
    %292 = vector.shape_cast %291 : vector<32xf32> to vector<32x1xf32>
    %cst_152 = arith.constant 1.280000e+02 : f32
    %293 = vector.broadcast %cst_152 : f32 to vector<32x1xf32>
    %294 = arith.divf %292, %293 : vector<32x1xf32>
    %295 = vector.broadcast %294 : vector<32x1xf32> to vector<32x128xf32>
    %296 = arith.subf %286, %295 : vector<32x128xf32>
    %297 = arith.mulf %296, %296 : vector<32x128xf32>
    %cst_153 = arith.constant dense<0.000000e+00> : vector<32xf32>
    %298 = vector.multi_reduction <add>, %297, %cst_153 [1] : vector<32x128xf32> to vector<32xf32>
    %299 = vector.shape_cast %298 : vector<32xf32> to vector<32x1xf32>
    %cst_154 = arith.constant 1.280000e+02 : f32
    %300 = vector.broadcast %cst_154 : f32 to vector<32x1xf32>
    %301 = arith.divf %299, %300 : vector<32x1xf32>
    %302 = vector.broadcast %294 : vector<32x1xf32> to vector<32x128xf32>
    %303 = arith.subf %286, %302 : vector<32x128xf32>
    %cst_155 = arith.constant 9.99999974E-6 : f32
    %304 = vector.broadcast %cst_155 : f32 to vector<32x1xf32>
    %305 = arith.addf %301, %304 : vector<32x1xf32>
    %306 = math.rsqrt %305 : vector<32x1xf32>
    %307 = vector.broadcast %306 : vector<32x1xf32> to vector<32x128xf32>
    %308 = arith.mulf %303, %307 : vector<32x128xf32>
    %309 = vector.broadcast %288 : vector<1x128xf32> to vector<32x128xf32>
    %310 = arith.mulf %308, %309 : vector<32x128xf32>
    %311 = vector.broadcast %290 : vector<1x128xf32> to vector<32x128xf32>
    %312 = arith.addf %310, %311 : vector<32x128xf32>
    %c0_156 = arith.constant 0 : index
    %c0_157 = arith.constant 0 : index
    %313 = vector.load %arg17[%c0_156, %c0_157] : memref<32x128xf32, #tpu.memory_space<vmem>>, vector<32x128xf32>
    tpu.vector_store %arg17[%c0_156, %c0_157], %312 {strides = array<i32>} : memref<32x128xf32, #tpu.memory_space<vmem>>, vector<32x128xf32>,
    %c5_i32 = arith.constant 5 : i32
    %314 = arith.cmpi eq, %arg1, %c5_i32 : i32
    %315 = arith.extui %314 : i1 to i32
    %c0_i32_158 = arith.constant 0 : i32
    %316 = arith.cmpi ne, %315, %c0_i32_158 : i32
    scf.if %316 {
      %317 = vector.shape_cast %312 : vector<32x128xf32> to vector<2x16x128xf32>
      %c0_159 = arith.constant 0 : index
      %c0_160 = arith.constant 0 : index
      %c0_161 = arith.constant 0 : index
      %318 = vector.load %arg16[%c0_159, %c0_160, %c0_161] : memref<2x16x128xf32, #tpu.memory_space<vmem>>, vector<2x16x128xf32>
      tpu.vector_store %arg16[%c0_159, %c0_160, %c0_161], %317 {strides = array<i32>} : memref<2x16x128xf32, #tpu.memory_space<vmem>>, vector<2x16x128xf32>,
    } else {
    }
    return
  }
  func.func @transform_0(%arg0: i32, %arg1: i32) -> (i32, i32, i32) {
    %c0_i32 = arith.constant 0 : i32
    %c0_i32_0 = arith.constant 0 : i32
    %c0_i32_1 = arith.constant 0 : i32
    return %arg0, %c0_i32, %c0_i32_0 : i32, i32, i32
  }
  func.func @transform_1(%arg0: i32, %arg1: i32) -> (i32, i32) {
    %c0_i32 = arith.constant 0 : i32
    %c0_i32_0 = arith.constant 0 : i32
    %c0_i32_1 = arith.constant 0 : i32
    return %c0_i32, %c0_i32_0 : i32, i32
  }
  func.func @transform_2(%arg0: i32, %arg1: i32) -> (i32, i32, i32) {
    %c0_i32 = arith.constant 0 : i32
    %c0_i32_0 = arith.constant 0 : i32
    %c0_i32_1 = arith.constant 0 : i32
    return %arg1, %c0_i32, %c0_i32_0 : i32, i32, i32
  }
  func.func @transform_3(%arg0: i32, %arg1: i32) -> (i32, i32, i32) {
    %c0_i32 = arith.constant 0 : i32
    %c0_i32_0 = arith.constant 0 : i32
    %c0_i32_1 = arith.constant 0 : i32
    return %arg1, %c0_i32, %c0_i32_0 : i32, i32, i32
  }
  func.func @transform_4(%arg0: i32, %arg1: i32) -> (i32, i32, i32) {
    %c0_i32 = arith.constant 0 : i32
    %c0_i32_0 = arith.constant 0 : i32
    %c0_i32_1 = arith.constant 0 : i32
    return %arg1, %c0_i32, %c0_i32_0 : i32, i32, i32
  }
  func.func @transform_5(%arg0: i32, %arg1: i32) -> (i32, i32, i32) {
    %c0_i32 = arith.constant 0 : i32
    %c0_i32_0 = arith.constant 0 : i32
    %c0_i32_1 = arith.constant 0 : i32
    return %arg1, %c0_i32, %c0_i32_0 : i32, i32, i32
  }
  func.func @transform_6(%arg0: i32, %arg1: i32) -> (i32, i32, i32) {
    %c0_i32 = arith.constant 0 : i32
    %c0_i32_0 = arith.constant 0 : i32
    %c0_i32_1 = arith.constant 0 : i32
    return %arg1, %c0_i32, %c0_i32_0 : i32, i32, i32
  }
  func.func @transform_7(%arg0: i32, %arg1: i32) -> (i32, i32, i32) {
    %c0_i32 = arith.constant 0 : i32
    %c0_i32_0 = arith.constant 0 : i32
    %c0_i32_1 = arith.constant 0 : i32
    return %arg1, %c0_i32, %c0_i32_0 : i32, i32, i32
  }
  func.func @transform_8(%arg0: i32, %arg1: i32) -> (i32, i32, i32, i32) {
    %c0_i32 = arith.constant 0 : i32
    %c0_i32_0 = arith.constant 0 : i32
    %c0_i32_1 = arith.constant 0 : i32
    %c0_i32_2 = arith.constant 0 : i32
    return %arg1, %c0_i32, %c0_i32_0, %c0_i32_1 : i32, i32, i32, i32
  }
  func.func @transform_9(%arg0: i32, %arg1: i32) -> (i32, i32, i32) {
    %c0_i32 = arith.constant 0 : i32
    %c0_i32_0 = arith.constant 0 : i32
    %c0_i32_1 = arith.constant 0 : i32
    return %arg1, %c0_i32, %c0_i32_0 : i32, i32, i32
  }
  func.func @transform_10(%arg0: i32, %arg1: i32) -> (i32, i32, i32, i32) {
    %c0_i32 = arith.constant 0 : i32
    %c0_i32_0 = arith.constant 0 : i32
    %c0_i32_1 = arith.constant 0 : i32
    %c0_i32_2 = arith.constant 0 : i32
    return %arg1, %c0_i32, %c0_i32_0, %c0_i32_1 : i32, i32, i32, i32
  }
  func.func @transform_11(%arg0: i32, %arg1: i32) -> (i32, i32, i32) {
    %c0_i32 = arith.constant 0 : i32
    %c0_i32_0 = arith.constant 0 : i32
    %c0_i32_1 = arith.constant 0 : i32
    return %arg1, %c0_i32, %c0_i32_0 : i32, i32, i32
  }
  func.func @transform_12(%arg0: i32, %arg1: i32) -> (i32, i32, i32) {
    %c0_i32 = arith.constant 0 : i32
    %c0_i32_0 = arith.constant 0 : i32
    %c0_i32_1 = arith.constant 0 : i32
    return %arg1, %c0_i32, %c0_i32_0 : i32, i32, i32
  }
  func.func @transform_13(%arg0: i32, %arg1: i32) -> (i32, i32, i32) {
    %c0_i32 = arith.constant 0 : i32
    %c0_i32_0 = arith.constant 0 : i32
    %c0_i32_1 = arith.constant 0 : i32
    return %arg1, %c0_i32, %c0_i32_0 : i32, i32, i32
  }
  func.func @transform_14(%arg0: i32, %arg1: i32) -> (i32, i32, i32) {
    %c0_i32 = arith.constant 0 : i32
    %c0_i32_0 = arith.constant 0 : i32
    %c0_i32_1 = arith.constant 0 : i32
    return %arg0, %c0_i32, %c0_i32_0 : i32, i32, i32
  }
}

</mosaic_0001>

<bundles_post_ra>
// kernel: tpu_custom_call.1
= control target key start
LH: loop header
LB: loop body
LE: loop exit
PB: predicated region body
PF: predicated region fallthrough
CT: control target
= control target key end

     0   :  { %s8722_s0 = inlined_call_operand.hbm [shape: f32[4,16,128], index: 0, kind: input, shape index: {}]   ;;  %s8723_s1 = inlined_call_operand.hbm [shape: f32[16,128], index: 1, kind: input, shape index: {}]   ;;  %s8724_s2 = inlined_call_operand.hbm [shape: bf16[6,128,384], index: 2, kind: input, shape index: {}]   ;;  %s8725_s3 = inlined_call_operand.hbm [shape: f32[6,1,384], index: 3, kind: input, shape index: {}]   ;;  %s8726_s4 = inlined_call_operand.hbm [shape: bf16[6,128,128], index: 4, kind: input, shape index: {}]   ;;  %s8727_s5 = inlined_call_operand.hbm [shape: f32[6,1,128], index: 5, kind: input, shape index: {}]   ;;  %s8728_s6 = inlined_call_operand.hbm [shape: f32[6,1,128], index: 6, kind: input, shape index: {}]   ;;  %s8729_s7 = inlined_call_operand.hbm [shape: f32[6,1,128], index: 7, kind: input, shape index: {}]   ;;  %s8730_s8 = inlined_call_operand.hbm [shape: bf16[6,3,128,256], index: 8, kind: input, shape index: {}]   ;;  %s8731_s9 = inlined_call_operand.hbm [shape: f32[6,1,256], index: 9, kind: input, shape index: {}]   ;;  %s8732_s10 = inlined_call_operand.hbm [shape: bf16[6,3,256,128], index: 10, kind: input, shape index: {}]   ;;  %s8733_s11 = inlined_call_operand.hbm [shape: f32[6,1,128], index: 11, kind: input, shape index: {}]   ;;  %s8734_s12 = inlined_call_operand.hbm [shape: f32[6,1,128], index: 12, kind: input, shape index: {}]   ;;  %s8735_s13 = inlined_call_operand.hbm [shape: f32[6,1,128], index: 13, kind: input, shape index: {}]   ;;  %s8736_s14 = inlined_call_operand.hbm [shape: f32[4,16,128], index: 14, kind: output, shape index: {}]  }
   0x1   :  { %8762 = sst [smem:[#allocation41_spill]] %s8722_s0 }
   0x2   :  { %8763 = sst [smem:[#allocation42_spill]] %s8723_s1 }
   0x3   :  { %8764 = sst [smem:[#allocation43_spill]] %s8724_s2 }
   0x4   :  { %8765 = sst [smem:[#allocation44_spill]] %s8725_s3 }
   0x5   :  { %8766 = sst [smem:[#allocation45_spill]] %s8726_s4 }
   0x6   :  { %8767 = sst [smem:[#allocation46_spill]] %s8727_s5 }
   0x7   :  { %8768 = sst [smem:[#allocation47_spill]] %s8734_s12 }
   0x8   :  { %8769 = sst [smem:[#allocation48_spill]] %s8735_s13 }
   0x9   :  { %8770 = sst [smem:[#allocation49_spill]] %s8736_s14 }
   0xa   :  { %19 = vsyncpa [#allocation7], 0 }
   0xb   :  { %21 = vsyncpa [#allocation7 + $0x1], 0 }
   0xc   :  { %22 = vsyncpa [#allocation10], 0 }
   0xd   :  { %23 = vsyncpa [#allocation8], 0 }
   0xe   :  { %25 = vsyncpa [#allocation8 + $0x1], 0  ;;  %s7406_s29 = smov 0   ;;  %s7408_s30 = smov 0  }
   0xf   :  { %s7410_s15 = smov 0   ;;  %s7412_s16 = smov 0  }
  0x10   :  { %s7414_s17 = smov 0   ;;  %s7416_s18 = smov 0  }
  0x11   :  { %s7418_s19 = smov 0   ;;  %s7420_s20 = smov 0  }
  0x12   :  { %s7422_s21 = smov 0   ;;  %s7424_s22 = smov 0  }
  0x13   :  { %s7426_s23 = smov 0  }
  0x14 LB: > { %8771 = sst [smem:[#allocation28_spill]] %s7256_s29  ;;  %s40_s24 = sadd.s32 1, %s7288_s21  ;;  %s7296_s23 = sphi %s7426_s23, %s31_s23   ;;  %s7292_s22 = sphi %s7424_s22, %s8855_s22   ;;  %s7288_s21 = sphi %s7422_s21, %s8857_s21   ;;  %s7284_s20 = sphi %s7420_s20, %s8853_s20   ;;  %s7280_s19 = sphi %s7418_s19, %s8856_s19   ;;  %s7276_s18 = sphi %s7416_s18, %s8852_s18   ;;  %s7272_s17 = sphi %s7414_s17, %s8851_s17   ;;  %s7268_s16 = sphi %s7412_s16, %s8850_s16   ;;  %s7264_s15 = sphi %s7410_s15, %s8849_s15   ;;  %s7260_s30 = sphi %s7408_s30, %s8848_s30   ;;  %s7256_s29 = sphi %s7406_s29, %s8847_s29  }
  0x15   : > { %8772 = sst [smem:[#allocation29_spill]] %s7260_s30  ;;  %s43_s25 = sadd.s32 1, %s7292_s22 }
  0x16   : > { %8773 = sst [smem:[#allocation30_spill]] %s7264_s15  ;;  %p41_p0 = scmp.ge.s32.totalorder %s40_s24, 6 }
  0x17   : > { %8774 = sst [smem:[#allocation31_spill]] %s7268_s16  ;;  %s50_s26 = sadd.s32 1, %s7276_s18 }
  0x18   : > { %8775 = sst [smem:[#allocation32_spill]] %s7272_s17  ;;  %p57_p1 = scmp.ne.s32.totalorder %s7276_s18, %s7272_s17 }
  0x19   : > { %8776 = sst [smem:[#allocation33_spill]] %s7276_s18  ;;  %p58_p2 = scmp.eq.s32.totalorder %s7296_s23, 0 }
  0x1a   : > { %8777 = sst [smem:[#allocation34_spill]] %s7280_s19  ;;  %s8859_s24 = smov (%p41_p0, %s40_s24), 0 }
  0x1b   : > { %8778 = sst [smem:[#allocation35_spill]] %s7284_s20  ;;  %s8861_s25 = smov (!%p41_p0, %s43_s25), %s7292_s22 }
  0x1c   : > { %8779 = sst [smem:[#allocation36_spill]] %s7292_s22  ;;  %p7473_p3 = por %p58_p2, %p57_p1 }
  0x1d   : > { %8780 = sst [smem:[#allocation37_spill]] %s8859_s24  ;;  %s94_s28 = ssub.s32 %s7288_s21, %s8859_s24 }
  0x1e   : > { %p45_p4 = scmp.ge.s32.totalorder %s8861_s25, 2  ;;  %p95_p5 = scmp.eq.s32.totalorder %s94_s28, 0 }
  0x1f   : > { %s97_s14 = sadd.s32 1, %s7264_s15  ;;  %p104_p6 = scmp.ne.s32.totalorder %s7264_s15, %s7260_s30 }
  0x20   : > { %s8863_s25 = smov (%p45_p4, %s8861_s25), 0  ;;  %p6356_p9 = scmp.lt.s32.totalorder %s7296_s23, 12 }
  0x21   : > { %8782 = sst [smem:[#allocation38_spill]] %s8863_s25  ;;  %s47_s19 = ssub.s32 %s7292_s22, %s8863_s25 }
  0x22   : > { %s7485_s20 = scalar_select %p95_p5, %s7264_s15, %s97_s14  }
  0x23   : > { %p7489_p7 = por %p104_p6, %p58_p2  ;;  %p48_p8 = scmp.eq.s32.totalorder %s47_s19, 0 }
  0x24   : > { %8783 = sst [smem:[#allocation39_spill]] %s7485_s20  ;;  %s459_s28 = sand.u32 1, %s7296_s23  }
  0x25   : > { %s7494_s13 = scalar_select %p48_p8, %s7276_s18, %s50_s26  }
  0x26   : > { %s461_s24 = sand.u32 1, %s7276_s18   ;;  %s5819_s30 = sshll.u32 %s7292_s22, 9 }
  0x27   : > { %8785 = sst [smem:[#allocation40_spill]] %s7494_s13  ;;  %s5458_s29 = sshll.u32 %s461_s24, 5 }
  0x28   : > { %s8786_s0 = sld [smem:[#allocation41_spill]]  ;;  %s463_s14 = scalar_lea.vmem [#allocation6], %s5458_s29 }
  0x29   : > { %s471_s20 = sshll.u32 %s463_s14, 4  ;;  %p7505_p10 = pnand %p6356_p9, %p7473_p3  ;;  %s472_s20 = int_to_ptr.vmem [resolvable:$true] %s471_s20 }
  0x2a   : > { %s7510_s19 = sand.u32 1, %s7264_s15   ;;  %p7514_p11 = pnand %p6356_p9, %p7489_p7 }
  0x2b   : > { %s7518_s24 = scalar_lea.sflag [#allocation7], %s459_s28  ;;  %p6780_p12 = pneg %p7505_p10 }
  0x2c   : > { %s6791_s29 = scalar_lea.vmem %s472_s20, 512 }
  0x2d   : > { %p6792_p13 = scmp.ne.s32.totalorder %s472_s20, %s6791_s29 }
  0x2e   : > { %s470_s12 = scalar_lea.hbm %s8786_s0, %s5819_s30  ;;  %s7298_s30 = smov [#allocation6]  }
  0x2f   : > { %p6794_p0 = pnand %p6792_p13, %p6780_p12  ;;  %s6796_s16 = sshll.u32 %s7298_s30, 4  ;;  %s6797_s16 = int_to_ptr.vmem [resolvable:$false] %s6796_s16 }
  0x30   : > { %s6798_s17 = scalar_lea.vmem %s6797_s16, 1024  ;;  %p6799_p3 = scmp.lt.s32.totalorder %s472_s20, %s6797_s16 }
  0x31   : > { %p6795_p2 = pneg %p6794_p0  ;;  %p6800_p4 = scmp.lt.s32.totalorder %s6798_s17, %s6791_s29 }
  0x33   : > { %p6801_p5 = por %p6800_p4, %p6799_p3 }
  0x35   : > { %p6802_p6 = pnand %p6801_p5, %p6795_p2 }
  0x37   : > { %6805 = shalt.err (!%p6802_p6)
}
  0x38   : > { %s8746_s1 = smov 128   ;;  %s8748_s27 = smov 8  }
  0x39   : > { %6314 = dma.hbm_to_vmem [thread:$0]  (!%p7505_p10), %s470_s12, 512, %s472_s20, %s7518_s24, %s8746_s1, %s8746_s1, %s8748_s27  }
  0x3a   : > { %s6264_s28 = smul.u32 192, %s7510_s19  ;;  %s8789_s2 = sld [smem:[#allocation43_spill]] }
  0x3b   : > { %s6265_s14 = smul.u32 3072, %s7288_s21  ;;  %p7536_p7 = pneg %p7514_p11 }
  0x3c   : > { %s485_s17 = scalar_lea.vmem [#allocation11], %s6264_s28  ;;  %s6266_s22 = smul.u32 3, %s7510_s19 }
  0x3d   : > { %s492_s0 = sshll.u32 %s485_s17, 4  ;;  %s7301_s12 = smov [#allocation11]   ;;  %s493_s0 = int_to_ptr.vmem [resolvable:$true] %s492_s0 }
  0x3e   : > { %s6819_s25 = scalar_lea.vmem %s493_s0, 3072  ;;  %s6824_s20 = sshll.u32 %s7301_s12, 4  ;;  %s6825_s20 = int_to_ptr.vmem [resolvable:$false] %s6824_s20 }
  0x3f   : > { %p6820_p8 = scmp.ne.s32.totalorder %s493_s0, %s6819_s25  ;;  %s6826_s30 = scalar_lea.vmem %s6825_s20, 6144 }
  0x40   : > { %s491_s16 = scalar_lea.hbm %s8789_s2, %s6265_s14  ;;  %p6827_p12 = scmp.lt.s32.totalorder %s493_s0, %s6825_s20 }
  0x41   : > { %p6822_p9 = pnand %p6820_p8, %p7536_p7  ;;  %p6828_p13 = scmp.lt.s32.totalorder %s6826_s30, %s6819_s25 }
  0x43   : > { %p6823_p10 = pneg %p6822_p9  ;;  %p6829_p0 = por %p6828_p13, %p6827_p12 }
  0x45   : > { %p6830_p2 = pnand %p6829_p0, %p6823_p10 }
  0x47   : > { %6833 = shalt.err (!%p6830_p2)
}
  0x48   : > { %s7302_s28 = smov 192   ;;  %s7303_s14 = smov 12  }
  0x49   : > { %6317 = dma.hbm_to_vmem [thread:$0]  (!%p7514_p11), %s491_s16, 3072, %s493_s0, %s7518_s24, %s7302_s28, %s7302_s28, %s7303_s14  }
  0x4a   : > { %s6267_s29 = smul.u32 48, %s7288_s21  ;;  %s506_s17 = scalar_lea.vmem [#allocation12], %s6266_s22 }
  0x4b   : > { %s514_s1 = sshll.u32 %s506_s17, 4  ;;  %s5464_s12 = sshll.u32 %s7510_s19, 6  ;;  %s515_s1 = int_to_ptr.vmem [resolvable:$true] %s514_s1 }
  0x4c   : > { %s8791_s3 = sld [smem:[#allocation44_spill]]  ;;  %s6847_s20 = scalar_lea.vmem %s515_s1, 48 }
  0x4d   : > { %p6848_p3 = scmp.ne.s32.totalorder %s515_s1, %s6847_s20  ;;  %s7304_s30 = smov [#allocation12]  }
  0x4e   : > { %s6852_s15 = sshll.u32 %s7304_s30, 4  ;;  %s6853_s15 = int_to_ptr.vmem [resolvable:$false] %s6852_s15 }
  0x4f   : > { %p6850_p4 = pnand %p6848_p3, %p7536_p7  ;;  %s6854_s18 = scalar_lea.vmem %s6853_s15, 96 }
  0x50   : > { %p6855_p6 = scmp.lt.s32.totalorder %s515_s1, %s6853_s15  ;;  %p6856_p8 = scmp.lt.s32.totalorder %s6854_s18, %s6847_s20 }
  0x51   : > { %p6851_p5 = pneg %p6850_p4 }
  0x52   : > { %s512_s25 = scalar_lea.hbm %s8791_s3, %s6267_s29  ;;  %p6857_p9 = por %p6856_p8, %p6855_p6 }
  0x54   : > { %p6858_p10 = pnand %p6857_p9, %p6851_p5 }
  0x56   : > { %6861 = shalt.err (!%p6858_p10)
}
  0x57   : > { %6320 = dma.hbm_to_vmem [thread:$0]  (!%p7514_p11), %s512_s25, 48, %s515_s1, %s7518_s24  }
  0x58   : > { %s5820_s0 = sshll.u32 %s7288_s21, 10  ;;  %s8792_s4 = sld [smem:[#allocation45_spill]] }
  0x59   : > { %s525_s16 = scalar_lea.vmem [#allocation13], %s5464_s12  ;;  %s7305_s15 = smov [#allocation13]  }
  0x5a   : > { %s532_s28 = sshll.u32 %s525_s16, 4  ;;  %s6880_s18 = sshll.u32 %s7305_s15, 4  ;;  %s533_s28 = int_to_ptr.vmem [resolvable:$true] %s532_s28  ;;  %s6881_s18 = int_to_ptr.vmem [resolvable:$false] %s6880_s18 }
  0x5b   : > { %s6875_s14 = scalar_lea.vmem %s533_s28, 1024  ;;  %s6882_s29 = scalar_lea.vmem %s6881_s18, 2048 }
  0x5c   : > { %p6876_p12 = scmp.ne.s32.totalorder %s533_s28, %s6875_s14  ;;  %p6883_p2 = scmp.lt.s32.totalorder %s533_s28, %s6881_s18 }
  0x5d   : > { %p6884_p3 = scmp.lt.s32.totalorder %s6882_s29, %s6875_s14 }
  0x5e   : > { %s531_s27 = scalar_lea.hbm %s8792_s4, %s5820_s0  ;;  %p6878_p13 = pnand %p6876_p12, %p7536_p7 }
  0x5f   : > { %p6885_p4 = por %p6884_p3, %p6883_p2 }
  0x60   : > { %p6879_p0 = pneg %p6878_p13 }
  0x62   : > { %p6886_p5 = pnand %p6885_p4, %p6879_p0 }
  0x64   : > { %6889 = shalt.err (!%p6886_p5)
}
  0x65   : > { %s8752_s1 = smov 64   ;;  %s8753_s17 = smov 4  }
  0x66   : > { %6323 = dma.hbm_to_vmem [thread:$0]  (!%p7514_p11), %s531_s27, 1024, %s533_s28, %s7518_s24, %s8752_s1, %s8752_s1, %s8753_s17  }
  0x67   : > { %s7568_s12 = sshll.u32 %s7288_s21, 4  ;;  %s545_s25 = scalar_lea.vmem [#allocation14], %s7510_s19 }
  0x68   : > { %s552_s20 = sshll.u32 %s545_s25, 4  ;;  %s8793_s5 = sld [smem:[#allocation46_spill]]  ;;  %s553_s20 = int_to_ptr.vmem [resolvable:$true] %s552_s20 }
  0x69   : > { %s6903_s22 = scalar_lea.vmem %s553_s20, 16  ;;  %s7308_s16 = smov [#allocation14]  }
  0x6a   : > { %p6904_p6 = scmp.ne.s32.totalorder %s553_s20, %s6903_s22  ;;  %s6908_s14 = sshll.u32 %s7308_s16, 4  ;;  %s6909_s14 = int_to_ptr.vmem [resolvable:$false] %s6908_s14 }
  0x6b   : > { %s6910_s15 = scalar_lea.vmem %s6909_s14, 32  ;;  %p6911_p10 = scmp.lt.s32.totalorder %s553_s20, %s6909_s14 }
  0x6c   : > { %p6906_p8 = pnand %p6904_p6, %p7536_p7  ;;  %p6912_p12 = scmp.lt.s32.totalorder %s6910_s15, %s6903_s22 }
  0x6e   : > { %s550_s2 = scalar_lea.hbm %s8793_s5, %s7568_s12  ;;  %p6907_p9 = pneg %p6906_p8 }
  0x6f   : > { %p6913_p13 = por %p6912_p12, %p6911_p10 }
  0x71   : > { %p6914_p0 = pnand %p6913_p13, %p6907_p9 }
  0x73   : > { %6917 = shalt.err (!%p6914_p0)
}
  0x74   : > { %6326 = dma.hbm_to_vmem [thread:$0]  (!%p7514_p11), %s550_s2, 16, %s553_s20, %s7518_s24  }
  0x75   : > { %s567_s18 = scalar_lea.hbm %s8728_s6, %s7568_s12  ;;  %s562_s29 = scalar_lea.vmem [#allocation15], %s7510_s19 }
  0x76   : > { %s569_s25 = sshll.u32 %s562_s29, 4  ;;  %s584_s22 = scalar_lea.hbm %s8729_s7, %s7568_s12  ;;  %s570_s25 = int_to_ptr.vmem [resolvable:$true] %s569_s25 }
  0x77   : > { %s6931_s16 = scalar_lea.vmem %s570_s25, 16  ;;  %s7309_s14 = smov [#allocation15]  }
  0x78   : > { %p6932_p2 = scmp.ne.s32.totalorder %s570_s25, %s6931_s16  ;;  %s6936_s15 = sshll.u32 %s7309_s14, 4  ;;  %s6937_s15 = int_to_ptr.vmem [resolvable:$false] %s6936_s15 }
  0x79   : > { %s6938_s20 = scalar_lea.vmem %s6937_s15, 32  ;;  %p6939_p5 = scmp.lt.s32.totalorder %s570_s25, %s6937_s15 }
  0x7a   : > { %p6934_p3 = pnand %p6932_p2, %p7536_p7  ;;  %p6940_p6 = scmp.lt.s32.totalorder %s6938_s20, %s6931_s16 }
  0x7c   : > { %p6935_p4 = pneg %p6934_p3  ;;  %p6941_p8 = por %p6940_p6, %p6939_p5 }
  0x7e   : > { %p6942_p9 = pnand %p6941_p8, %p6935_p4 }
  0x80   : > { %6945 = shalt.err (!%p6942_p9)
}
  0x81   : > { %6329 = dma.hbm_to_vmem [thread:$0]  (!%p7514_p11), %s567_s18, 16, %s570_s25, %s7518_s24  }
  0x82   : > { %s579_s2 = scalar_lea.vmem [#allocation16], %s7510_s19  ;;  %s8754_s28 = smul.u32 384, %s7510_s19 }
  0x83   : > { %s586_s27 = sshll.u32 %s579_s2, 4  ;;  %s8755_s29 = smul.u32 6144, %s7288_s21  ;;  %s587_s27 = int_to_ptr.vmem [resolvable:$true] %s586_s27 }
  0x84   : > { %s6959_s30 = scalar_lea.vmem %s587_s27, 16  ;;  %s7310_s0 = smov [#allocation16]  }
  0x85   : > { %p6960_p10 = scmp.ne.s32.totalorder %s587_s27, %s6959_s30  ;;  %s6964_s16 = sshll.u32 %s7310_s0, 4  ;;  %s6965_s16 = int_to_ptr.vmem [resolvable:$false] %s6964_s16 }
  0x86   : > { %s6966_s14 = scalar_lea.vmem %s6965_s16, 32  ;;  %p6967_p0 = scmp.lt.s32.totalorder %s587_s27, %s6965_s16 }
  0x87   : > { %p6962_p12 = pnand %p6960_p10, %p7536_p7  ;;  %p6968_p2 = scmp.lt.s32.totalorder %s6966_s14, %s6959_s30 }
  0x89   : > { %p6963_p13 = pneg %p6962_p12  ;;  %p6969_p3 = por %p6968_p2, %p6967_p0 }
  0x8b   : > { %p6970_p4 = pnand %p6969_p3, %p6963_p13 }
  0x8d   : > { %6973 = shalt.err (!%p6970_p4)
}
  0x8e   : > { %6332 = dma.hbm_to_vmem [thread:$0]  (!%p7514_p11), %s584_s22, 16, %s587_s27, %s7518_s24  }
  0x8f   : > { %s603_s2 = scalar_lea.hbm %s8730_s8, %s8755_s29  ;;  %s597_s30 = scalar_lea.vmem [#allocation17], %s8754_s28 }
  0x90   : > { %s604_s0 = sshll.u32 %s597_s30, 4  ;;  %s5471_s16 = sshll.u32 %s7510_s19, 1  ;;  %s605_s0 = int_to_ptr.vmem [resolvable:$true] %s604_s0 }
  0x91   : > { %s6987_s14 = scalar_lea.vmem %s605_s0, 6144  ;;  %s7311_s18 = smov [#allocation17]  }
  0x92   : > { %p6988_p5 = scmp.ne.s32.totalorder %s605_s0, %s6987_s14  ;;  %s6992_s25 = sshll.u32 %s7311_s18, 4  ;;  %s6993_s25 = int_to_ptr.vmem [resolvable:$false] %s6992_s25 }
  0x93   : > { %s6994_s1 = scalar_lea.vmem %s6993_s25, 12288  ;;  %p6995_p9 = scmp.lt.s32.totalorder %s605_s0, %s6993_s25 }
  0x94   : > { %p6990_p6 = pnand %p6988_p5, %p7536_p7  ;;  %p6996_p10 = scmp.lt.s32.totalorder %s6994_s1, %s6987_s14 }
  0x96   : > { %p6991_p8 = pneg %p6990_p6  ;;  %p6997_p12 = por %p6996_p10, %p6995_p9 }
  0x98   : > { %p6998_p13 = pnand %p6997_p12, %p6991_p8 }
  0x9a   : > { %7001 = shalt.err (!%p6998_p13)
}
  0x9b   : > { %s8794_s22 = smov 8   ;;  %s8795_s27 = smov 128  }
  0x9c   : > { %6335 = dma.hbm_to_vmem [thread:$0]  (!%p7514_p11), %s603_s2, 6144, %s605_s0, %s7518_s24, %s8795_s27, %s8795_s27, %s8794_s22  }
  0x9d   : > { %s5821_s15 = sshll.u32 %s7288_s21, 5  ;;  %s618_s20 = scalar_lea.vmem [#allocation18], %s5471_s16 }
  0x9e   : > { %s626_s30 = sshll.u32 %s618_s20, 4  ;;  %s624_s25 = scalar_lea.hbm %s8731_s9, %s5821_s15  ;;  %s627_s30 = int_to_ptr.vmem [resolvable:$true] %s626_s30 }
  0x9f   : > { %s7015_s1 = scalar_lea.vmem %s627_s30, 32  ;;  %s7312_s14 = smov [#allocation18]  }
  0xa0   : > { %p7016_p0 = scmp.ne.s32.totalorder %s627_s30, %s7015_s1  ;;  %s7020_s28 = sshll.u32 %s7312_s14, 4  ;;  %s7021_s28 = int_to_ptr.vmem [resolvable:$false] %s7020_s28 }
  0xa1   : > { %s7022_s29 = scalar_lea.vmem %s7021_s28, 64  ;;  %p7023_p4 = scmp.lt.s32.totalorder %s627_s30, %s7021_s28 }
  0xa2   : > { %p7018_p2 = pnand %p7016_p0, %p7536_p7  ;;  %p7024_p5 = scmp.lt.s32.totalorder %s7022_s29, %s7015_s1 }
  0xa4   : > { %p7019_p3 = pneg %p7018_p2  ;;  %p7025_p6 = por %p7024_p5, %p7023_p4 }
  0xa6   : > { %p7026_p8 = pnand %p7025_p6, %p7019_p3 }
  0xa8   : > { %7029 = shalt.err (!%p7026_p8)
}
  0xa9   : > { %6338 = dma.hbm_to_vmem [thread:$0]  (!%p7514_p11), %s624_s25, 32, %s627_s30, %s7518_s24  }
  0xaa   : > { %s8796_s17 = smul.u32 6144, %s7288_s21  ;;  %s7313_s3 = smov [#allocation19]  }
  0xab   : > { %s8797_s15 = smul.u32 384, %s7510_s19  ;;  %s7048_s30 = sshll.u32 %s7313_s3, 4  ;;  %s7049_s30 = int_to_ptr.vmem [resolvable:$false] %s7048_s30 }
  0xac   : > { %s643_s16 = scalar_lea.hbm %s8732_s10, %s8796_s17  ;;  %s7050_s25 = scalar_lea.vmem %s7049_s30, 12288 }
  0xad   : > { %s637_s20 = scalar_lea.vmem [#allocation19], %s8797_s15 }
  0xae   : > { %s644_s28 = sshll.u32 %s637_s20, 4  ;;  %s645_s28 = int_to_ptr.vmem [resolvable:$true] %s644_s28 }
  0xaf   : > { %s7043_s14 = scalar_lea.vmem %s645_s28, 6144  ;;  %p7051_p13 = scmp.lt.s32.totalorder %s645_s28, %s7049_s30 }
  0xb0   : > { %p7044_p9 = scmp.ne.s32.totalorder %s645_s28, %s7043_s14  ;;  %p7052_p0 = scmp.lt.s32.totalorder %s7050_s25, %s7043_s14 }
  0xb2   : > { %p7046_p10 = pnand %p7044_p9, %p7536_p7  ;;  %p7053_p2 = por %p7052_p0, %p7051_p13 }
  0xb4   : > { %p7047_p12 = pneg %p7046_p10 }
  0xb6   : > { %p7054_p3 = pnand %p7053_p2, %p7047_p12 }
  0xb8   : > { %7057 = shalt.err (!%p7054_p3)
}
  0xb9   : > { %s8798_s17 = smov 4   ;;  %s8799_s2 = smov 64  }
  0xba   : > { %6341 = dma.hbm_to_vmem [thread:$0]  (!%p7514_p11), %s643_s16, 6144, %s645_s28, %s7518_s24, %s8799_s2, %s8799_s2, %s8798_s17  }
  0xbb   : > { %s657_s0 = scalar_lea.vmem [#allocation20], %s7510_s19  ;;  %s8800_s29 = sld [smem:[#allocation47_spill]] }
  0xbc   : > { %s664_s15 = sshll.u32 %s657_s0, 4  ;;  %s7314_s30 = smov [#allocation20]   ;;  %s665_s15 = int_to_ptr.vmem [resolvable:$true] %s664_s15 }
  0xbd   : > { %s7071_s14 = scalar_lea.vmem %s665_s15, 16  ;;  %s7076_s25 = sshll.u32 %s7314_s30, 4  ;;  %s7077_s25 = int_to_ptr.vmem [resolvable:$false] %s7076_s25 }
  0xbe   : > { %p7072_p4 = scmp.ne.s32.totalorder %s665_s15, %s7071_s14  ;;  %s7078_s4 = scalar_lea.vmem %s7077_s25, 32 }
  0xbf   : > { %p7079_p8 = scmp.lt.s32.totalorder %s665_s15, %s7077_s25  ;;  %p7080_p9 = scmp.lt.s32.totalorder %s7078_s4, %s7071_s14 }
  0xc0   : > { %p7074_p5 = pnand %p7072_p4, %p7536_p7 }
  0xc1   : > { %s679_s18 = scalar_lea.hbm %s8800_s29, %s7568_s12  ;;  %p7081_p10 = por %p7080_p9, %p7079_p8 }
  0xc2   : > { %p7075_p6 = pneg %p7074_p5 }
  0xc4   : > { %p7082_p12 = pnand %p7081_p10, %p7075_p6 }
  0xc6   : > { %7085 = shalt.err (!%p7082_p12)
}
  0xc7   : > { %s8802_s17 = scalar_lea.hbm %s8733_s11, %s7568_s12  ;;  %s674_s2 = scalar_lea.vmem [#allocation21], %s7510_s19 }
  0xc8   : > { %6344 = dma.hbm_to_vmem [thread:$0]  (!%p7514_p11), %s8802_s17, 16, %s665_s15, %s7518_s24  }
  0xc9   : > { %s681_s0 = sshll.u32 %s674_s2, 4  ;;  %s7315_s4 = smov [#allocation21]   ;;  %s682_s0 = int_to_ptr.vmem [resolvable:$true] %s681_s0 }
  0xca   : > { %s7099_s3 = scalar_lea.vmem %s682_s0, 16  ;;  %s7104_s20 = sshll.u32 %s7315_s4, 4  ;;  %s7105_s20 = int_to_ptr.vmem [resolvable:$false] %s7104_s20 }
  0xcb   : > { %p7100_p13 = scmp.ne.s32.totalorder %s682_s0, %s7099_s3  ;;  %s7106_s29 = scalar_lea.vmem %s7105_s20, 32 }
  0xcc   : > { %p7107_p3 = scmp.lt.s32.totalorder %s682_s0, %s7105_s20  ;;  %p7108_p4 = scmp.lt.s32.totalorder %s7106_s29, %s7099_s3 }
  0xcd   : > { %p7102_p0 = pnand %p7100_p13, %p7536_p7 }
  0xce   : > { %p7109_p5 = por %p7108_p4, %p7107_p3 }
  0xcf   : > { %p7103_p2 = pneg %p7102_p0 }
  0xd1   : > { %p7110_p6 = pnand %p7109_p5, %p7103_p2 }
  0xd3   : > { %7113 = shalt.err (!%p7110_p6)
}
  0xd4   : > { %s8803_s30 = sld [smem:[#allocation31_spill]]  ;;  %s7678_s2 = sadd.s32 4294967295, %s7296_s23  }
  0xd5   : > { %s8804_s25 = sld [smem:[#allocation32_spill]]  ;;  %s5454_s3 = sadd.s32 4294967294, %s7296_s23  }
  0xd6   : > { %s8805_s16 = sld [smem:[#allocation28_spill]]  ;;  %p8759_p9 = scmp.eq.s32.totalorder %s7678_s2, 0 }
  0xd7   : > { %s8806_s28 = sld [smem:[#allocation29_spill]]  ;;  %p420_p12 = scmp.eq.s32.totalorder %s7678_s2, 11 }
  0xd8   : > { %6347 = dma.hbm_to_vmem [thread:$0]  (!%p7514_p11), %s679_s18, 16, %s682_s0, %s7518_s24  }
  0xd9   : > { %p426_p0 = scmp.eq.s32.totalorder %s5454_s3, 11  ;;  %p7702_p3 = por %p420_p12, %p57_p1 }
  0xda   : > { %p5455_p5 = scmp.ge.s32.totalorder %s7296_s23, 1  ;;  %p433_p6 = scmp.lt.s32.totalorder %s7296_s23, 13 }
  0xdb   : > { %p63_p8 = scmp.ne.s32.totalorder %s8804_s25, %s8803_s30  ;;  %s7316_s15 = smov [#allocation9]  }
  0xdc   : > { %s8810_s0 = scalar_select %p7702_p3, 1, 0 }
  0xdd   : > { %p110_p10 = scmp.ne.s32.totalorder %s8806_s28, %s8805_s16  ;;  %p7689_p13 = por %p8759_p9, %p63_p8 }
  0xde   : > { %p7706_p4 = por %p426_p0, %p63_p8  ;;  %s445_s14 = sshll.u32 %s7316_s15, 4  ;;  %s7723_s14 = int_to_ptr.vmem [resolvable:$true] %s445_s14 }
  0xdf   : > { %s8808_s4 = scalar_select %p7689_p13, 1, 0 }
  0xe0   : > { %p7695_p2 = por %p110_p10, %p8759_p9  ;;  %p7712_p13 = pnand %p5455_p5, %p433_p6 }
  0xe1   : > { %s8811_s20 = scalar_select %p7706_p4, 1, 0 }
  0xe2   : > { %s8809_s18 = scalar_select %p7695_p2, 1, 0 }
  0xe3   : > { %s8813_s16 = sld [smem:[#allocation48_spill]]  ;;  %p6307_p1 = pneg %p7712_p13 }
  0xe4   : > { %s691_s17 = scalar_lea.vmem [#allocation22], %s7510_s19  ;;  %s7317_s15 = smov [#allocation22]  }
  0xe5   : > { %s698_s3 = sshll.u32 %s691_s17, 4  ;;  %p7727_p8 = pnand %p6307_p1, %p8759_p9  ;;  %s699_s3 = int_to_ptr.vmem [resolvable:$true] %s698_s3 }
  0xe6   : > { %s7127_s5 = scalar_lea.vmem %s699_s3, 16  ;;  %s7132_s30 = sshll.u32 %s7317_s15, 4  ;;  %s7133_s30 = int_to_ptr.vmem [resolvable:$false] %s7132_s30 }
  0xe7   : > { %p7128_p10 = scmp.ne.s32.totalorder %s699_s3, %s7127_s5  ;;  %p7135_p5 = scmp.lt.s32.totalorder %s699_s3, %s7133_s30 }
  0xe9   : > { %s696_s28 = scalar_lea.hbm %s8813_s16, %s7568_s12  ;;  %p7130_p12 = pnand %p7128_p10, %p7536_p7 }
  0xea   : > { %s7134_s12 = scalar_lea.vmem %s7133_s30, 32 }
  0xeb   : > { %p7131_p0 = pneg %p7130_p12  ;;  %p7136_p6 = scmp.lt.s32.totalorder %s7134_s12, %s7127_s5 }
  0xed   : > { %p7137_p4 = por %p7136_p6, %p7135_p5 }
  0xef   : > { %p7138_p3 = pnand %p7137_p4, %p7131_p0 }
  0xf1   : > { %7141 = shalt.err (!%p7138_p3)
}
  0xf2   : > { %6350 = dma.hbm_to_vmem [thread:$0]  (!%p7514_p11), %s696_s28, 16, %s699_s3, %s7518_s24  }
  0xf3   : > { %p7144_p7 = pneg %p7727_p8  ;;  %s7153_s13 = scalar_lea.vmem %s7723_s14, 256 }
  0xf4   : > { %p7154_p1 = scmp.ne.s32.totalorder %s7723_s14, %s7153_s13  ;;  %p7161_p9 = scmp.lt.s32.totalorder %s7723_s14, %s7723_s14 }
  0xf5   : > { %p7162_p2 = scmp.lt.s32.totalorder %s7153_s13, %s7153_s13 }
  0xf6   : > { %p7156_p10 = pnand %p7154_p1, %p7144_p7 }
  0xf7   : > { %p7163_p5 = por %p7162_p2, %p7161_p9 }
  0xf8   : > { %p7157_p12 = pneg %p7156_p10 }
  0xfa   : > { %p7164_p4 = pnand %p7163_p5, %p7157_p12 }
  0xfc   : > { %7167 = shalt.err (!%p7164_p4)
}
  0xfd   : > { %s8815_s26 = sld [smem:[#allocation42_spill]]  ;;  %s709_s25 = sand.u32 (!%p7712_p13), 1, %s7678_s2  }
  0xfe   : > { %s8816_s24 = sld [smem:[#allocation32_spill]] (!%p7712_p13)  ;;  %s710_s1 = scalar_lea.sflag (!%p7712_p13), [#allocation7], %s709_s25 }
  0xff   : > { %707 = sbr.rel (%p7712_p13) target bundleno = 6578 (0x19b2), region = 76  ;;  %p8817_p11 = scmp.ne.s32.totalorder (!%p7712_p13), %s8808_s4, 0 }
 0x103   : > { %6310 = dma.hbm_to_vmem [thread:$0]  (!%p7727_p8), %s8815_s26, 256, %s7723_s14, [#allocation10], %s8795_s27, %s8795_s27, %s8794_s22  }
 0x104   : > { %s8761_s16 = sand.u32 1, %s8816_s24  }
 0x105   : > { %s5479_s28 = sshll.u32 %s8761_s16, 5 }
 0x106   : > { %s7757_s17 = scalar_lea.vmem [#allocation6], %s5479_s28 }
 0x107   : > { %7239 = dma.done.wait (%p8817_p11), %s710_s1, 512  }
 0x108   : > { %7241 = vsyncadd (%p8817_p11), %s710_s1, 4294966784  ;;  %p8818_p9 = scmp.eq.s32.totalorder %s7678_s2, 0 }
 0x10a   : > { %7243 = dma.done.wait (%p8818_p9), [#allocation10], 256   ;;  %p8819_p13 = pmov %p8818_p9 }
 0x10b   : > { %s8820_s22 = sld [smem:[#allocation29_spill]]  ;;  %p8821_p2 = scmp.ne.s32.totalorder %s8809_s18, 0 }
 0x10c   : > { %7245 = vsyncadd (%p8819_p13), [#allocation10], 4294967040 }
 0x111   : > { %s7768_s27 = sand.u32 1, %s8820_s22  }
 0x112   : > { %s6272_s29 = smul.u32 192, %s7768_s27 }
 0x114   : > { %s7771_s14 = scalar_lea.vmem [#allocation11], %s6272_s29 }
 0x115   : > { %7247 = dma.done.wait (%p8821_p2), %s710_s1, 16560  }
 0x116   : > { %7249 = vsyncadd (%p8821_p2), %s710_s1, 4294950736  ;;  %s6273_s2 = smul.u32 3, %s7768_s27  ;;  %s5481_s4 = sshll.u32 %s7768_s27, 6 }
 0x117   : > { %s6274_s3 = smul.u32 384, %s7768_s27  ;;  %s5482_s15 = sshll.u32 %s7768_s27, 1 }
 0x118   : > { %s7781_s30 = scalar_lea.vmem [#allocation12], %s6273_s2  ;;  %s7783_s12 = scalar_lea.vmem [#allocation13], %s5481_s4 }
 0x119   : > { %s752_s18 = scalar_lea.vmem [#allocation14], %s7768_s27  ;;  %s760_s13 = scalar_lea.vmem [#allocation15], %s7768_s27 }
 0x11a   : > { %s768_s5 = scalar_lea.vmem [#allocation16], %s7768_s27  ;;  %s7788_s19 = scalar_lea.vmem [#allocation17], %s6274_s3 }
 0x11b   : > { %s7790_s26 = scalar_lea.vmem [#allocation18], %s5482_s15  ;;  %s7792_s24 = scalar_lea.vmem [#allocation19], %s6274_s3 }
 0x11c   : > { %s803_s25 = scalar_lea.vmem [#allocation20], %s7768_s27  ;;  %s811_s1 = scalar_lea.vmem [#allocation21], %s7768_s27 }
 0x11d   : > { %s819_s22 = scalar_lea.vmem [#allocation22], %s7768_s27  ;;  %s7797_s29 = scalar_lea.vmem [#allocation23], %s5479_s28 }
 0x11e   : > { %s8822_s16 = sld [smem:[#allocation34_spill]] }
 0x124   : > { %p5484_p3 = scmp.ne.s32.totalorder %s8822_s16, 0 }
 0x126   : > { %924 = sbr.rel (%p5484_p3) target bundleno = 305 (0x131), region = 136 }
 0x12b   : > { %v925_v0 = vld [vmem:[%s7757_s17] sm:$0xff]  ;;  %v926_v2 = vld [vmem:[%s7757_s17 + $0x8] sm:$0xff]  ;;  %v927_v5 = vld [vmem:[%s7757_s17 + $0x10] sm:$0xff] }
 0x12c   : > { %v929_v1 = vld [vmem:[#allocation9] sm:$0xff]  ;;  %v930_v4 = vld [vmem:[#allocation9 + $0x8] sm:$0xff]  ;;  %v928_v6 = vld [vmem:[%s7757_s17 + $0x18] sm:$0xff] }
 0x12d   : > { %v931_v3 = vadd.f32 %v929_v1, %v925_v0  ;;  %v932_v7 = vadd.f32 %v930_v4, %v926_v2  ;;  %v933_v8 = vadd.f32 %v929_v1, %v927_v5  ;;  %v934_v9 = vadd.f32 %v930_v4, %v928_v6 }
 0x12f   : > { %935 = vst [vmem:[#allocation2 + $0x10] sm:$0xff] %v931_v3  ;;  %936 = vst [vmem:[#allocation2] sm:$0xff] %v932_v7 }
 0x130   : > { %937 = vst [vmem:[#allocation2 + $0x18] sm:$0xff] %v933_v8  ;;  %938 = vst [vmem:[#allocation2 + $0x8] sm:$0xff] %v934_v9 }
 0x131 PF: > { %v6466_v10 = vld [vmem:[%s7771_s14 + $0xac] ss:$12 sps:$4 sm:$0xff]   ;;  %v6468_v11 = vld [vmem:[%s7771_s14 + $0xa8] ss:$12 sps:$4 sm:$0xff]   ;;  %v7318_v12 = vmov 0   ;;  %v7319_v33 = vmov 0.0   ;;  %v979_v34 = vlaneseq }
 0x132   : > { %1154 = vmatprep.mubr.bf16.mxu0 %v7318_v12  ;;  %1122 = vmatprep.subr.bf16.mxu0 %v6466_v10  ;;  %v6469_v13 = vld [vmem:[%s7771_s14 + $0x94] ss:$12 sps:$4 sm:$0xff]   ;;  %v6471_v14 = vld [vmem:[%s7771_s14 + $0x90] ss:$12 sps:$4 sm:$0xff]   ;;  %v6474_v16 = vld [vmem:[%s7771_s14 + $0x78] ss:$12 sps:$4 sm:$0xff]  }
 0x133   : > { %1123 = vmatpush1.bf16.msra.mxu0 %v6468_v11  ;;  %v6472_v15 = vld [vmem:[%s7771_s14 + $0x7c] ss:$12 sps:$4 sm:$0xff]   ;;  %v6475_v17 = vld [vmem:[%s7771_s14 + $0x64] ss:$12 sps:$4 sm:$0xff]   ;;  %v6477_v19 = vld [vmem:[%s7771_s14 + $0x60] ss:$12 sps:$4 sm:$0xff]  }
 0x134   : > { %1124 = vmatprep.subr.bf16.mxu0 %v6469_v13  ;;  %v6478_v21 = vld [vmem:[%s7771_s14 + $0x4c] ss:$12 sps:$4 sm:$0xff]   ;;  %v6480_v23 = vld [vmem:[%s7771_s14 + $0x48] ss:$12 sps:$4 sm:$0xff]   ;;  %v6483_v25 = vld [vmem:[%s7771_s14 + $0x30] ss:$12 sps:$4 sm:$0xff]  }
 0x135   : > { %v6481_v24 = vld [vmem:[%s7771_s14 + $0x34] ss:$12 sps:$4 sm:$0xff]   ;;  %v6484_v26 = vld [vmem:[%s7771_s14 + $0x1c] ss:$12 sps:$4 sm:$0xff]   ;;  %v6486_v27 = vld [vmem:[%s7771_s14 + $0x18] ss:$12 sps:$4 sm:$0xff]  }
 0x136   : > { %v939_v18 = vld [vmem:[#allocation2 + $0x10] sm:$0xff]  ;;  %v940_v20 = vld [vmem:[#allocation2] sm:$0xff]  ;;  %v6487_v28 = vld [vmem:[%s7771_s14 + $0x4] ss:$12 sps:$4 sm:$0xff]   ;;  %vm7320_vm0 = vmmov 0   ;;  %v7828_v35 = vshrl.u32 %v979_v34, 7 }
 0x137   : > { %1125 = vmatpush1.bf16.msra.mxu0 %v6471_v14  ;;  %v943_v22 = vpack.c.bf16 %v940_v20, %v939_v18  ;;  %v6489_v29 = vld [vmem:[%s7771_s14] ss:$12 sps:$4 sm:$0xff]   ;;  %v941_v30 = vld [vmem:[#allocation2 + $0x18] sm:$0xff]  ;;  %vm1230_vm1 = vcmask 130048   ;;  %v6491_v0 = vld [vmem:[%s7771_s14 + $0x98] ss:$12 sps:$4 sm:$0xff]  }
 0x138   : > { %1126 = vmatprep.subr.bf16.mxu0 %v6472_v15  ;;  %v942_v31 = vld [vmem:[#allocation2 + $0x8] sm:$0xff]  ;;  %v985_v36 = vsub.s32 1, %v7828_v35  ;;  %v981_v43 = vsub.s32 0, %v7828_v35  ;;  %v6490_v63 = vld [vmem:[%s7771_s14 + $0xb0] ss:$12 sps:$4 sm:$0xff]   ;;  %s7321_s16 = smov 112  }
 0x139   : > { %6048 = vmatprep.mubr.bf16.mxu1 %v943_v22  ;;  %v7822_v32 = vpack.c.bf16 %v942_v31, %v941_v30  ;;  %v7832_v38 = vld [vmem:[%s7781_s30] sm:$0x7]  ;;  %6032 = vmatprep.subr.bf16.mxu1 %v6490_v63  ;;  %v6493_v2 = vld [vmem:[%s7771_s14 + $0x68] ss:$12 sps:$4 sm:$0xff]   ;;  %v6494_v3 = vld [vmem:[%s7771_s14 + $0x50] ss:$12 sps:$4 sm:$0xff]  }
 0x13a   : > { %v986_v40 = vrot.slane %v7832_v38, %v985_v36  ;;  %v982_v49 = vrot.slane %v7832_v38, %v981_v43  ;;  %6033 = vmatpush3.bf16.msra.mxu1 %v6490_v63  ;;  %v6492_v1 = vld [vmem:[%s7771_s14 + $0x80] ss:$12 sps:$4 sm:$0xff]   ;;  %v6495_v4 = vld [vmem:[%s7771_s14 + $0x38] ss:$12 sps:$4 sm:$0xff]   ;;  %v6497_v6 = vld [vmem:[%s7771_s14 + $0x8] ss:$12 sps:$4 sm:$0xff]  }
 0x13b   : > { %1127 = vmatpush1.bf16.msra.mxu0 %v6474_v16  ;;  %6034 = vmatprep.subr.bf16.mxu1 %v6491_v0  ;;  %v6496_v5 = vld [vmem:[%s7771_s14 + $0x20] ss:$12 sps:$4 sm:$0xff]   ;;  %vm1475_vm2 = vcmask 125952   ;;  %s7322_s28 = smov 96   ;;  %s7323_s17 = smov 80   ;;  %vm1752_vm3 = vcmask 257152  }
 0x13c   : > { %1128 = vmatprep.subr.bf16.mxu0 %v6475_v17  ;;  %s7324_s14 = smov 64   ;;  %s7325_s2 = smov 48   ;;  %vm2023_vm4 = vcmask 388352   ;;  %vm2294_vm5 = vcmask 519552   ;;  %vm2565_vm6 = vcmask 650752   ;;  %vm2836_vm7 = vcmask 781952  }
 0x13d   : > { %s7326_s4 = smov 32   ;;  %s7327_s3 = smov 16   ;;  %vm3107_vm8 = vcmask 913152   ;;  %vm3378_vm9 = vcmask 1044352   ;;  %vm3590_vm10 = vcmask 1040384   ;;  %vm3661_vm15 = vcmask 1043456  }
 0x13e   : > { %6035 = vmatpush3.bf16.msra.mxu1 %v6491_v0  ;;  %vm3591_vm11 = vsmask.f32 256  ;;  %vm3599_vm12 = vsmask.f32 7938  ;;  %s8839_s27 = sld [smem:[#allocation34_spill]] }
 0x13f   : > { %1129 = vmatpush1.bf16.msra.mxu0 %v6477_v19  ;;  %6036 = vmatprep.subr.bf16.mxu1 %v6492_v1  ;;  %vm8336_vm13 = vmand %vm3590_vm10, %vm3591_vm11 }
 0x140   : > { %1130 = vmatprep.subr.bf16.mxu0 %v6478_v21  ;;  %vm8343_vm14 = vmand %vm3590_vm10, %vm3599_vm12  ;;  %vm4271_vm10 = vsmask.f32 4352 }
 0x142   : > { %6037 = vmatpush3.bf16.msra.mxu1 %v6492_v1 }
 0x143   : > { %1131 = vmatpush1.bf16.msra.mxu0 %v6480_v23  ;;  %6038 = vmatprep.subr.bf16.mxu1 %v6493_v2 }
 0x144   : > { %1132 = vmatprep.subr.bf16.mxu0 %v6481_v24  ;;  %p5811_p8 = scmp.ne.s32.totalorder %s8839_s27, 5 }
 0x146   : > { %6039 = vmatpush3.bf16.msra.mxu1 %v6493_v2 }
 0x147   : > { %1133 = vmatpush1.bf16.msra.mxu0 %v6483_v25  ;;  %6040 = vmatprep.subr.bf16.mxu1 %v6494_v3 }
 0x148   : > { %1134 = vmatprep.subr.bf16.mxu0 %v6484_v26 }
 0x14a   : > { %6041 = vmatpush3.bf16.msra.mxu1 %v6494_v3 }
 0x14b   : > { %1135 = vmatpush1.bf16.msra.mxu0 %v6486_v27  ;;  %6042 = vmatprep.subr.bf16.mxu1 %v6495_v4 }
 0x14c   : > { %1136 = vmatprep.subr.bf16.mxu0 %v6487_v28 }
 0x14e   : > { %6043 = vmatpush3.bf16.msra.mxu1 %v6495_v4 }
 0x14f   : > { %1137 = vmatpush1.bf16.msra.mxu0 %v6489_v29  ;;  %6044 = vmatprep.subr.bf16.mxu1 %v6496_v5 }
 0x150   : > { %6052 = vmatprep.subr.bf16.mxu0 %v7319_v33 }
 0x152   : > { %1155 = vmatmul.mubr.bf16.vlgmr.msra.gmra.mxu0 %v943_v22  ;;  %6045 = vmatpush3.bf16.msra.mxu1 %v6496_v5 }
 0x153   : > { %1164 = vmatprep.mubr.bf16.mxu0 %v7318_v12  ;;  %6046 = vmatprep.subr.bf16.mxu1 %v6497_v6 }
 0x156   : > { %6047 = vmatpush3.bf16.msra.mxu1 %v6497_v6 }
 0x157   : > { %6064 = vmatprep.subr.bf16.mxu1 %v7319_v33 }
 0x159   : > { %6049 = vmatmul.mubr.bf16.vlgmr.msra.gmra.mxu1 %v7822_v32 }
 0x15a   : > { %1165 = vmatmul.mubr.bf16.gmra.mxu0 %v7822_v32  ;;  %6066 = vmatprep.mubr.msk.bf16.mxu1 %vm7320_vm0, %v7319_v33 }
 0x15b   : > { %6054 = vmatprep.mubr.msk.bf16.mxu0 %vm7320_vm0, %v7319_v33 }
 0x212   : > { %v1156_v37 = vpop.f32.mrf.mxu0 }
 0x213   : > { %v1157_v55 = vadd.f32 %v1156_v37, %v982_v49 }
 0x214   : > { %v1158_v39 = vpop.f32.mrf.mxu0 }
 0x215   : > { %v1159_v44 = vadd.f32 %v1158_v39, %v986_v40  ;;  %v989_v39 = vsub.s32 2, %v7828_v35 }
 0x216   : > { %v1160_v41 = vpop.f32.mrf.mxu0 }
 0x217   : > { %v1161_v52 = vadd.f32 %v1160_v41, %v982_v49  ;;  %v990_v41 = vrot.slane %v7832_v38, %v989_v39 }
 0x218   : > { %v1162_v42 = vpop.f32.mrf.mxu0 }
 0x219   : > { %v1163_v45 = vadd.f32 %v1162_v42, %v986_v40  ;;  %v7846_v57 = vpack.c.bf16 %v1161_v52, %v1157_v55 }
 0x21a   : > { %v1166_v46 = vpop.f32.mrf.mxu0 }
 0x21b   : > { %v7838_v47 = vpack.c.bf16 %v1163_v45, %v1159_v44  ;;  %v1167_v59 = vadd.f32 %v1166_v46, %v982_v49 }
 0x21c   : > { %v1168_v48 = vpop.f32.mrf.mxu0 }
 0x21d   : > { %v1235_v50 = vsel %vm1230_vm1, %v7838_v47, 0  ;;  %v1169_v53 = vadd.f32 %v1168_v48, %v986_v40 }
 0x21e   : > { %v1170_v51 = vpop.f32.mrf.mxu0  ;;  %6053 = vmatpush3.bf16.xpose.msra.mxu0 %v1235_v50 }
 0x21f   : > { %6058 = vmatprep.subr.bf16.mxu0 %v7319_v33  ;;  %v1171_v60 = vadd.f32 %v1170_v51, %v982_v49 }
 0x220   : > { %v1172_v54 = vpop.f32.mrf.mxu0 }
 0x221   : > { %v1173_v56 = vadd.f32 %v1172_v54, %v986_v40  ;;  %v7857_v62 = vpack.c.bf16 %v1171_v60, %v1167_v59  ;;  %v6050_v40 = vpop.f32.mrf.mxu1 }
 0x222   : > { %v1218_v44 = vadd.f32 %v6050_v40, %v990_v41 }
 0x223   : > { %v7848_v58 = vpack.c.bf16 %v1173_v56, %v1169_v53  ;;  %v1209_v42 = vpop.f32.mrf.mxu1 }
 0x224   : > { %v1210_v46 = vadd.f32 %v1209_v42, %v990_v41 }
 0x225   : > { %6055 = vmatmul.mubr.msk.bf16.vlgmr.msra.gmra.mxu0 %vm1230_vm1, %v7846_v57  ;;  %v1282_v61 = vsel %vm1230_vm1, %v7848_v58, 0  ;;  %v6051_v45 = vpop.f32.mrf.mxu1 }
 0x226   : > { %6059 = vmatpush3.bf16.xpose.msra.mxu0 %v1282_v61  ;;  %6060 = vmatprep.mubr.msk.bf16.mxu0 %vm7320_vm0, %v7319_v33  ;;  %v1221_v48 = vadd.f32 %v6051_v45, %v990_v41 }
 0x227   : > { %6070 = vmatprep.subr.bf16.mxu0 %v7319_v33  ;;  %v1212_v49 = vpop.f32.mrf.mxu1 }
 0x228   : > { %v7886_v50 = vpack.c.bf16 %v1221_v48, %v1218_v44  ;;  %v1213_v51 = vadd.f32 %v1212_v49, %v990_v41 }
 0x22a   : > { %v7888_v52 = vpack.c.bf16 %v1213_v51, %v1210_v46 }
 0x22c   : > { %6065 = vmatpush3.bf16.msra.mxu1 %v7888_v52 }
 0x22d   : > { %6061 = vmatmul.mubr.msk.bf16.vlgmr.msra.gmra.mxu0 %vm1230_vm1, %v7857_v62  ;;  %6076 = vmatprep.subr.bf16.mxu1 %v7319_v33 }
 0x22e   : > { %6072 = vmatprep.mubr.msk.bf16.mxu0 %vm7320_vm0, %v7319_v33  ;;  %6071 = vmatpush3.bf16.msra.mxu0 %v7886_v50 }
 0x22f   : > { %6082 = vmatprep.subr.bf16.mxu0 %v7319_v33 }
 0x2e5   : > { %v1271_v7 = vpop.f32.mrf.mxu0 }
 0x2e6   : > { %v1325_v8 = vsel %vm1230_vm1, %v1271_v7, -inf }
 0x2e7   : > { %1326 = vmax.xlane.f32.xlu0 %v1325_v8  ;;  %v6056_v9 = vpop.f32.mrf.mxu0 }
 0x2e9   : > { %v1274_v10 = vpop.f32.mrf.mxu0 }
 0x2ea   : > { %v1328_v11 = vsel %vm1230_vm1, %v1274_v10, -inf }
 0x2eb   : > { %1329 = vmax.xlane.f32.xlu0 %v1328_v11  ;;  %v6057_v13 = vpop.f32.mrf.mxu0 }
 0x2ed   : > { %v1318_v14 = vpop.f32.mrf.mxu0 }
 0x2ee   : > { %v1331_v15 = vsel %vm1230_vm1, %v1318_v14, -inf }
 0x2ef   : > { %1332 = vmax.xlane.f32.xlu1 %v1331_v15  ;;  %v6062_v16 = vpop.f32.mrf.mxu0 }
 0x2f1   : > { %v1321_v17 = vpop.f32.mrf.mxu0 }
 0x2f2   : > { %v1334_v18 = vsel %vm1230_vm1, %v1321_v17, -inf }
 0x2f3   : > { %1335 = vmax.xlane.f32.xlu1 %v1334_v18  ;;  %v6063_v19 = vpop.f32.mrf.mxu0 }
 0x370   : > { %v1327_v20 = vpop.xlane.xlu0 %1326 }
 0x371   : > { %v1337_v21 = vsub.f32 %v1271_v7, %v1327_v20 }
 0x373   : > { %v1341_v22 = vmul.f32 1.442695, %v1337_v21 }
 0x374   : > { %v1330_v23 = vpop.xlane.xlu0 %1329 }
 0x375   : > { %6630 = vpow2.f32 %v1341_v22  ;;  %v1338_v24 = vsub.f32 %v1274_v10, %v1330_v23 }
 0x377   : > { %v1343_v25 = vmul.f32 1.442695, %v1338_v24 }
 0x378   : > { %v1333_v26 = vpop.xlane.xlu1 %1332 }
 0x379   : > { %6632 = vpow2.f32 %v1343_v25  ;;  %v1339_v27 = vsub.f32 %v1318_v14, %v1333_v26 }
 0x37b   : > { %v1345_v28 = vmul.f32 1.442695, %v1339_v27 }
 0x37c   : > { %v1336_v38 = vpop.xlane.xlu1 %1335 }
 0x37d   : > { %6634 = vpow2.f32 %v1345_v28  ;;  %v1340_v53 = vsub.f32 %v1321_v17, %v1336_v38 }
 0x37f   : > { %v1347_v54 = vmul.f32 1.442695, %v1340_v53 }
 0x381   : > { %6636 = vpow2.f32 %v1347_v54 }
 0x382   : > { %v6631_v29 = vpop.eup %6630 }
 0x383   : > { %v1349_v30 = vsel %vm1230_vm1, %v6631_v29, 0.0 }
 0x384   : > { %1350 = vadd.xlane.f32.xlu0 %v1349_v30 }
 0x386   : > { %v6633_v31 = vpop.eup %6632 }
 0x387   : > { %v1352_v32 = vsel %vm1230_vm1, %v6633_v31, 0.0 }
 0x388   : > { %1353 = vadd.xlane.f32.xlu1 %v1352_v32 }
 0x38a   : > { %v6635_v34 = vpop.eup %6634 }
 0x38b   : > { %v1355_v37 = vsel %vm1230_vm1, %v6635_v34, 0.0 }
 0x38c   : > { %1356 = vadd.xlane.f32.xlu0 %v1355_v37 }
 0x38e   : > { %v6637_v55 = vpop.eup %6636 }
 0x38f   : > { %v1358_v56 = vsel %vm1230_vm1, %v6637_v55, 0.0 }
 0x399   : > { %1537 = vrot.lane.b32.xlu1 %v7848_v58, %s7321_s16 }
 0x3a2   : > { %1484 = vrot.lane.b32.xlu0 %v7838_v47, %s7321_s16 }
 0x3bd   : > { %1359 = vadd.xlane.f32.xlu1 %v1358_v56 }
 0x3ce   : > { %1481 = vrot.lane.b32.xlu1 %v7846_v57, %s7321_s16 }
 0x3d2   : > { %1534 = vrot.lane.b32.xlu1 %v7857_v62, %s7321_s16 }
 0x40d   : > { %v1351_v59 = vpop.xlane.xlu0 %1350 }
 0x40e   : > { %6638 = vrcp.f32 %v1351_v59 }
 0x411   : > { %v1354_v60 = vpop.xlane.xlu1 %1353 }
 0x412   : > { %6640 = vrcp.f32 %v1354_v60 }
 0x415   : > { %v1357_v61 = vpop.xlane.xlu0 %1356  ;;  %v1538_v6 = vpop.permute.xlu1 %1537 }
 0x416   : > { %6642 = vrcp.f32 %v1357_v61  ;;  %v1543_v15 = vsel %vm1230_vm1, %v1538_v6, 0 }
 0x419   : > { %v1485_v3 = vpop.permute.xlu0 %1484 }
 0x41a   : > { %v1490_v5 = vsel %vm1230_vm1, %v1485_v3, 0 }
 0x41b   : > { %v6639_v63 = vpop.eup %6638 }
 0x41c   : > { %v1365_v1 = vmul.f32 %v6639_v63, %v6631_v29 }
 0x41f   : > { %v6641_v0 = vpop.eup %6640 }
 0x420   : > { %v1366_v2 = vmul.f32 %v6641_v0, %v6633_v31 }
 0x422   : > { %v1369_v4 = vpack.c.bf16 %v1366_v2, %v1365_v1 }
 0x423   : > { %v6643_v9 = vpop.eup %6642 }
 0x424   : > { %6067 = vmatmul.mubr.msk.bf16.vlgmr.msra.gmra.mxu1 %vm1230_vm1, %v1369_v4  ;;  %v1367_v11 = vmul.f32 %v6643_v9, %v6635_v34 }
 0x425   : > { %6077 = vmatpush3.bf16.xpose.msra.mxu1 %v1490_v5  ;;  %6078 = vmatprep.mubr.msk.bf16.mxu1 %vm7320_vm0, %v7319_v33 }
 0x426   : > { %6088 = vmatprep.subr.bf16.mxu1 %v7319_v33 }
 0x446   : > { %v1360_v7 = vpop.xlane.xlu1 %1359 }
 0x447   : > { %6644 = vrcp.f32 %v1360_v7 }
 0x44a   : > { %v1482_v8 = vpop.permute.xlu1 %1481 }
 0x44b   : > { %6079 = vmatmul.mubr.msk.bf16.vlgmr.msra.gmra.mxu1 %vm1230_vm1, %v1482_v8 }
 0x44c   : > { %6090 = vmatprep.mubr.msk.bf16.mxu1 %vm7320_vm0, %v7319_v33 }
 0x44e   : > { %v1535_v16 = vpop.permute.xlu1 %1534 }
 0x454   : > { %v6645_v10 = vpop.eup %6644 }
 0x455   : > { %v1368_v13 = vmul.f32 %v6645_v10, %v6637_v55 }
 0x457   : > { %v1370_v14 = vpack.c.bf16 %v1368_v13, %v1367_v11 }
 0x459   : > { %6073 = vmatmul.mubr.msk.bf16.vlgmr.msra.gmra.mxu0 %vm1230_vm1, %v1370_v14 }
 0x45a   : > { %6083 = vmatpush3.bf16.xpose.msra.mxu0 %v1543_v15  ;;  %6084 = vmatprep.mubr.msk.bf16.mxu0 %vm7320_vm0, %v7319_v33 }
 0x45b   : > { %6094 = vmatprep.subr.bf16.mxu0 %v7319_v33 }
 0x461   : > { %6085 = vmatmul.mubr.msk.bf16.vlgmr.msra.gmra.mxu0 %vm1230_vm1, %v1535_v16 }
 0x462   : > { %6096 = vmatprep.mubr.msk.bf16.mxu0 %vm7320_vm0, %v7319_v33 }
 0x4e4   : > { %v1408_v17 = vpop.f32.mrf.mxu1 }
 0x4e5   : > { %v5822_v18 = vpack.c.bf16 %v1408_v17, %v1408_v17 }
 0x4e6   : > { %v6068_v19 = vpop.f32.mrf.mxu1 }
 0x4e7   : > { %1476 = vst.msk [vmem:[#allocation3] sm:$0xf] %vm1475_vm2, %v5822_v18 }
 0x4e8   : > { %v1411_v20 = vpop.f32.mrf.mxu1 }
 0x4e9   : > { %v5823_v21 = vpack.c.bf16 %v1411_v20, %v1411_v20 }
 0x4ea   : > { %v6069_v22 = vpop.f32.mrf.mxu1 }
 0x4eb   : > { %1477 = vst.msk [vmem:[#allocation3 + $0x4] sm:$0xf] %vm1475_vm2, %v5823_v21 }
 0x50b   : > { %v1526_v23 = vpop.f32.mrf.mxu1 }
 0x50c   : > { %v1586_v24 = vsel %vm1230_vm1, %v1526_v23, -inf }
 0x50d   : > { %1587 = vmax.xlane.f32.xlu0 %v1586_v24  ;;  %v6080_v25 = vpop.f32.mrf.mxu1 }
 0x50f   : > { %v1529_v26 = vpop.f32.mrf.mxu1 }
 0x510   : > { %v1589_v27 = vsel %vm1230_vm1, %v1529_v26, -inf }
 0x511   : > { %1590 = vmax.xlane.f32.xlu1 %v1589_v27  ;;  %v6081_v28 = vpop.f32.mrf.mxu1 }
 0x519   : > { %v1452_v29 = vpop.f32.mrf.mxu0 }
 0x51a   : > { %v5824_v30 = vpack.c.bf16 %v1452_v29, %v1452_v29 }
 0x51b   : > { %v6074_v31 = vpop.f32.mrf.mxu0 }
 0x51c   : > { %1478 = vst.msk [vmem:[#allocation3 + $0x8] sm:$0xf] %vm1475_vm2, %v5824_v30 }
 0x51d   : > { %v1455_v32 = vpop.f32.mrf.mxu0 }
 0x51e   : > { %v5825_v34 = vpack.c.bf16 %v1455_v32, %v1455_v32 }
 0x51f   : > { %v6075_v37 = vpop.f32.mrf.mxu0 }
 0x520   : > { %1479 = vst.msk [vmem:[#allocation3 + $0xc] sm:$0xf] %vm1475_vm2, %v5825_v34 }
 0x521   : > { %v1579_v39 = vpop.f32.mrf.mxu0 }
 0x522   : > { %v1592_v40 = vsel %vm1230_vm1, %v1579_v39, -inf }
 0x523   : > { %1593 = vmax.xlane.f32.xlu0 %v1592_v40  ;;  %v6086_v41 = vpop.f32.mrf.mxu0 }
 0x525   : > { %v1582_v42 = vpop.f32.mrf.mxu0 }
 0x526   : > { %v1595_v44 = vsel %vm1230_vm1, %v1582_v42, -inf }
 0x527   : > { %1596 = vmax.xlane.f32.xlu0 %v1595_v44  ;;  %v6087_v45 = vpop.f32.mrf.mxu0 }
 0x596   : > { %v1588_v46 = vpop.xlane.xlu0 %1587 }
 0x597   : > { %v1598_v48 = vsub.f32 %v1526_v23, %v1588_v46 }
 0x599   : > { %v1602_v49 = vmul.f32 1.442695, %v1598_v48 }
 0x59a   : > { %v1591_v51 = vpop.xlane.xlu1 %1590 }
 0x59b   : > { %6646 = vpow2.f32 %v1602_v49  ;;  %v1599_v38 = vsub.f32 %v1529_v26, %v1591_v51 }
 0x59d   : > { %v1604_v53 = vmul.f32 1.442695, %v1599_v38 }
 0x59f   : > { %6648 = vpow2.f32 %v1604_v53 }
 0x5a8   : > { %v6647_v54 = vpop.eup %6646 }
 0x5a9   : > { %v1610_v55 = vsel %vm1230_vm1, %v6647_v54, 0.0 }
 0x5aa   : > { %1611 = vadd.xlane.f32.xlu0 %v1610_v55 }
 0x5ac   : > { %v6649_v56 = vpop.eup %6648  ;;  %v1594_v59 = vpop.xlane.xlu0 %1593 }
 0x5ad   : > { %v1600_v60 = vsub.f32 %v1579_v39, %v1594_v59  ;;  %v1613_v61 = vsel %vm1230_vm1, %v6649_v56, 0.0 }
 0x5ae   : > { %1614 = vadd.xlane.f32.xlu1 %v1613_v61 }
 0x5af   : > { %v1606_v63 = vmul.f32 1.442695, %v1600_v60 }
 0x5b0   : > { %v1597_v2 = vpop.xlane.xlu0 %1596 }
 0x5b1   : > { %6650 = vpow2.f32 %v1606_v63  ;;  %v1601_v3 = vsub.f32 %v1582_v42, %v1597_v2 }
 0x5b3   : > { %v1608_v4 = vmul.f32 1.442695, %v1601_v3 }
 0x5b5   : > { %6652 = vpow2.f32 %v1608_v4 }
 0x5be   : > { %v6651_v0 = vpop.eup %6650 }
 0x5bf   : > { %1681 = vrot.lane.b32.xlu1 %v7886_v50, %s7321_s16  ;;  %v1616_v1 = vsel %vm1230_vm1, %v6651_v0, 0.0 }
 0x5c0   : > { %1617 = vadd.xlane.f32.xlu0 %v1616_v1 }
 0x5c2   : > { %v6653_v5 = vpop.eup %6652 }
 0x5c3   : > { %1759 = vrot.lane.b32.xlu1 %v7838_v47, %s7322_s28  ;;  %v1619_v6 = vsel %vm1230_vm1, %v6653_v5, 0.0 }
 0x5d6   : > { %1633 = vrot.lane.b32.xlu0 %v7888_v52, %s7321_s16 }
 0x5da   : > { %1757 = vrot.lane.b32.xlu0 %v7846_v57, %s7322_s28 }
 0x5e7   : > { %1620 = vadd.xlane.f32.xlu1 %v1619_v6 }
 0x5f8   : > { %1810 = vrot.lane.b32.xlu1 %v7848_v58, %s7322_s28 }
 0x5fc   : > { %1808 = vrot.lane.b32.xlu1 %v7857_v62, %s7322_s28 }
 0x633   : > { %v1612_v8 = vpop.xlane.xlu0 %1611 }
 0x637   : > { %v1615_v7 = vpop.xlane.xlu1 %1614 }
 0x638   : > { %6654 = vrcp.f32 %v1615_v7 }
 0x639   : > { %6656 = vrcp.f32 %v1612_v8 }
 0x63b   : > { %v1682_v9 = vpop.permute.xlu1 %1681 }
 0x63c   : > { %6095 = vmatpush3.bf16.msra.mxu0 %v1682_v9 }
 0x63d   : > { %6106 = vmatprep.subr.bf16.mxu0 %v7319_v33 }
 0x63f   : > { %v1760_v17 = vpop.permute.xlu1 %1759 }
 0x640   : > { %v1765_v19 = vsel %vm1230_vm1, %v1760_v17, 0 }
 0x645   : > { %v6655_v10 = vpop.eup %6654 }
 0x646   : > { %v6657_v13 = vpop.eup %6656  ;;  %v1627_v14 = vmul.f32 %v6655_v10, %v6649_v56 }
 0x647   : > { %v1626_v16 = vmul.f32 %v6657_v13, %v6647_v54 }
 0x649   : > { %v1618_v11 = vpop.xlane.xlu0 %1617  ;;  %v1630_v18 = vpack.c.bf16 %v1627_v14, %v1626_v16 }
 0x64a   : > { %6658 = vrcp.f32 %v1618_v11 }
 0x64d   : > { %v1634_v15 = vpop.permute.xlu0 %1633 }
 0x64e   : > { %6089 = vmatpush3.bf16.msra.mxu1 %v1634_v15 }
 0x64f   : > { %6100 = vmatprep.subr.bf16.mxu1 %v7319_v33 }
 0x651   : > { %6091 = vmatmul.mubr.msk.bf16.vlgmr.msra.gmra.mxu1 %vm1230_vm1, %v1630_v18  ;;  %v1758_v20 = vpop.permute.xlu0 %1757 }
 0x652   : > { %6101 = vmatpush3.bf16.xpose.msra.mxu1 %v1765_v19  ;;  %6102 = vmatprep.mubr.msk.bf16.mxu1 %vm7320_vm0, %v7319_v33 }
 0x653   : > { %6112 = vmatprep.subr.bf16.mxu1 %v7319_v33 }
 0x657   : > { %v6659_v22 = vpop.eup %6658 }
 0x658   : > { %v1628_v24 = vmul.f32 %v6659_v22, %v6651_v0 }
 0x659   : > { %6103 = vmatmul.mubr.msk.bf16.vlgmr.msra.gmra.mxu1 %vm1230_vm1, %v1758_v20 }
 0x65a   : > { %6114 = vmatprep.mubr.msk.bf16.mxu1 %vm7320_vm0, %v7319_v33 }
 0x670   : > { %v1621_v21 = vpop.xlane.xlu1 %1620 }
 0x671   : > { %6660 = vrcp.f32 %v1621_v21 }
 0x674   : > { %v1811_v26 = vpop.permute.xlu1 %1810 }
 0x675   : > { %v1816_v28 = vsel %vm1230_vm1, %v1811_v26, 0 }
 0x678   : > { %v1809_v29 = vpop.permute.xlu1 %1808 }
 0x67e   : > { %v6661_v23 = vpop.eup %6660 }
 0x67f   : > { %v1629_v25 = vmul.f32 %v6661_v23, %v6653_v5 }
 0x681   : > { %v1631_v27 = vpack.c.bf16 %v1629_v25, %v1628_v24 }
 0x683   : > { %6097 = vmatmul.mubr.msk.bf16.vlgmr.msra.gmra.mxu0 %vm1230_vm1, %v1631_v27 }
 0x684   : > { %6107 = vmatpush3.bf16.xpose.msra.mxu0 %v1816_v28  ;;  %6108 = vmatprep.mubr.msk.bf16.mxu0 %vm7320_vm0, %v7319_v33 }
 0x685   : > { %6118 = vmatprep.subr.bf16.mxu0 %v7319_v33 }
 0x68b   : > { %6109 = vmatmul.mubr.msk.bf16.vlgmr.msra.gmra.mxu0 %vm1230_vm1, %v1809_v29 }
 0x68c   : > { %6120 = vmatprep.mubr.msk.bf16.mxu0 %vm7320_vm0, %v7319_v33 }
 0x711   : > { %v7959_v30 = vpop.f32.mrf.mxu1 }
 0x713   : > { %v6092_v31 = vpop.f32.mrf.mxu1 }
 0x715   : > { %v7961_v32 = vpop.f32.mrf.mxu1 }
 0x717   : > { %v6093_v34 = vpop.f32.mrf.mxu1 }
 0x719   : > { %v1801_v37 = vpop.f32.mrf.mxu1 }
 0x71a   : > { %v1859_v39 = vsel %vm1230_vm1, %v1801_v37, -inf }
 0x71b   : > { %1860 = vmax.xlane.f32.xlu0 %v1859_v39  ;;  %v6104_v40 = vpop.f32.mrf.mxu1 }
 0x71d   : > { %v1804_v41 = vpop.f32.mrf.mxu1 }
 0x71e   : > { %v1862_v42 = vsel %vm1230_vm1, %v1804_v41, -inf }
 0x71f   : > { %1863 = vmax.xlane.f32.xlu1 %v1862_v42  ;;  %v6105_v44 = vpop.f32.mrf.mxu1 }
 0x743   : > { %v7965_v45 = vpop.f32.mrf.mxu0 }
 0x745   : > { %v6098_v46 = vpop.f32.mrf.mxu0 }
 0x747   : > { %v7967_v48 = vpop.f32.mrf.mxu0 }
 0x749   : > { %v6099_v49 = vpop.f32.mrf.mxu0 }
 0x74b   : > { %v1852_v51 = vpop.f32.mrf.mxu0 }
 0x74c   : > { %v1865_v38 = vsel %vm1230_vm1, %v1852_v51, -inf }
 0x74d   : > { %1866 = vmax.xlane.f32.xlu0 %v1865_v38  ;;  %v6110_v53 = vpop.f32.mrf.mxu0 }
 0x74f   : > { %v1855_v54 = vpop.f32.mrf.mxu0 }
 0x750   : > { %v1868_v55 = vsel %vm1230_vm1, %v1855_v54, -inf }
 0x751   : > { %1869 = vmax.xlane.f32.xlu0 %v1868_v55  ;;  %v6111_v56 = vpop.f32.mrf.mxu0 }
 0x7a4   : > { %v1861_v59 = vpop.xlane.xlu0 %1860 }
 0x7a5   : > { %v1871_v60 = vsub.f32 %v1801_v37, %v1861_v59 }
 0x7a7   : > { %v1875_v61 = vmul.f32 1.442695, %v1871_v60 }
 0x7a8   : > { %v1864_v63 = vpop.xlane.xlu1 %1863 }
 0x7a9   : > { %6662 = vpow2.f32 %v1875_v61  ;;  %v1872_v0 = vsub.f32 %v1804_v41, %v1864_v63 }
 0x7ab   : > { %v1877_v1 = vmul.f32 1.442695, %v1872_v0 }
 0x7ad   : > { %6664 = vpow2.f32 %v1877_v1 }
 0x7b6   : > { %v6663_v2 = vpop.eup %6662 }
 0x7b7   : > { %v1883_v3 = vsel %vm1230_vm1, %v6663_v2, 0.0 }
 0x7b8   : > { %1884 = vadd.xlane.f32.xlu0 %v1883_v3 }
 0x7ba   : > { %v6665_v4 = vpop.eup %6664 }
 0x7bb   : > { %v1886_v5 = vsel %vm1230_vm1, %v6665_v4, 0.0 }
 0x7bc   : > { %1887 = vadd.xlane.f32.xlu1 %v1886_v5 }
 0x7cd   : > { %1952 = vrot.lane.b32.xlu1 %v7886_v50, %s7322_s28 }
 0x7d1   : > { %2030 = vrot.lane.b32.xlu1 %v7838_v47, %s7323_s17 }
 0x7d6   : > { %v1867_v6 = vpop.xlane.xlu0 %1866 }
 0x7d7   : > { %v1873_v7 = vsub.f32 %v1852_v51, %v1867_v6 }
 0x7d9   : > { %v1879_v8 = vmul.f32 1.442695, %v1873_v7 }
 0x7da   : > { %v1870_v9 = vpop.xlane.xlu0 %1869 }
 0x7db   : > { %6666 = vpow2.f32 %v1879_v8  ;;  %v1874_v10 = vsub.f32 %v1855_v54, %v1870_v9 }
 0x7dd   : > { %v1881_v11 = vmul.f32 1.442695, %v1874_v10 }
 0x7df   : > { %6668 = vpow2.f32 %v1881_v11 }
 0x7e8   : > { %v6667_v13 = vpop.eup %6666 }
 0x7e9   : > { %v1889_v14 = vsel %vm1230_vm1, %v6667_v13, 0.0 }
 0x7ea   : > { %1890 = vadd.xlane.f32.xlu0 %v1889_v14 }
 0x7ec   : > { %v6669_v15 = vpop.eup %6668 }
 0x7ed   : > { %v1892_v16 = vsel %vm1230_vm1, %v6669_v15, 0.0 }
 0x7f5   : > { %1893 = vadd.xlane.f32.xlu1 %v1892_v16 }
 0x800   : > { %1905 = vrot.lane.b32.xlu0 %v7888_v52, %s7322_s28 }
 0x804   : > { %2028 = vrot.lane.b32.xlu0 %v7846_v57, %s7323_s17 }
 0x806   : > { %2081 = vrot.lane.b32.xlu1 %v7848_v58, %s7323_s17 }
 0x80a   : > { %2079 = vrot.lane.b32.xlu1 %v7857_v62, %s7323_s17 }
 0x841   : > { %v1885_v19 = vpop.xlane.xlu0 %1884 }
 0x845   : > { %v1888_v17 = vpop.xlane.xlu1 %1887 }
 0x846   : > { %6670 = vrcp.f32 %v1888_v17 }
 0x847   : > { %6672 = vrcp.f32 %v1885_v19 }
 0x849   : > { %v1953_v18 = vpop.permute.xlu1 %1952 }
 0x84a   : > { %6119 = vmatpush3.bf16.msra.mxu0 %v1953_v18 }
 0x84b   : > { %6130 = vmatprep.subr.bf16.mxu0 %v7319_v33 }
 0x84d   : > { %v2031_v26 = vpop.permute.xlu1 %2030 }
 0x84e   : > { %v2036_v28 = vsel %vm1230_vm1, %v2031_v26, 0 }
 0x853   : > { %v6671_v20 = vpop.eup %6670 }
 0x854   : > { %v6673_v22 = vpop.eup %6672  ;;  %v1900_v23 = vmul.f32 %v6671_v20, %v6665_v4 }
 0x855   : > { %v1899_v25 = vmul.f32 %v6673_v22, %v6663_v2 }
 0x857   : > { %v1903_v27 = vpack.c.bf16 %v1900_v23, %v1899_v25 }
 0x873   : > { %v1891_v21 = vpop.xlane.xlu0 %1890 }
 0x874   : > { %6674 = vrcp.f32 %v1891_v21 }
 0x877   : > { %v1906_v24 = vpop.permute.xlu0 %1905 }
 0x878   : > { %6113 = vmatpush3.bf16.msra.mxu1 %v1906_v24 }
 0x879   : > { %6124 = vmatprep.subr.bf16.mxu1 %v7319_v33 }
 0x87b   : > { %6115 = vmatmul.mubr.msk.bf16.vlgmr.msra.gmra.mxu1 %vm1230_vm1, %v1903_v27  ;;  %v2029_v31 = vpop.permute.xlu0 %2028 }
 0x87c   : > { %6125 = vmatpush3.bf16.xpose.msra.mxu1 %v2036_v28  ;;  %6126 = vmatprep.mubr.msk.bf16.mxu1 %vm7320_vm0, %v7319_v33 }
 0x87d   : > { %6136 = vmatprep.subr.bf16.mxu1 %v7319_v33 }
 0x87e   : > { %v1894_v29 = vpop.xlane.xlu1 %1893 }
 0x87f   : > { %6676 = vrcp.f32 %v1894_v29 }
 0x881   : > { %v6675_v34 = vpop.eup %6674 }
 0x882   : > { %v1901_v39 = vmul.f32 %v6675_v34, %v6667_v13  ;;  %v2082_v41 = vpop.permute.xlu1 %2081 }
 0x883   : > { %6127 = vmatmul.mubr.msk.bf16.vlgmr.msra.gmra.mxu1 %vm1230_vm1, %v2029_v31  ;;  %v2087_v44 = vsel %vm1230_vm1, %v2082_v41, 0 }
 0x884   : > { %6138 = vmatprep.mubr.msk.bf16.mxu1 %vm7320_vm0, %v7319_v33 }
 0x886   : > { %v2080_v46 = vpop.permute.xlu1 %2079 }
 0x88c   : > { %v6677_v37 = vpop.eup %6676 }
 0x88d   : > { %v1902_v40 = vmul.f32 %v6677_v37, %v6669_v15 }
 0x88f   : > { %v1904_v42 = vpack.c.bf16 %v1902_v40, %v1901_v39 }
 0x891   : > { %6121 = vmatmul.mubr.msk.bf16.vlgmr.msra.gmra.mxu0 %vm1230_vm1, %v1904_v42 }
 0x892   : > { %6131 = vmatpush3.bf16.xpose.msra.mxu0 %v2087_v44  ;;  %6132 = vmatprep.mubr.msk.bf16.mxu0 %vm7320_vm0, %v7319_v33 }
 0x893   : > { %6142 = vmatprep.subr.bf16.mxu0 %v7319_v33 }
 0x899   : > { %6133 = vmatmul.mubr.msk.bf16.vlgmr.msra.gmra.mxu0 %vm1230_vm1, %v2080_v46 }
 0x89a   : > { %6144 = vmatprep.mubr.msk.bf16.mxu0 %vm7320_vm0, %v7319_v33 }
 0x93b   : > { %v8005_v49 = vpop.f32.mrf.mxu1 }
 0x93d   : > { %v6116_v51 = vpop.f32.mrf.mxu1 }
 0x93f   : > { %v8007_v38 = vpop.f32.mrf.mxu1 }
 0x941   : > { %v6117_v53 = vpop.f32.mrf.mxu1 }
 0x943   : > { %v2072_v54 = vpop.f32.mrf.mxu1 }
 0x944   : > { %v2130_v55 = vsel %vm1230_vm1, %v2072_v54, -inf }
 0x945   : > { %2131 = vmax.xlane.f32.xlu0 %v2130_v55  ;;  %v6128_v56 = vpop.f32.mrf.mxu1 }
 0x947   : > { %v2075_v59 = vpop.f32.mrf.mxu1 }
 0x948   : > { %v2133_v60 = vsel %vm1230_vm1, %v2075_v59, -inf }
 0x949   : > { %2134 = vmax.xlane.f32.xlu1 %v2133_v60  ;;  %v6129_v61 = vpop.f32.mrf.mxu1 }
 0x951   : > { %v8011_v63 = vpop.f32.mrf.mxu0 }
 0x953   : > { %v6122_v0 = vpop.f32.mrf.mxu0 }
 0x955   : > { %v8013_v1 = vpop.f32.mrf.mxu0 }
 0x957   : > { %v6123_v2 = vpop.f32.mrf.mxu0 }
 0x959   : > { %v2123_v3 = vpop.f32.mrf.mxu0 }
 0x95a   : > { %v2136_v4 = vsel %vm1230_vm1, %v2123_v3, -inf }
 0x95b   : > { %2137 = vmax.xlane.f32.xlu0 %v2136_v4  ;;  %v6134_v5 = vpop.f32.mrf.mxu0 }
 0x95d   : > { %v2126_v6 = vpop.f32.mrf.mxu0 }
 0x95e   : > { %v2139_v7 = vsel %vm1230_vm1, %v2126_v6, -inf }
 0x95f   : > { %2140 = vmax.xlane.f32.xlu0 %v2139_v7  ;;  %v6135_v8 = vpop.f32.mrf.mxu0 }
 0x9ce   : > { %v2132_v9 = vpop.xlane.xlu0 %2131 }
 0x9cf   : > { %v2142_v10 = vsub.f32 %v2072_v54, %v2132_v9 }
 0x9d1   : > { %v2146_v11 = vmul.f32 1.442695, %v2142_v10 }
 0x9d2   : > { %v2135_v13 = vpop.xlane.xlu1 %2134 }
 0x9d3   : > { %6678 = vpow2.f32 %v2146_v11  ;;  %v2143_v14 = vsub.f32 %v2075_v59, %v2135_v13 }
 0x9d5   : > { %v2148_v15 = vmul.f32 1.442695, %v2143_v14 }
 0x9d7   : > { %6680 = vpow2.f32 %v2148_v15 }
 0x9e0   : > { %v6679_v16 = vpop.eup %6678 }
 0x9e1   : > { %v2154_v17 = vsel %vm1230_vm1, %v6679_v16, 0.0 }
 0x9e2   : > { %2155 = vadd.xlane.f32.xlu0 %v2154_v17 }
 0x9e4   : > { %v6681_v18 = vpop.eup %6680  ;;  %v2138_v19 = vpop.xlane.xlu0 %2137 }
 0x9e5   : > { %v2144_v20 = vsub.f32 %v2123_v3, %v2138_v19  ;;  %v2157_v21 = vsel %vm1230_vm1, %v6681_v18, 0.0 }
 0x9e6   : > { %2158 = vadd.xlane.f32.xlu1 %v2157_v21 }
 0x9e7   : > { %v2150_v22 = vmul.f32 1.442695, %v2144_v20 }
 0x9e8   : > { %v2141_v25 = vpop.xlane.xlu0 %2140 }
 0x9e9   : > { %6682 = vpow2.f32 %v2150_v22  ;;  %v2145_v26 = vsub.f32 %v2126_v6, %v2141_v25 }
 0x9eb   : > { %v2152_v27 = vmul.f32 1.442695, %v2145_v26 }
 0x9ed   : > { %6684 = vpow2.f32 %v2152_v27 }
 0x9f6   : > { %v6683_v23 = vpop.eup %6682 }
 0x9f7   : > { %2223 = vrot.lane.b32.xlu1 %v7886_v50, %s7323_s17  ;;  %v2160_v24 = vsel %vm1230_vm1, %v6683_v23, 0.0 }
 0x9f8   : > { %2161 = vadd.xlane.f32.xlu0 %v2160_v24 }
 0x9fa   : > { %v6685_v28 = vpop.eup %6684 }
 0x9fb   : > { %2301 = vrot.lane.b32.xlu1 %v7838_v47, %s7324_s14  ;;  %v2163_v29 = vsel %vm1230_vm1, %v6685_v28, 0.0 }
 0xa0e   : > { %2176 = vrot.lane.b32.xlu0 %v7888_v52, %s7323_s17 }
 0xa12   : > { %2299 = vrot.lane.b32.xlu0 %v7846_v57, %s7324_s14 }
 0xa1f   : > { %2164 = vadd.xlane.f32.xlu1 %v2163_v29 }
 0xa30   : > { %2352 = vrot.lane.b32.xlu1 %v7848_v58, %s7324_s14 }
 0xa34   : > { %2350 = vrot.lane.b32.xlu1 %v7857_v62, %s7324_s14 }
 0xa6b   : > { %v2156_v34 = vpop.xlane.xlu0 %2155 }
 0xa6f   : > { %v2159_v31 = vpop.xlane.xlu1 %2158 }
 0xa70   : > { %6686 = vrcp.f32 %v2159_v31 }
 0xa71   : > { %6688 = vrcp.f32 %v2156_v34 }
 0xa73   : > { %v2224_v37 = vpop.permute.xlu1 %2223 }
 0xa74   : > { %6143 = vmatpush3.bf16.msra.mxu0 %v2224_v37 }
 0xa75   : > { %6154 = vmatprep.subr.bf16.mxu0 %v7319_v33 }
 0xa77   : > { %v2302_v51 = vpop.permute.xlu1 %2301 }
 0xa78   : > { %v2307_v54 = vsel %vm1230_vm1, %v2302_v51, 0 }
 0xa7d   : > { %v6687_v39 = vpop.eup %6686 }
 0xa7e   : > { %v6689_v41 = vpop.eup %6688  ;;  %v2171_v42 = vmul.f32 %v6687_v39, %v6681_v18 }
 0xa7f   : > { %v2170_v46 = vmul.f32 %v6689_v41, %v6679_v16 }
 0xa81   : > { %v2162_v40 = vpop.xlane.xlu0 %2161  ;;  %v2174_v53 = vpack.c.bf16 %v2171_v42, %v2170_v46 }
 0xa82   : > { %6690 = vrcp.f32 %v2162_v40 }
 0xa85   : > { %v2177_v44 = vpop.permute.xlu0 %2176 }
 0xa86   : > { %6137 = vmatpush3.bf16.msra.mxu1 %v2177_v44 }
 0xa87   : > { %6148 = vmatprep.subr.bf16.mxu1 %v7319_v33 }
 0xa89   : > { %6139 = vmatmul.mubr.msk.bf16.vlgmr.msra.gmra.mxu1 %vm1230_vm1, %v2174_v53  ;;  %v2300_v55 = vpop.permute.xlu0 %2299 }
 0xa8a   : > { %6149 = vmatpush3.bf16.xpose.msra.mxu1 %v2307_v54  ;;  %6150 = vmatprep.mubr.msk.bf16.mxu1 %vm7320_vm0, %v7319_v33 }
 0xa8b   : > { %6160 = vmatprep.subr.bf16.mxu1 %v7319_v33 }
 0xa8f   : > { %v6691_v59 = vpop.eup %6690 }
 0xa90   : > { %v2172_v61 = vmul.f32 %v6691_v59, %v6683_v23 }
 0xa91   : > { %6151 = vmatmul.mubr.msk.bf16.vlgmr.msra.gmra.mxu1 %vm1230_vm1, %v2300_v55 }
 0xa92   : > { %6162 = vmatprep.mubr.msk.bf16.mxu1 %vm7320_vm0, %v7319_v33 }
 0xaa8   : > { %v2165_v56 = vpop.xlane.xlu1 %2164 }
 0xaa9   : > { %6692 = vrcp.f32 %v2165_v56 }
 0xaac   : > { %v2353_v2 = vpop.permute.xlu1 %2352 }
 0xaad   : > { %v2358_v4 = vsel %vm1230_vm1, %v2353_v2, 0 }
 0xab0   : > { %v2351_v5 = vpop.permute.xlu1 %2350 }
 0xab6   : > { %v6693_v60 = vpop.eup %6692 }
 0xab7   : > { %v2173_v0 = vmul.f32 %v6693_v60, %v6685_v28 }
 0xab9   : > { %v2175_v3 = vpack.c.bf16 %v2173_v0, %v2172_v61 }
 0xabb   : > { %6145 = vmatmul.mubr.msk.bf16.vlgmr.msra.gmra.mxu0 %vm1230_vm1, %v2175_v3 }
 0xabc   : > { %6155 = vmatpush3.bf16.xpose.msra.mxu0 %v2358_v4  ;;  %6156 = vmatprep.mubr.msk.bf16.mxu0 %vm7320_vm0, %v7319_v33 }
 0xabd   : > { %6166 = vmatprep.subr.bf16.mxu0 %v7319_v33 }
 0xac3   : > { %6157 = vmatmul.mubr.msk.bf16.vlgmr.msra.gmra.mxu0 %vm1230_vm1, %v2351_v5 }
 0xac4   : > { %6168 = vmatprep.mubr.msk.bf16.mxu0 %vm7320_vm0, %v7319_v33 }
 0xb49   : > { %v8051_v6 = vpop.f32.mrf.mxu1 }
 0xb4b   : > { %v6140_v7 = vpop.f32.mrf.mxu1 }
 0xb4d   : > { %v8053_v8 = vpop.f32.mrf.mxu1 }
 0xb4f   : > { %v6141_v9 = vpop.f32.mrf.mxu1 }
 0xb51   : > { %v2343_v10 = vpop.f32.mrf.mxu1 }
 0xb52   : > { %v2401_v11 = vsel %vm1230_vm1, %v2343_v10, -inf }
 0xb53   : > { %2402 = vmax.xlane.f32.xlu0 %v2401_v11  ;;  %v6152_v13 = vpop.f32.mrf.mxu1 }
 0xb55   : > { %v2346_v14 = vpop.f32.mrf.mxu1 }
 0xb56   : > { %v2404_v15 = vsel %vm1230_vm1, %v2346_v14, -inf }
 0xb57   : > { %2405 = vmax.xlane.f32.xlu1 %v2404_v15  ;;  %v6153_v16 = vpop.f32.mrf.mxu1 }
 0xb7b   : > { %v8057_v17 = vpop.f32.mrf.mxu0 }
 0xb7d   : > { %v6146_v18 = vpop.f32.mrf.mxu0 }
 0xb7f   : > { %v8059_v19 = vpop.f32.mrf.mxu0 }
 0xb81   : > { %v6147_v20 = vpop.f32.mrf.mxu0 }
 0xb83   : > { %v2394_v21 = vpop.f32.mrf.mxu0 }
 0xb84   : > { %v2407_v22 = vsel %vm1230_vm1, %v2394_v21, -inf }
 0xb85   : > { %2408 = vmax.xlane.f32.xlu0 %v2407_v22  ;;  %v6158_v23 = vpop.f32.mrf.mxu0 }
 0xb87   : > { %v2397_v24 = vpop.f32.mrf.mxu0 }
 0xb88   : > { %v2410_v25 = vsel %vm1230_vm1, %v2397_v24, -inf }
 0xb89   : > { %2411 = vmax.xlane.f32.xlu0 %v2410_v25  ;;  %v6159_v26 = vpop.f32.mrf.mxu0 }
 0xbdc   : > { %v2403_v27 = vpop.xlane.xlu0 %2402 }
 0xbdd   : > { %v2413_v28 = vsub.f32 %v2343_v10, %v2403_v27 }
 0xbdf   : > { %v2417_v29 = vmul.f32 1.442695, %v2413_v28 }
 0xbe0   : > { %v2406_v31 = vpop.xlane.xlu1 %2405 }
 0xbe1   : > { %6694 = vpow2.f32 %v2417_v29  ;;  %v2414_v34 = vsub.f32 %v2346_v14, %v2406_v31 }
 0xbe3   : > { %v2419_v37 = vmul.f32 1.442695, %v2414_v34 }
 0xbe5   : > { %6696 = vpow2.f32 %v2419_v37 }
 0xbee   : > { %v6695_v39 = vpop.eup %6694 }
 0xbef   : > { %v2425_v40 = vsel %vm1230_vm1, %v6695_v39, 0.0 }
 0xbf0   : > { %2426 = vadd.xlane.f32.xlu0 %v2425_v40 }
 0xbf2   : > { %v6697_v41 = vpop.eup %6696 }
 0xbf3   : > { %v2428_v42 = vsel %vm1230_vm1, %v6697_v41, 0.0 }
 0xbf4   : > { %2429 = vadd.xlane.f32.xlu1 %v2428_v42 }
 0xc05   : > { %2494 = vrot.lane.b32.xlu1 %v7886_v50, %s7324_s14 }
 0xc09   : > { %2572 = vrot.lane.b32.xlu1 %v7838_v47, %s7325_s2 }
 0xc0e   : > { %v2409_v44 = vpop.xlane.xlu0 %2408 }
 0xc0f   : > { %v2415_v46 = vsub.f32 %v2394_v21, %v2409_v44 }
 0xc11   : > { %v2421_v51 = vmul.f32 1.442695, %v2415_v46 }
 0xc12   : > { %v2412_v53 = vpop.xlane.xlu0 %2411 }
 0xc13   : > { %6698 = vpow2.f32 %v2421_v51  ;;  %v2416_v54 = vsub.f32 %v2397_v24, %v2412_v53 }
 0xc15   : > { %v2423_v55 = vmul.f32 1.442695, %v2416_v54 }
 0xc17   : > { %6700 = vpow2.f32 %v2423_v55 }
 0xc20   : > { %v6699_v56 = vpop.eup %6698 }
 0xc21   : > { %v2431_v59 = vsel %vm1230_vm1, %v6699_v56, 0.0 }
 0xc22   : > { %2432 = vadd.xlane.f32.xlu0 %v2431_v59 }
 0xc24   : > { %v6701_v60 = vpop.eup %6700 }
 0xc25   : > { %v2434_v61 = vsel %vm1230_vm1, %v6701_v60, 0.0 }
 0xc2d   : > { %2435 = vadd.xlane.f32.xlu1 %v2434_v61 }
 0xc38   : > { %2447 = vrot.lane.b32.xlu0 %v7888_v52, %s7324_s14 }
 0xc3c   : > { %2570 = vrot.lane.b32.xlu0 %v7846_v57, %s7325_s2 }
 0xc3e   : > { %2623 = vrot.lane.b32.xlu1 %v7848_v58, %s7325_s2 }
 0xc42   : > { %2621 = vrot.lane.b32.xlu1 %v7857_v62, %s7325_s2 }
 0xc79   : > { %v2427_v3 = vpop.xlane.xlu0 %2426 }
 0xc7d   : > { %v2430_v0 = vpop.xlane.xlu1 %2429 }
 0xc7e   : > { %6702 = vrcp.f32 %v2430_v0 }
 0xc7f   : > { %6704 = vrcp.f32 %v2427_v3 }
 0xc81   : > { %v2495_v2 = vpop.permute.xlu1 %2494 }
 0xc82   : > { %6167 = vmatpush3.bf16.msra.mxu0 %v2495_v2 }
 0xc83   : > { %6178 = vmatprep.subr.bf16.mxu0 %v7319_v33 }
 0xc85   : > { %v2573_v13 = vpop.permute.xlu1 %2572 }
 0xc86   : > { %v2578_v15 = vsel %vm1230_vm1, %v2573_v13, 0 }
 0xc8b   : > { %v6703_v4 = vpop.eup %6702 }
 0xc8c   : > { %v6705_v7 = vpop.eup %6704  ;;  %v2442_v9 = vmul.f32 %v6703_v4, %v6697_v41 }
 0xc8d   : > { %v2441_v11 = vmul.f32 %v6705_v7, %v6695_v39 }
 0xc8f   : > { %v2445_v14 = vpack.c.bf16 %v2442_v9, %v2441_v11 }
 0xcab   : > { %v2433_v5 = vpop.xlane.xlu0 %2432 }
 0xcac   : > { %6706 = vrcp.f32 %v2433_v5 }
 0xcaf   : > { %v2448_v10 = vpop.permute.xlu0 %2447 }
 0xcb0   : > { %6161 = vmatpush3.bf16.msra.mxu1 %v2448_v10 }
 0xcb1   : > { %6172 = vmatprep.subr.bf16.mxu1 %v7319_v33 }
 0xcb3   : > { %6163 = vmatmul.mubr.msk.bf16.vlgmr.msra.gmra.mxu1 %vm1230_vm1, %v2445_v14  ;;  %v2571_v18 = vpop.permute.xlu0 %2570 }
 0xcb4   : > { %6173 = vmatpush3.bf16.xpose.msra.mxu1 %v2578_v15  ;;  %6174 = vmatprep.mubr.msk.bf16.mxu1 %vm7320_vm0, %v7319_v33 }
 0xcb5   : > { %6184 = vmatprep.subr.bf16.mxu1 %v7319_v33 }
 0xcb6   : > { %v2436_v16 = vpop.xlane.xlu1 %2435 }
 0xcb7   : > { %6708 = vrcp.f32 %v2436_v16 }
 0xcb9   : > { %v6707_v20 = vpop.eup %6706 }
 0xcba   : > { %v2443_v22 = vmul.f32 %v6707_v20, %v6699_v56  ;;  %v2624_v24 = vpop.permute.xlu1 %2623 }
 0xcbb   : > { %6175 = vmatmul.mubr.msk.bf16.vlgmr.msra.gmra.mxu1 %vm1230_vm1, %v2571_v18  ;;  %v2629_v26 = vsel %vm1230_vm1, %v2624_v24, 0 }
 0xcbc   : > { %6186 = vmatprep.mubr.msk.bf16.mxu1 %vm7320_vm0, %v7319_v33 }
 0xcbe   : > { %v2622_v27 = vpop.permute.xlu1 %2621 }
 0xcc4   : > { %v6709_v21 = vpop.eup %6708 }
 0xcc5   : > { %v2444_v23 = vmul.f32 %v6709_v21, %v6701_v60 }
 0xcc7   : > { %v2446_v25 = vpack.c.bf16 %v2444_v23, %v2443_v22 }
 0xcc9   : > { %6169 = vmatmul.mubr.msk.bf16.vlgmr.msra.gmra.mxu0 %vm1230_vm1, %v2446_v25 }
 0xcca   : > { %6179 = vmatpush3.bf16.xpose.msra.mxu0 %v2629_v26  ;;  %6180 = vmatprep.mubr.msk.bf16.mxu0 %vm7320_vm0, %v7319_v33 }
 0xccb   : > { %6190 = vmatprep.subr.bf16.mxu0 %v7319_v33 }
 0xcd1   : > { %6181 = vmatmul.mubr.msk.bf16.vlgmr.msra.gmra.mxu0 %vm1230_vm1, %v2622_v27 }
 0xcd2   : > { %6192 = vmatprep.mubr.msk.bf16.mxu0 %vm7320_vm0, %v7319_v33 }
 0xd73   : > { %v8097_v28 = vpop.f32.mrf.mxu1 }
 0xd75   : > { %v6164_v29 = vpop.f32.mrf.mxu1 }
 0xd77   : > { %v8099_v31 = vpop.f32.mrf.mxu1 }
 0xd79   : > { %v6165_v34 = vpop.f32.mrf.mxu1 }
 0xd7b   : > { %v2614_v37 = vpop.f32.mrf.mxu1 }
 0xd7c   : > { %v2672_v39 = vsel %vm1230_vm1, %v2614_v37, -inf }
 0xd7d   : > { %2673 = vmax.xlane.f32.xlu0 %v2672_v39  ;;  %v6176_v40 = vpop.f32.mrf.mxu1 }
 0xd7f   : > { %v2617_v41 = vpop.f32.mrf.mxu1 }
 0xd80   : > { %v2675_v42 = vsel %vm1230_vm1, %v2617_v41, -inf }
 0xd81   : > { %2676 = vmax.xlane.f32.xlu1 %v2675_v42  ;;  %v6177_v44 = vpop.f32.mrf.mxu1 }
 0xd89   : > { %v8103_v46 = vpop.f32.mrf.mxu0 }
 0xd8b   : > { %v6170_v51 = vpop.f32.mrf.mxu0 }
 0xd8d   : > { %v8105_v53 = vpop.f32.mrf.mxu0 }
 0xd8f   : > { %v6171_v54 = vpop.f32.mrf.mxu0 }
 0xd91   : > { %v2665_v55 = vpop.f32.mrf.mxu0 }
 0xd92   : > { %v2678_v56 = vsel %vm1230_vm1, %v2665_v55, -inf }
 0xd93   : > { %2679 = vmax.xlane.f32.xlu0 %v2678_v56  ;;  %v6182_v59 = vpop.f32.mrf.mxu0 }
 0xd95   : > { %v2668_v60 = vpop.f32.mrf.mxu0 }
 0xd96   : > { %v2681_v61 = vsel %vm1230_vm1, %v2668_v60, -inf }
 0xd97   : > { %2682 = vmax.xlane.f32.xlu0 %v2681_v61  ;;  %v6183_v0 = vpop.f32.mrf.mxu0 }
 0xe06   : > { %v2674_v2 = vpop.xlane.xlu0 %2673 }
 0xe07   : > { %v2684_v3 = vsub.f32 %v2614_v37, %v2674_v2 }
 0xe09   : > { %v2688_v4 = vmul.f32 1.442695, %v2684_v3 }
 0xe0a   : > { %v2677_v5 = vpop.xlane.xlu1 %2676 }
 0xe0b   : > { %6710 = vpow2.f32 %v2688_v4  ;;  %v2685_v7 = vsub.f32 %v2617_v41, %v2677_v5 }
 0xe0d   : > { %v2690_v9 = vmul.f32 1.442695, %v2685_v7 }
 0xe0f   : > { %6712 = vpow2.f32 %v2690_v9 }
 0xe18   : > { %v6711_v10 = vpop.eup %6710 }
 0xe19   : > { %v2696_v11 = vsel %vm1230_vm1, %v6711_v10, 0.0 }
 0xe1a   : > { %2697 = vadd.xlane.f32.xlu0 %v2696_v11 }
 0xe1c   : > { %v6713_v13 = vpop.eup %6712  ;;  %v2680_v14 = vpop.xlane.xlu0 %2679 }
 0xe1d   : > { %v2686_v15 = vsub.f32 %v2665_v55, %v2680_v14  ;;  %v2699_v16 = vsel %vm1230_vm1, %v6713_v13, 0.0 }
 0xe1e   : > { %2700 = vadd.xlane.f32.xlu1 %v2699_v16 }
 0xe1f   : > { %v2692_v18 = vmul.f32 1.442695, %v2686_v15 }
 0xe20   : > { %v2683_v22 = vpop.xlane.xlu0 %2682 }
 0xe21   : > { %6714 = vpow2.f32 %v2692_v18  ;;  %v2687_v23 = vsub.f32 %v2668_v60, %v2683_v22 }
 0xe23   : > { %v2694_v24 = vmul.f32 1.442695, %v2687_v23 }
 0xe25   : > { %6716 = vpow2.f32 %v2694_v24 }
 0xe2e   : > { %v6715_v20 = vpop.eup %6714 }
 0xe2f   : > { %2765 = vrot.lane.b32.xlu1 %v7886_v50, %s7325_s2  ;;  %v2702_v21 = vsel %vm1230_vm1, %v6715_v20, 0.0 }
 0xe30   : > { %2703 = vadd.xlane.f32.xlu0 %v2702_v21 }
 0xe32   : > { %v6717_v25 = vpop.eup %6716 }
 0xe33   : > { %2843 = vrot.lane.b32.xlu1 %v7838_v47, %s7326_s4  ;;  %v2705_v26 = vsel %vm1230_vm1, %v6717_v25, 0.0 }
 0xe46   : > { %2718 = vrot.lane.b32.xlu0 %v7888_v52, %s7325_s2 }
 0xe4a   : > { %2841 = vrot.lane.b32.xlu0 %v7846_v57, %s7326_s4 }
 0xe57   : > { %2706 = vadd.xlane.f32.xlu1 %v2705_v26 }
 0xe68   : > { %2894 = vrot.lane.b32.xlu1 %v7848_v58, %s7326_s4 }
 0xe6c   : > { %2892 = vrot.lane.b32.xlu1 %v7857_v62, %s7326_s4 }
 0xea3   : > { %v2698_v29 = vpop.xlane.xlu0 %2697 }
 0xea7   : > { %v2701_v27 = vpop.xlane.xlu1 %2700 }
 0xea8   : > { %6718 = vrcp.f32 %v2701_v27 }
 0xea9   : > { %6720 = vrcp.f32 %v2698_v29 }
 0xeab   : > { %v2766_v34 = vpop.permute.xlu1 %2765 }
 0xeac   : > { %6191 = vmatpush3.bf16.msra.mxu0 %v2766_v34 }
 0xead   : > { %6202 = vmatprep.subr.bf16.mxu0 %v7319_v33 }
 0xeaf   : > { %v2844_v51 = vpop.permute.xlu1 %2843 }
 0xeb0   : > { %v2849_v55 = vsel %vm1230_vm1, %v2844_v51, 0 }
 0xeb5   : > { %v6719_v37 = vpop.eup %6718 }
 0xeb6   : > { %v6721_v40 = vpop.eup %6720  ;;  %v2713_v41 = vmul.f32 %v6719_v37, %v6713_v13 }
 0xeb7   : > { %v2712_v44 = vmul.f32 %v6721_v40, %v6711_v10 }
 0xeb9   : > { %v2704_v39 = vpop.xlane.xlu0 %2703  ;;  %v2716_v54 = vpack.c.bf16 %v2713_v41, %v2712_v44 }
 0xeba   : > { %6722 = vrcp.f32 %v2704_v39 }
 0xebd   : > { %v2719_v42 = vpop.permute.xlu0 %2718 }
 0xebe   : > { %6185 = vmatpush3.bf16.msra.mxu1 %v2719_v42 }
 0xebf   : > { %6196 = vmatprep.subr.bf16.mxu1 %v7319_v33 }
 0xec1   : > { %6187 = vmatmul.mubr.msk.bf16.vlgmr.msra.gmra.mxu1 %vm1230_vm1, %v2716_v54  ;;  %v2842_v56 = vpop.permute.xlu0 %2841 }
 0xec2   : > { %6197 = vmatpush3.bf16.xpose.msra.mxu1 %v2849_v55  ;;  %6198 = vmatprep.mubr.msk.bf16.mxu1 %vm7320_vm0, %v7319_v33 }
 0xec3   : > { %6208 = vmatprep.subr.bf16.mxu1 %v7319_v33 }
 0xec7   : > { %v6723_v60 = vpop.eup %6722 }
 0xec8   : > { %v2714_v0 = vmul.f32 %v6723_v60, %v6715_v20 }
 0xec9   : > { %6199 = vmatmul.mubr.msk.bf16.vlgmr.msra.gmra.mxu1 %vm1230_vm1, %v2842_v56 }
 0xeca   : > { %6210 = vmatprep.mubr.msk.bf16.mxu1 %vm7320_vm0, %v7319_v33 }
 0xee0   : > { %v2707_v59 = vpop.xlane.xlu1 %2706 }
 0xee1   : > { %6724 = vrcp.f32 %v2707_v59 }
 0xee4   : > { %v2895_v3 = vpop.permute.xlu1 %2894 }
 0xee5   : > { %v2900_v5 = vsel %vm1230_vm1, %v2895_v3, 0 }
 0xee8   : > { %v2893_v7 = vpop.permute.xlu1 %2892 }
 0xeee   : > { %v6725_v61 = vpop.eup %6724 }
 0xeef   : > { %v2715_v2 = vmul.f32 %v6725_v61, %v6717_v25 }
 0xef1   : > { %v2717_v4 = vpack.c.bf16 %v2715_v2, %v2714_v0 }
 0xef3   : > { %6193 = vmatmul.mubr.msk.bf16.vlgmr.msra.gmra.mxu0 %vm1230_vm1, %v2717_v4 }
 0xef4   : > { %6203 = vmatpush3.bf16.xpose.msra.mxu0 %v2900_v5  ;;  %6204 = vmatprep.mubr.msk.bf16.mxu0 %vm7320_vm0, %v7319_v33 }
 0xef5   : > { %6214 = vmatprep.subr.bf16.mxu0 %v7319_v33 }
 0xefb   : > { %6205 = vmatmul.mubr.msk.bf16.vlgmr.msra.gmra.mxu0 %vm1230_vm1, %v2893_v7 }
 0xefc   : > { %6216 = vmatprep.mubr.msk.bf16.mxu0 %vm7320_vm0, %v7319_v33 }
 0xf81   : > { %v8143_v9 = vpop.f32.mrf.mxu1 }
 0xf83   : > { %v6188_v10 = vpop.f32.mrf.mxu1 }
 0xf85   : > { %v8145_v11 = vpop.f32.mrf.mxu1 }
 0xf87   : > { %v6189_v13 = vpop.f32.mrf.mxu1 }
 0xf89   : > { %v2885_v14 = vpop.f32.mrf.mxu1 }
 0xf8a   : > { %v2943_v15 = vsel %vm1230_vm1, %v2885_v14, -inf }
 0xf8b   : > { %2944 = vmax.xlane.f32.xlu0 %v2943_v15  ;;  %v6200_v16 = vpop.f32.mrf.mxu1 }
 0xf8d   : > { %v2888_v18 = vpop.f32.mrf.mxu1 }
 0xf8e   : > { %v2946_v20 = vsel %vm1230_vm1, %v2888_v18, -inf }
 0xf8f   : > { %2947 = vmax.xlane.f32.xlu1 %v2946_v20  ;;  %v6201_v21 = vpop.f32.mrf.mxu1 }
 0xfb3   : > { %v8149_v22 = vpop.f32.mrf.mxu0 }
 0xfb5   : > { %v6194_v23 = vpop.f32.mrf.mxu0 }
 0xfb7   : > { %v8151_v24 = vpop.f32.mrf.mxu0 }
 0xfb9   : > { %v6195_v25 = vpop.f32.mrf.mxu0 }
 0xfbb   : > { %v2936_v26 = vpop.f32.mrf.mxu0 }
 0xfbc   : > { %v2949_v27 = vsel %vm1230_vm1, %v2936_v26, -inf }
 0xfbd   : > { %2950 = vmax.xlane.f32.xlu0 %v2949_v27  ;;  %v6206_v29 = vpop.f32.mrf.mxu0 }
 0xfbf   : > { %v2939_v34 = vpop.f32.mrf.mxu0 }
 0xfc0   : > { %v2952_v37 = vsel %vm1230_vm1, %v2939_v34, -inf }
 0xfc1   : > { %2953 = vmax.xlane.f32.xlu0 %v2952_v37  ;;  %v6207_v39 = vpop.f32.mrf.mxu0 }
0x1014   : > { %v2945_v40 = vpop.xlane.xlu0 %2944 }
0x1015   : > { %v2955_v41 = vsub.f32 %v2885_v14, %v2945_v40 }
0x1017   : > { %v2959_v42 = vmul.f32 1.442695, %v2955_v41 }
0x1018   : > { %v2948_v44 = vpop.xlane.xlu1 %2947 }
0x1019   : > { %6726 = vpow2.f32 %v2959_v42  ;;  %v2956_v51 = vsub.f32 %v2888_v18, %v2948_v44 }
0x101b   : > { %v2961_v54 = vmul.f32 1.442695, %v2956_v51 }
0x101d   : > { %6728 = vpow2.f32 %v2961_v54 }
0x1026   : > { %v6727_v55 = vpop.eup %6726 }
0x1027   : > { %v2967_v56 = vsel %vm1230_vm1, %v6727_v55, 0.0 }
0x1028   : > { %2968 = vadd.xlane.f32.xlu0 %v2967_v56 }
0x102a   : > { %v6729_v59 = vpop.eup %6728 }
0x102b   : > { %v2970_v60 = vsel %vm1230_vm1, %v6729_v59, 0.0 }
0x102c   : > { %2971 = vadd.xlane.f32.xlu1 %v2970_v60 }
0x103d   : > { %3036 = vrot.lane.b32.xlu1 %v7886_v50, %s7326_s4 }
0x1041   : > { %3114 = vrot.lane.b32.xlu1 %v7838_v47, %s7327_s3 }
0x1046   : > { %v2951_v61 = vpop.xlane.xlu0 %2950 }
0x1047   : > { %v2957_v0 = vsub.f32 %v2936_v26, %v2951_v61 }
0x1049   : > { %v2963_v2 = vmul.f32 1.442695, %v2957_v0 }
0x104a   : > { %v2954_v3 = vpop.xlane.xlu0 %2953 }
0x104b   : > { %6730 = vpow2.f32 %v2963_v2  ;;  %v2958_v4 = vsub.f32 %v2939_v34, %v2954_v3 }
0x104d   : > { %v2965_v5 = vmul.f32 1.442695, %v2958_v4 }
0x104f   : > { %6732 = vpow2.f32 %v2965_v5 }
0x1058   : > { %v6731_v7 = vpop.eup %6730 }
0x1059   : > { %v2973_v10 = vsel %vm1230_vm1, %v6731_v7, 0.0 }
0x105a   : > { %2974 = vadd.xlane.f32.xlu0 %v2973_v10 }
0x105c   : > { %v6733_v13 = vpop.eup %6732 }
0x105d   : > { %v2976_v14 = vsel %vm1230_vm1, %v6733_v13, 0.0 }
0x1065   : > { %2977 = vadd.xlane.f32.xlu1 %v2976_v14 }
0x1070   : > { %2989 = vrot.lane.b32.xlu0 %v7888_v52, %s7326_s4 }
0x1074   : > { %3112 = vrot.lane.b32.xlu0 %v7846_v57, %s7327_s3 }
0x1076   : > { %3165 = vrot.lane.b32.xlu1 %v7848_v58, %s7327_s3 }
0x107a   : > { %3163 = vrot.lane.b32.xlu1 %v7857_v62, %s7327_s3 }
0x10b1   : > { %v2969_v16 = vpop.xlane.xlu0 %2968 }
0x10b5   : > { %v2972_v47 = vpop.xlane.xlu1 %2971 }
0x10b6   : > { %6734 = vrcp.f32 %v2972_v47 }
0x10b7   : > { %6736 = vrcp.f32 %v2969_v16 }
0x10b9   : > { %v3037_v15 = vpop.permute.xlu1 %3036 }
0x10ba   : > { %6215 = vmatpush3.bf16.msra.mxu0 %v3037_v15 }
0x10bb   : > { %6226 = vmatprep.subr.bf16.mxu0 %v7319_v33 }
0x10bd   : > { %v3115_v26 = vpop.permute.xlu1 %3114 }
0x10be   : > { %v3120_v62 = vsel %vm1230_vm1, %v3115_v26, 0 }
0x10c3   : > { %v6735_v18 = vpop.eup %6734 }
0x10c4   : > { %v6737_v21 = vpop.eup %6736  ;;  %v2984_v23 = vmul.f32 %v6735_v18, %v6729_v59 }
0x10c5   : > { %v2983_v57 = vmul.f32 %v6737_v21, %v6727_v55 }
0x10c7   : > { %v2987_v58 = vpack.c.bf16 %v2984_v23, %v2983_v57 }
0x10e3   : > { %v2975_v20 = vpop.xlane.xlu0 %2974 }
0x10e4   : > { %6738 = vrcp.f32 %v2975_v20 }
0x10e7   : > { %v2990_v25 = vpop.permute.xlu0 %2989 }
0x10e8   : > { %6209 = vmatpush3.bf16.msra.mxu1 %v2990_v25 }
0x10e9   : > { %6220 = vmatprep.subr.bf16.mxu1 %v7319_v33 }
0x10eb   : > { %6211 = vmatmul.mubr.msk.bf16.vlgmr.msra.gmra.mxu1 %vm1230_vm1, %v2987_v58  ;;  %v3113_v29 = vpop.permute.xlu0 %3112 }
0x10ec   : > { %6221 = vmatpush3.bf16.xpose.msra.mxu1 %v3120_v62  ;;  %6222 = vmatprep.mubr.msk.bf16.mxu1 %vm7320_vm0, %v7319_v33 }
0x10ed   : > { %6232 = vmatprep.subr.bf16.mxu1 %v7319_v33 }
0x10ee   : > { %v2978_v27 = vpop.xlane.xlu1 %2977 }
0x10ef   : > { %6740 = vrcp.f32 %v2978_v27 }
0x10f1   : > { %v6739_v34 = vpop.eup %6738 }
0x10f2   : > { %v2985_v39 = vmul.f32 %v6739_v34, %v6731_v7  ;;  %v3166_v41 = vpop.permute.xlu1 %3165 }
0x10f3   : > { %6223 = vmatmul.mubr.msk.bf16.vlgmr.msra.gmra.mxu1 %vm1230_vm1, %v3113_v29  ;;  %v3171_v44 = vsel %vm1230_vm1, %v3166_v41, 0 }
0x10f4   : > { %6234 = vmatprep.mubr.msk.bf16.mxu1 %vm7320_vm0, %v7319_v33 }
0x10f6   : > { %v3164_v51 = vpop.permute.xlu1 %3163 }
0x10fc   : > { %v6741_v37 = vpop.eup %6740 }
0x10fd   : > { %v2986_v40 = vmul.f32 %v6741_v37, %v6733_v13 }
0x10ff   : > { %v2988_v42 = vpack.c.bf16 %v2986_v40, %v2985_v39 }
0x1101   : > { %6217 = vmatmul.mubr.msk.bf16.vlgmr.msra.gmra.mxu0 %vm1230_vm1, %v2988_v42 }
0x1102   : > { %6227 = vmatpush3.bf16.xpose.msra.mxu0 %v3171_v44  ;;  %6228 = vmatprep.mubr.msk.bf16.mxu0 %vm7320_vm0, %v7319_v33 }
0x1103   : > { %6238 = vmatprep.subr.bf16.mxu0 %v7319_v33 }
0x1109   : > { %6229 = vmatmul.mubr.msk.bf16.vlgmr.msra.gmra.mxu0 %vm1230_vm1, %v3164_v51 }
0x110a   : > { %6240 = vmatprep.mubr.msk.bf16.mxu0 %vm7320_vm0, %v7319_v33  ;;  %vm8421_vm0 = vmand %vm3661_vm15, %vm3599_vm12  ;;  %vm4280_vm12 = vsmask.f32 7954 }
0x11ab   : > { %v8189_v54 = vpop.f32.mrf.mxu1 }
0x11ad   : > { %v6212_v55 = vpop.f32.mrf.mxu1 }
0x11af   : > { %v8191_v56 = vpop.f32.mrf.mxu1 }
0x11b1   : > { %v6213_v59 = vpop.f32.mrf.mxu1 }
0x11b3   : > { %v3156_v60 = vpop.f32.mrf.mxu1 }
0x11b4   : > { %v3214_v61 = vsel %vm1230_vm1, %v3156_v60, -inf }
0x11b5   : > { %3215 = vmax.xlane.f32.xlu0 %v3214_v61  ;;  %v6224_v0 = vpop.f32.mrf.mxu1  ;;  %v5828_v61 = vpack.c.bf16 %v7965_v45, %v7965_v45  ;;  %v5833_v45 = vpack.c.bf16 %v8013_v1, %v8013_v1  ;;  %v5840_v1 = vpack.c.bf16 %v8103_v46, %v8103_v46  ;;  %v5845_v46 = vpack.c.bf16 %v8151_v24, %v8151_v24 }
0x11b6   : > { %v5827_v0 = vpack.c.bf16 %v7961_v32, %v7961_v32  ;;  %v5834_v32 = vpack.c.bf16 %v8051_v6, %v8051_v6  ;;  %v5839_v6 = vpack.c.bf16 %v8099_v31, %v8099_v31  ;;  %v5846_v31 = vpack.c.bf16 %v8189_v54, %v8189_v54 }
0x11b7   : > { %v3159_v2 = vpop.f32.mrf.mxu1 }
0x11b8   : > { %v3217_v3 = vsel %vm1230_vm1, %v3159_v2, -inf }
0x11b9   : > { %3218 = vmax.xlane.f32.xlu1 %v3217_v3  ;;  %v6225_v4 = vpop.f32.mrf.mxu1 }
0x11c1   : > { %v8195_v5 = vpop.f32.mrf.mxu0 }
0x11c3   : > { %v6218_v7 = vpop.f32.mrf.mxu0 }
0x11c5   : > { %v8197_v33 = vpop.f32.mrf.mxu0 }
0x11c7   : > { %v6219_v10 = vpop.f32.mrf.mxu0 }
0x11c9   : > { %v3207_v13 = vpop.f32.mrf.mxu0 }
0x11ca   : > { %v3220_v14 = vsel %vm1230_vm1, %v3207_v13, -inf }
0x11cb   : > { %3221 = vmax.xlane.f32.xlu0 %v3220_v14  ;;  %v6230_v47 = vpop.f32.mrf.mxu0 }
0x11cd   : > { %v3210_v15 = vpop.f32.mrf.mxu0 }
0x11ce   : > { %v3223_v16 = vsel %vm1230_vm1, %v3210_v15, -inf }
0x11cf   : > { %3224 = vmax.xlane.f32.xlu0 %v3223_v16  ;;  %v6231_v18 = vpop.f32.mrf.mxu0 }
0x123e   : > { %v3216_v20 = vpop.xlane.xlu0 %3215 }
0x123f   : > { %v3226_v21 = vsub.f32 %v3156_v60, %v3216_v20  ;;  %v5826_v60 = vpack.c.bf16 %v7959_v30, %v7959_v30  ;;  %v5831_v30 = vpack.c.bf16 %v8007_v38, %v8007_v38  ;;  %v5838_v38 = vpack.c.bf16 %v8097_v28, %v8097_v28 }
0x1240   : > { %v5843_v28 = vpack.c.bf16 %v8145_v11, %v8145_v11  ;;  %v5849_v11 = vpack.c.bf16 %v8197_v33, %v8197_v33 }
0x1241   : > { %v3230_v23 = vmul.f32 1.442695, %v3226_v21 }
0x1242   : > { %v3219_v25 = vpop.xlane.xlu1 %3218 }
0x1243   : > { %6742 = vpow2.f32 %v3230_v23  ;;  %v3227_v57 = vsub.f32 %v3159_v2, %v3219_v25  ;;  %v5830_v2 = vpack.c.bf16 %v8005_v49, %v8005_v49  ;;  %v5835_v49 = vpack.c.bf16 %v8053_v8, %v8053_v8 }
0x1244   : > { %v5842_v8 = vpack.c.bf16 %v8143_v9, %v8143_v9  ;;  %v5847_v9 = vpack.c.bf16 %v8191_v56, %v8191_v56 }
0x1245   : > { %v3232_v26 = vmul.f32 1.442695, %v3227_v57 }
0x1247   : > { %6744 = vpow2.f32 %v3232_v26 }
0x1250   : > { %v8201_v58 = vpop.eup %6742 }
0x1251   : > { %v3238_v62 = vsel %vm1230_vm1, %v8201_v58, 0.0 }
0x1252   : > { %3239 = vadd.xlane.f32.xlu0 %v3238_v62 }
0x1254   : > { %v8205_v27 = vpop.eup %6744  ;;  %v3222_v29 = vpop.xlane.xlu0 %3221 }
0x1255   : > { %v3228_v34 = vsub.f32 %v3207_v13, %v3222_v29  ;;  %v3241_v37 = vsel %vm1230_vm1, %v8205_v27, 0.0 }
0x1256   : > { %3242 = vadd.xlane.f32.xlu1 %v3241_v37 }
0x1257   : > { %v3234_v39 = vmul.f32 1.442695, %v3228_v34 }
0x1258   : > { %v3225_v40 = vpop.xlane.xlu0 %3224 }
0x1259   : > { %6746 = vpow2.f32 %v3234_v39  ;;  %v3229_v41 = vsub.f32 %v3210_v15, %v3225_v40 }
0x125b   : > { %v3236_v42 = vmul.f32 1.442695, %v3229_v41 }
0x125d   : > { %6748 = vpow2.f32 %v3236_v42 }
0x1266   : > { %v8209_v44 = vpop.eup %6746 }
0x1267   : > { %v3244_v51 = vsel %vm1230_vm1, %v8209_v44, 0.0 }
0x1268   : > { %3245 = vadd.xlane.f32.xlu0 %v3244_v51 }
0x126a   : > { %v8213_v55 = vpop.eup %6748 }
0x126b   : > { %v3247_v59 = vsel %vm1230_vm1, %v8213_v55, 0.0 }
0x126c   : > { %3248 = vadd.xlane.f32.xlu1 %v3247_v59 }
0x127d   : > { %3307 = vrot.lane.b32.xlu1 %v7886_v50, %s7327_s3  ;;  %v5829_v50 = vpack.c.bf16 %v7967_v48, %v7967_v48  ;;  %v5836_v48 = vpack.c.bf16 %v8057_v17, %v8057_v17  ;;  %v5841_v17 = vpack.c.bf16 %v8105_v53, %v8105_v53  ;;  %v5848_v53 = vpack.c.bf16 %v8195_v5, %v8195_v5 }
0x127e   : > { %3260 = vrot.lane.b32.xlu0 %v7888_v52, %s7327_s3  ;;  %v5832_v52 = vpack.c.bf16 %v8011_v63, %v8011_v63  ;;  %v5837_v63 = vpack.c.bf16 %v8059_v19, %v8059_v19  ;;  %v5844_v19 = vpack.c.bf16 %v8149_v22, %v8149_v22 }
0x1281   : > { %1740 = vrot.lane.b32.xlu1 %v5826_v60, %s7327_s3 }
0x1282   : > { %1744 = vrot.lane.b32.xlu0 %v5828_v61, %s7327_s3 }
0x1285   : > { %1742 = vrot.lane.b32.xlu1 %v5827_v0, %s7327_s3 }
0x1286   : > { %2011 = vrot.lane.b32.xlu0 %v5830_v2, %s7326_s4 }
0x1289   : > { %1746 = vrot.lane.b32.xlu1 %v5829_v50, %s7327_s3  ;;  %v6498_v50 = vld [vmem:[%s7783_s12 + $0x38] sm:$0xff]  }
0x128a   : > { %2015 = vrot.lane.b32.xlu0 %v5832_v52, %s7326_s4  ;;  %v6499_v52 = vld [vmem:[%s7783_s12 + $0x30] sm:$0xff]  }
0x128d   : > { %2013 = vrot.lane.b32.xlu1 %v5831_v30, %s7326_s4  ;;  %v6500_v30 = vld [vmem:[%s7783_s12 + $0x28] sm:$0xff]  }
0x128e   : > { %2282 = vrot.lane.b32.xlu0 %v5834_v32, %s7325_s2  ;;  %v6501_v32 = vld [vmem:[%s7783_s12 + $0x20] sm:$0xff]  }
0x1291   : > { %2017 = vrot.lane.b32.xlu1 %v5833_v45, %s7326_s4  ;;  %v6502_v45 = vld [vmem:[%s7783_s12 + $0x18] sm:$0xff]  }
0x1292   : > { %2286 = vrot.lane.b32.xlu0 %v5836_v48, %s7325_s2 }
0x1295   : > { %2284 = vrot.lane.b32.xlu1 %v5835_v49, %s7325_s2 }
0x1296   : > { %2553 = vrot.lane.b32.xlu0 %v5838_v38, %s7324_s14 }
0x1299   : > { %2288 = vrot.lane.b32.xlu1 %v5837_v63, %s7325_s2 }
0x129a   : > { %2557 = vrot.lane.b32.xlu0 %v5840_v1, %s7324_s14 }
0x129d   : > { %2555 = vrot.lane.b32.xlu1 %v5839_v6, %s7324_s14  ;;  %v6504_v6 = vld [vmem:[%s7783_s12 + $0x10] sm:$0xff]  }
0x129e   : > { %2824 = vrot.lane.b32.xlu0 %v5842_v8, %s7323_s17 }
0x12a1   : > { %2559 = vrot.lane.b32.xlu1 %v5841_v17, %s7324_s14  ;;  %v6505_v17 = vld [vmem:[%s7783_s12 + $0x8] sm:$0xff]  }
0x12a2   : > { %2828 = vrot.lane.b32.xlu0 %v5844_v19, %s7323_s17  ;;  %v6506_v19 = vld [vmem:[%s7783_s12] sm:$0xff]  }
0x12a5   : > { %2826 = vrot.lane.b32.xlu1 %v5843_v28, %s7323_s17 }
0x12a6   : > { %3095 = vrot.lane.b32.xlu0 %v5846_v31, %s7322_s28 }
0x12a9   : > { %2830 = vrot.lane.b32.xlu1 %v5845_v46, %s7323_s17 }
0x12aa   : > { %3099 = vrot.lane.b32.xlu0 %v5848_v53, %s7322_s28 }
0x12ad   : > { %3097 = vrot.lane.b32.xlu1 %v5847_v9, %s7322_s28 }
0x12b1   : > { %3101 = vrot.lane.b32.xlu1 %v5849_v11, %s7322_s28 }
0x12db   : > { %v3240_v54 = vpop.xlane.xlu0 %3239 }
0x12df   : > { %v3243_v22 = vpop.xlane.xlu1 %3242 }
0x12e0   : > { %6750 = vrcp.f32 %v3243_v22 }
0x12e1   : > { %6752 = vrcp.f32 %v3240_v54 }
0x12ed   : > { %v6751_v24 = vpop.eup %6750 }
0x12ee   : > { %v6753_v4 = vpop.eup %6752  ;;  %v3255_v5 = vmul.f32 %v6751_v24, %v8205_v27 }
0x12ef   : > { %v3254_v56 = vmul.f32 %v6753_v4, %v8201_v58 }
0x12f1   : > { %v3246_v3 = vpop.xlane.xlu0 %3245  ;;  %v3258_v13 = vpack.c.bf16 %v3255_v5, %v3254_v56 }
0x12f2   : > { %6754 = vrcp.f32 %v3246_v3 }
0x12f5   : > { %v3249_v7 = vpop.xlane.xlu1 %3248  ;;  %v3261_v10 = vpop.permute.xlu0 %3260 }
0x12f6   : > { %6756 = vrcp.f32 %v3249_v7  ;;  %6233 = vmatpush3.bf16.msra.mxu1 %v3261_v10  ;;  %v5573_v10 = vld [vmem:[%s752_s18] ss:$0 sm:$0xff] }
0x12f7   : > { %6244 = vmatprep.subr.bf16.mxu1 %v6498_v50 }
0x12f9   : > { %v3308_v33 = vpop.permute.xlu1 %3307  ;;  %6235 = vmatmul.mubr.msk.bf16.vlgmr.msra.gmra.mxu1 %vm1230_vm1, %v3258_v13  ;;  %v1745_v14 = vpop.permute.xlu0 %1744 }
0x12fa   : > { %1755 = vst.msk [vmem:[#allocation3 + $0x8] sm:$0xf] %vm1752_vm3, %v1745_v14  ;;  %6239 = vmatpush3.bf16.msra.mxu0 %v3308_v33  ;;  %6245 = vmatpush3.bf16.msra.mxu1 %v6498_v50 }
0x12fb   : > { %6246 = vmatprep.subr.bf16.mxu1 %v6499_v52 }
0x12fd   : > { %v1741_v47 = vpop.permute.xlu1 %1740  ;;  %v2012_v15 = vpop.permute.xlu0 %2011 }
0x12fe   : > { %1753 = vst.msk [vmem:[#allocation3] sm:$0xf] %vm1752_vm3, %v1741_v47  ;;  %6247 = vmatpush3.bf16.msra.mxu1 %v6499_v52  ;;  %v6774_v47 = vld [vmem:[#allocation2 + $0x10] sm:$0xff] }
0x12ff   : > { %2024 = vst.msk [vmem:[#allocation3] sm:$0xf] %vm2023_vm4, %v2012_v15  ;;  %v6755_v16 = vpop.eup %6754  ;;  %6248 = vmatprep.subr.bf16.mxu1 %v6500_v30 }
0x1300   : > { %v3256_v23 = vmul.f32 %v6755_v16, %v8209_v44 }
0x1301   : > { %v1743_v18 = vpop.permute.xlu1 %1742  ;;  %v2016_v20 = vpop.permute.xlu0 %2015 }
0x1302   : > { %1754 = vst.msk [vmem:[#allocation3 + $0x4] sm:$0xf] %vm1752_vm3, %v1743_v18  ;;  %6249 = vmatpush3.bf16.msra.mxu1 %v6500_v30 }
0x1303   : > { %2026 = vst.msk [vmem:[#allocation3 + $0x8] sm:$0xf] %vm2023_vm4, %v2016_v20  ;;  %v6757_v21 = vpop.eup %6756  ;;  %6250 = vmatprep.subr.bf16.mxu1 %v6501_v32  ;;  %v6775_v20 = vld [vmem:[#allocation2 + $0x18] sm:$0xff] }
0x1304   : > { %v3257_v25 = vmul.f32 %v6757_v21, %v8213_v55 }
0x1305   : > { %v1747_v57 = vpop.permute.xlu1 %1746  ;;  %v2283_v26 = vpop.permute.xlu0 %2282 }
0x1306   : > { %1756 = vst.msk [vmem:[#allocation3 + $0xc] sm:$0xf] %vm1752_vm3, %v1747_v57  ;;  %v3259_v58 = vpack.c.bf16 %v3257_v25, %v3256_v23  ;;  %6251 = vmatpush3.bf16.msra.mxu1 %v6501_v32  ;;  %v6776_v25 = vld [vmem:[#allocation2] sm:$0xff]  ;;  %vm3699_vm3 = vsmask.f32 3328 }
0x1307   : > { %2295 = vst.msk [vmem:[#allocation3] sm:$0xf] %vm2294_vm5, %v2283_v26  ;;  %6252 = vmatprep.subr.bf16.mxu1 %v6502_v45  ;;  %v6777_v26 = vld [vmem:[#allocation2 + $0x8] sm:$0xff] }
0x1308   : > { %6241 = vmatmul.mubr.msk.bf16.vlgmr.msra.gmra.mxu0 %vm1230_vm1, %v3259_v58  ;;  %vm3619_vm1 = vsmask.f32 4368 }
0x1309   : > { %v2014_v62 = vpop.permute.xlu1 %2013  ;;  %v2287_v27 = vpop.permute.xlu0 %2286  ;;  %3887 = vmatprep.mubr.bf16.mxu0 %v7318_v12  ;;  %vm8432_vm2 = vmor %vm3591_vm11, %vm3619_vm1 }
0x130a   : > { %2025 = vst.msk [vmem:[#allocation3 + $0x4] sm:$0xf] %vm2023_vm4, %v2014_v62  ;;  %6253 = vmatpush3.bf16.msra.mxu1 %v6502_v45  ;;  %v3593_v62 = vld [vmem:[#allocation4] sm:$0x1] }
0x130b   : > { %2297 = vst.msk [vmem:[#allocation3 + $0x8] sm:$0xf] %vm2294_vm5, %v2287_v27  ;;  %6254 = vmatprep.subr.bf16.mxu1 %v6504_v6 }
0x130d   : > { %v2018_v29 = vpop.permute.xlu1 %2017  ;;  %v2554_v34 = vpop.permute.xlu0 %2553 }
0x130e   : > { %2027 = vst.msk [vmem:[#allocation3 + $0xc] sm:$0xf] %vm2023_vm4, %v2018_v29  ;;  %6255 = vmatpush3.bf16.msra.mxu1 %v6504_v6  ;;  %v3601_v29 = vld [vmem:[#allocation4 + $0x8] sm:$0x1]  ;;  %v6511_v6 = vld [vmem:[%s7788_s19 + $0x60] ss:$8 sps:$4 sm:$0xff]  }
0x130f   : > { %2566 = vst.msk [vmem:[#allocation3] sm:$0xf] %vm2565_vm6, %v2554_v34  ;;  %6256 = vmatprep.subr.bf16.mxu1 %v6505_v17  ;;  %v3604_v34 = vld [vmem:[#allocation4 + $0x14] sm:$0x1]  ;;  %vm3700_vm4 = vsmask.f32 7440 }
0x1311   : > { %v2285_v37 = vpop.permute.xlu1 %2284  ;;  %v2558_v39 = vpop.permute.xlu0 %2557 }
0x1312   : > { %2296 = vst.msk [vmem:[#allocation3 + $0x4] sm:$0xf] %vm2294_vm5, %v2285_v37  ;;  %6257 = vmatpush3.bf16.msra.mxu1 %v6505_v17  ;;  %v3594_v37 = vsel %vm8336_vm13, 0, %v3593_v62  ;;  %v6519_v17 = vld [vmem:[%s7788_s19 + $0x54] ss:$8 sps:$4 sm:$0xff]  }
0x1313   : > { %2568 = vst.msk [vmem:[#allocation3 + $0x8] sm:$0xf] %vm2565_vm6, %v2558_v39  ;;  %6258 = vmatprep.subr.bf16.mxu1 %v6506_v19  ;;  %3595 = vst [vmem:[#allocation4] sm:$0x1] %v3594_v37  ;;  %v4277_v39 = vld [vmem:[#allocation5 + $0x18] sm:$0x11] }
0x1315   : > { %v2289_v40 = vpop.permute.xlu1 %2288  ;;  %v2825_v41 = vpop.permute.xlu0 %2824 }
0x1316   : > { %2298 = vst.msk [vmem:[#allocation3 + $0xc] sm:$0xf] %vm2294_vm5, %v2289_v40  ;;  %6259 = vmatpush3.bf16.msra.mxu1 %v6506_v19  ;;  %v3602_v40 = vsel %vm8343_vm14, 0, %v3601_v29  ;;  %v6514_v19 = vld [vmem:[%s7788_s19 + $0xf0] ss:$8 sps:$4 sm:$0xff]   ;;  %vm8460_vm5 = vmor %vm3699_vm3, %vm3700_vm4 }
0x1317   : > { %2837 = vst.msk [vmem:[#allocation3] sm:$0xf] %vm2836_vm7, %v2825_v41  ;;  %v3605_v41 = vsel %vm8343_vm14, 0, %v3604_v34  ;;  %3603 = vst [vmem:[#allocation4 + $0x8] sm:$0x1] %v3602_v40 }
0x1318   : > { %3606 = vst [vmem:[#allocation4 + $0x14] sm:$0x1] %v3605_v41 }
0x1319   : > { %v2556_v42 = vpop.permute.xlu1 %2555  ;;  %v2829_v44 = vpop.permute.xlu0 %2828 }
0x131a   : > { %2567 = vst.msk [vmem:[#allocation3 + $0x4] sm:$0xf] %vm2565_vm6, %v2556_v42 }
0x131b   : > { %2839 = vst.msk [vmem:[#allocation3 + $0x8] sm:$0xf] %vm2836_vm7, %v2829_v44 }
0x131d   : > { %v2560_v51 = vpop.permute.xlu1 %2559  ;;  %v3096_v55 = vpop.permute.xlu0 %3095 }
0x131e   : > { %2569 = vst.msk [vmem:[#allocation3 + $0xc] sm:$0xf] %vm2565_vm6, %v2560_v51  ;;  %vm4059_vm6 = vcmask 1042432  }
0x131f   : > { %3108 = vst.msk [vmem:[#allocation3] sm:$0xf] %vm3107_vm8, %v3096_v55 }
0x1321   : > { %v2827_v59 = vpop.permute.xlu1 %2826  ;;  %v3100_v60 = vpop.permute.xlu0 %3099 }
0x1322   : > { %2838 = vst.msk [vmem:[#allocation3 + $0x4] sm:$0xf] %vm2836_vm7, %v2827_v59 }
0x1323   : > { %3110 = vst.msk [vmem:[#allocation3 + $0x8] sm:$0xf] %vm3107_vm8, %v3100_v60 }
0x1325   : > { %v2831_v61 = vpop.permute.xlu1 %2830 }
0x1326   : > { %2840 = vst.msk [vmem:[#allocation3 + $0xc] sm:$0xf] %vm2836_vm7, %v2831_v61  ;;  %vm4060_vm7 = vcmask 1046532  }
0x1329   : > { %v3098_v0 = vpop.permute.xlu1 %3097 }
0x132a   : > { %3109 = vst.msk [vmem:[#allocation3 + $0x4] sm:$0xf] %vm3107_vm8, %v3098_v0 }
0x132d   : > { %v3102_v2 = vpop.permute.xlu1 %3101 }
0x132e   : > { %3111 = vst.msk [vmem:[#allocation3 + $0xc] sm:$0xf] %vm3107_vm8, %v3102_v2  ;;  %vm8496_vm8 = vmor %vm4059_vm6, %vm4060_vm7 }
0x13b9   : > { %v3300_v48 = vpop.f32.mrf.mxu1 }
0x13ba   : > { %v5850_v49 = vpack.c.bf16 %v3300_v48, %v3300_v48 }
0x13bb   : > { %v6236_v38 = vpop.f32.mrf.mxu1 }
0x13bc   : > { %3366 = vrot.lane.b32.xlu0 %v5850_v49, %s7321_s16  ;;  %v6510_v38 = vld [vmem:[%s7788_s19 + $0x74] ss:$8 sps:$4 sm:$0xff]  }
0x13bd   : > { %v3303_v63 = vpop.f32.mrf.mxu1  ;;  %4000 = vmatprep.subr.bf16.mxu1 %v6510_v38 }
0x13be   : > { %v5851_v1 = vpack.c.bf16 %v3303_v63, %v3303_v63  ;;  %v6508_v63 = vld [vmem:[%s7788_s19 + $0x70] ss:$8 sps:$4 sm:$0xff]  }
0x13bf   : > { %v6237_v8 = vpop.f32.mrf.mxu1 }
0x13c0   : > { %3368 = vrot.lane.b32.xlu1 %v5851_v1, %s7321_s16  ;;  %v6513_v1 = vld [vmem:[%s7788_s19 + $0x64] ss:$8 sps:$4 sm:$0xff]   ;;  %v6516_v8 = vld [vmem:[%s7788_s19 + $0xf4] ss:$8 sps:$4 sm:$0xff]  }
0x13c1   : > { %3855 = vmatprep.subr.bf16.mxu0 %v6516_v8 }
0x13c2   : > { %3856 = vmatpush1.bf16.msra.mxu0 %v6514_v19 }
0x13c8   : > { %v3347_v28 = vpop.f32.mrf.mxu0 }
0x13c9   : > { %v5852_v31 = vpack.c.bf16 %v3347_v28, %v3347_v28  ;;  %v6517_v28 = vld [vmem:[%s7788_s19 + $0x50] ss:$8 sps:$4 sm:$0xff]  }
0x13ca   : > { %v6242_v46 = vpop.f32.mrf.mxu0 }
0x13cb   : > { %3370 = vrot.lane.b32.xlu0 %v5852_v31, %s7321_s16  ;;  %v6522_v31 = vld [vmem:[%s7788_s19 + $0xe4] ss:$8 sps:$4 sm:$0xff]  }
0x13cc   : > { %v3350_v53 = vpop.f32.mrf.mxu0  ;;  %v6525_v46 = vld [vmem:[%s7788_s19 + $0x44] ss:$8 sps:$4 sm:$0xff]   ;;  %3857 = vmatprep.subr.bf16.mxu0 %v6522_v31 }
0x13cd   : > { %v5853_v9 = vpack.c.bf16 %v3350_v53, %v3350_v53  ;;  %v3596_v53 = vld [vmem:[#allocation4 + $0xc] sm:$0x1] }
0x13ce   : > { %v6243_v11 = vpop.f32.mrf.mxu0 }
0x13cf   : > { %3372 = vrot.lane.b32.xlu1 %v5853_v9, %s7321_s16  ;;  %v6520_v9 = vld [vmem:[%s7788_s19 + $0xe0] ss:$8 sps:$4 sm:$0xff]  }
0x13d0   : > { %v6523_v11 = vld [vmem:[%s7788_s19 + $0x40] ss:$8 sps:$4 sm:$0xff]   ;;  %3858 = vmatpush1.bf16.msra.mxu0 %v6520_v9 }
0x142e   : > { %v3367_v22 = vpop.permute.xlu0 %3366 }
0x142f   : > { %3379 = vst.msk [vmem:[#allocation3] sm:$0xf] %vm3378_vm9, %v3367_v22  ;;  %v3597_v22 = vsel %vm8336_vm13, 0, %v3596_v53 }
0x1430   : > { %3598 = vst [vmem:[#allocation4 + $0xc] sm:$0x1] %v3597_v22  ;;  %v3663_v22 = vld [vmem:[#allocation4] sm:$0xf] }
0x1432   : > { %v3369_v54 = vpop.permute.xlu1 %3368 }
0x1433   : > { %3380 = vst.msk [vmem:[#allocation3 + $0x4] sm:$0xf] %vm3378_vm9, %v3369_v54  ;;  %v6528_v54 = vld [vmem:[%s7788_s19 + $0xd4] ss:$8 sps:$4 sm:$0xff]  }
0x1434   : > { %3859 = vmatprep.subr.bf16.mxu0 %v6528_v54 }
0x143a   : > { %v6503_v24 = vld [vmem:[#allocation3] sm:$0xff]  }
0x143b   : > { %6260 = vmatprep.mubr.bf16.mxu1 %v6503_v24  ;;  %v6531_v24 = vld [vmem:[%s7788_s19 + $0x34] ss:$8 sps:$4 sm:$0xff]  }
0x143d   : > { %v3371_v3 = vpop.permute.xlu0 %3370 }
0x143e   : > { %3381 = vst.msk [vmem:[#allocation3 + $0x8] sm:$0xf] %vm3378_vm9, %v3371_v3  ;;  %v6526_v3 = vld [vmem:[%s7788_s19 + $0xd0] ss:$8 sps:$4 sm:$0xff]  }
0x143f   : > { %3860 = vmatpush1.bf16.msra.mxu0 %v6526_v3 }
0x1441   : > { %v3373_v4 = vpop.permute.xlu1 %3372 }
0x1442   : > { %3382 = vst.msk [vmem:[#allocation3 + $0xc] sm:$0xf] %vm3378_vm9, %v3373_v4  ;;  %v6529_v4 = vld [vmem:[%s7788_s19 + $0x30] ss:$8 sps:$4 sm:$0xff]   ;;  %vm4270_vm9 = vcmask 1044484  }
0x1443   : > { %vm4272_vm11 = vmand %vm4270_vm9, %vm4271_vm10 }
0x1444   : > { %vm8524_vm15 = vmor %vm4272_vm11, %vm8336_vm13 }
0x1445   : > { %vm4281_vm1 = vmand %vm4270_vm9, %vm4280_vm12 }
0x1449   : > { %v6507_v5 = vld [vmem:[#allocation3 + $0x8] sm:$0xff]  }
0x144a   : > { %6261 = vmatmul.mubr.bf16.vlgmr.msra.gmra.mxu1 %v6507_v5  ;;  %v6534_v5 = vld [vmem:[%s7788_s19 + $0xc4] ss:$8 sps:$4 sm:$0xff]  }
0x144b   : > { %4032 = vmatprep.mubr.bf16.mxu1 %v7318_v12  ;;  %4001 = vmatpush1.bf16.msra.mxu1 %v6508_v63 }
0x144c   : > { %4002 = vmatprep.subr.bf16.mxu1 %v6513_v1  ;;  %3861 = vmatprep.subr.bf16.mxu0 %v6534_v5 }
0x144f   : > { %4003 = vmatpush1.bf16.msra.mxu1 %v6511_v6 }
0x1450   : > { %4004 = vmatprep.subr.bf16.mxu1 %v6519_v17 }
0x1453   : > { %4005 = vmatpush1.bf16.msra.mxu1 %v6517_v28 }
0x1454   : > { %4006 = vmatprep.subr.bf16.mxu1 %v6525_v46 }
0x1457   : > { %4007 = vmatpush1.bf16.msra.mxu1 %v6523_v11 }
0x1458   : > { %4008 = vmatprep.subr.bf16.mxu1 %v6531_v24 }
0x145b   : > { %4009 = vmatpush1.bf16.msra.mxu1 %v6529_v4 }
0x150a   : > { %v6262_v7 = vpop.f32.mrf.mxu1 }
0x150b   : > { %v3513_v14 = vadd.f32 %v6262_v7, %v5573_v10  ;;  %v6537_v7 = vld [vmem:[%s7788_s19 + $0x24] ss:$8 sps:$4 sm:$0xff]  }
0x150c   : > { %v3504_v56 = vpop.f32.mrf.mxu1  ;;  %4010 = vmatprep.subr.bf16.mxu1 %v6537_v7 }
0x150d   : > { %v3505_v13 = vadd.f32 %v5573_v10, %v3504_v56  ;;  %v3521_v21 = vadd.f32 %v6775_v20, %v3513_v14  ;;  %v6535_v56 = vld [vmem:[%s7788_s19 + $0x20] ss:$8 sps:$4 sm:$0xff]   ;;  %v6538_v14 = vld [vmem:[%s7788_s19 + $0xb0] ss:$8 sps:$4 sm:$0xff]   ;;  %v6549_v20 = vld [vmem:[%s7788_s19 + $0x4] ss:$8 sps:$4 sm:$0xff]  }
0x150e   : > { %v6263_v33 = vpop.f32.mrf.mxu1  ;;  %4011 = vmatpush1.bf16.msra.mxu1 %v6535_v56 }
0x150f   : > { %v3519_v15 = vadd.f32 %v6774_v47, %v3505_v13  ;;  %v3516_v23 = vadd.f32 %v6263_v33, %v5573_v10  ;;  %v6540_v13 = vld [vmem:[%s7788_s19 + $0xb4] ss:$8 sps:$4 sm:$0xff]   ;;  %v6541_v47 = vld [vmem:[%s7788_s19 + $0x10] ss:$8 sps:$4 sm:$0xff]  }
0x1510   : > { %v3507_v16 = vpop.f32.mrf.mxu1  ;;  %v6543_v33 = vld [vmem:[%s7788_s19 + $0x14] ss:$8 sps:$4 sm:$0xff]  }
0x1511   : > { %v3508_v18 = vadd.f32 %v5573_v10, %v3507_v16  ;;  %3525 = vadd.xlane.f32.xlu0 %v3519_v15  ;;  %v3522_v58 = vadd.f32 %v6777_v26, %v3516_v23  ;;  %v6532_v10 = vld [vmem:[%s7788_s19 + $0xc0] ss:$8 sps:$4 sm:$0xff]   ;;  %4012 = vmatprep.subr.bf16.mxu1 %v6543_v33  ;;  %v6546_v16 = vld [vmem:[%s7788_s19 + $0xa4] ss:$8 sps:$4 sm:$0xff]   ;;  %v6550_v23 = vld [vmem:[%s7788_s19 + $0x90] ss:$8 sps:$4 sm:$0xff]  }
0x1512   : > { %3862 = vmatpush1.bf16.msra.mxu0 %v6532_v10  ;;  %4013 = vmatpush1.bf16.msra.mxu1 %v6541_v47  ;;  %v6560_v26 = vld [vmem:[%s7788_s19 + $0x174] ss:$8 sps:$4 sm:$0xff]  }
0x1513   : > { %v3520_v57 = vadd.f32 %v6776_v25, %v3508_v18  ;;  %3863 = vmatprep.subr.bf16.mxu0 %v6540_v13  ;;  %v6547_v18 = vld [vmem:[%s7788_s19] ss:$8 sps:$4 sm:$0xff]   ;;  %4014 = vmatprep.subr.bf16.mxu1 %v6549_v20  ;;  %v6556_v25 = vld [vmem:[%s7788_s19 + $0x84] ss:$8 sps:$4 sm:$0xff]  }
0x1514   : > { %v3667_v13 = vld [vmem:[#allocation4 + $0x8] sm:$0x1]  ;;  %v3670_v20 = vld [vmem:[#allocation4 + $0xc] sm:$0xf] }
0x1515   : > { %3527 = vadd.xlane.f32.xlu1 %v3520_v57  ;;  %3529 = vadd.xlane.f32.xlu0 %v3521_v21 }
0x1516   : > { %3864 = vmatpush1.bf16.msra.mxu0 %v6538_v14  ;;  %4015 = vmatpush1.bf16.msra.mxu1 %v6547_v18 }
0x1517   : > { %3865 = vmatprep.subr.bf16.mxu0 %v6546_v16 }
0x1519   : > { %3531 = vadd.xlane.f32.xlu0 %v3522_v58 }
0x159a   : > { %v3526_v42 = vpop.xlane.xlu0 %3525 }
0x159b   : > { %v3534_v44 = vmul.f32 0.0078125, %v3526_v42 }
0x159d   : > { %v8351_v51 = vsub.f32 %v3519_v15, %v3534_v44  ;;  %v6544_v15 = vld [vmem:[%s7788_s19 + $0xa0] ss:$8 sps:$4 sm:$0xff]  }
0x159e   : > { %v3528_v55 = vpop.xlane.xlu1 %3527  ;;  %v3530_v59 = vpop.xlane.xlu0 %3529  ;;  %3866 = vmatpush1.bf16.msra.mxu0 %v6544_v15 }
0x159f   : > { %v3535_v60 = vmul.f32 0.0078125, %v3528_v55  ;;  %v3536_v61 = vmul.f32 0.0078125, %v3530_v59  ;;  %v3542_v0 = vmul.f32 %v8351_v51, %v8351_v51 }
0x15a1   : > { %v8355_v2 = vsub.f32 %v3520_v57, %v3535_v60  ;;  %v8357_v50 = vsub.f32 %v3521_v21, %v3536_v61  ;;  %3546 = vadd.xlane.f32.xlu0 %v3542_v0  ;;  %v6552_v21 = vld [vmem:[%s7788_s19 + $0x94] ss:$8 sps:$4 sm:$0xff]   ;;  %v6554_v57 = vld [vmem:[%s7788_s19 + $0x80] ss:$8 sps:$4 sm:$0xff]   ;;  %v5584_v0 = vld [vmem:[%s760_s13] ss:$0 sm:$0xff] }
0x15a2   : > { %v3532_v52 = vpop.xlane.xlu0 %3531  ;;  %3867 = vmatprep.subr.bf16.mxu0 %v6552_v21 }
0x15a3   : > { %v3537_v30 = vmul.f32 0.0078125, %v3532_v52  ;;  %v3543_v32 = vmul.f32 %v8355_v2, %v8355_v2  ;;  %v3544_v45 = vmul.f32 %v8357_v50, %v8357_v50  ;;  %3868 = vmatpush1.bf16.msra.mxu0 %v6550_v23 }
0x15a4   : > { %3869 = vmatprep.subr.bf16.mxu0 %v6556_v25 }
0x15a5   : > { %v8363_v48 = vsub.f32 %v3522_v58, %v3537_v30  ;;  %3548 = vadd.xlane.f32.xlu1 %v3543_v32  ;;  %3550 = vadd.xlane.f32.xlu0 %v3544_v45  ;;  %v5585_v30 = vld [vmem:[%s768_s5] ss:$0 sm:$0xff] }
0x15a7   : > { %v3545_v49 = vmul.f32 %v8363_v48, %v8363_v48  ;;  %3870 = vmatpush1.bf16.msra.mxu0 %v6554_v57 }
0x15a8   : > { %4181 = vmatprep.subr.bf16.mxu0 %v6560_v26 }
0x15a9   : > { %3552 = vadd.xlane.f32.xlu1 %v3545_v49 }
0x162a   : > { %v3547_v58 = vpop.xlane.xlu0 %3546 }
0x162b   : > { %v3554_v62 = vmul.f32 0.0078125, %v3547_v58 }
0x162d   : > { %v3558_v29 = vadd.f32 1e-05, %v3554_v62 }
0x162e   : > { %v3549_v34 = vpop.xlane.xlu1 %3548  ;;  %v3551_v37 = vpop.xlane.xlu0 %3550 }
0x162f   : > { %6758 = vrsqrt.f32 %v3558_v29  ;;  %v3555_v40 = vmul.f32 0.0078125, %v3549_v34  ;;  %v3556_v41 = vmul.f32 0.0078125, %v3551_v37  ;;  %v3674_v29 = vld [vmem:[#allocation4 + $0x14] sm:$0x1] }
0x1631   : > { %v3559_v42 = vadd.f32 1e-05, %v3555_v40  ;;  %v3560_v44 = vadd.f32 1e-05, %v3556_v41 }
0x1632   : > { %v3553_v55 = vpop.xlane.xlu1 %3552 }
0x1633   : > { %6760 = vrsqrt.f32 %v3559_v42  ;;  %v3557_v59 = vmul.f32 0.0078125, %v3553_v55 }
0x1634   : > { %6762 = vrsqrt.f32 %v3560_v44 }
0x1635   : > { %v3561_v60 = vadd.f32 1e-05, %v3557_v59 }
0x1637   : > { %6764 = vrsqrt.f32 %v3561_v60 }
0x163c   : > { %v6759_v61 = vpop.eup %6758 }
0x163d   : > { %v3566_v52 = vmul.f32 %v6759_v61, %v8351_v51 }
0x163f   : > { %v3576_v32 = vmul.f32 %v5584_v0, %v3566_v52 }
0x1640   : > { %v6761_v45 = vpop.eup %6760 }
0x1641   : > { %v6763_v49 = vpop.eup %6762  ;;  %v8407_v38 = vadd.f32 %v5585_v30, %v3576_v32  ;;  %v3567_v63 = vmul.f32 %v6761_v45, %v8355_v2 }
0x1642   : > { %v3568_v1 = vmul.f32 %v6763_v49, %v8357_v50 }
0x1643   : > { %v5854_v6 = vpack.c.bf16 %v8407_v38, %v8407_v38  ;;  %v3577_v8 = vmul.f32 %v5584_v0, %v3567_v63 }
0x1644   : > { %v6765_v17 = vpop.eup %6764  ;;  %v3578_v19 = vmul.f32 %v5584_v0, %v3568_v1 }
0x1645   : > { %v3622_v28 = vshrl.u32 %v5854_v6, 16  ;;  %v8413_v51 = vadd.f32 %v5585_v30, %v3577_v8  ;;  %v3569_v31 = vmul.f32 %v6765_v17, %v8363_v48  ;;  %v3625_v9 = vshll.u32 %v5854_v6, 16 }
0x1646   : > { %v8416_v46 = vadd.f32 %v5585_v30, %v3578_v19 }
0x1647   : > { %v3624_v53 = vrot.slane %v3622_v28, 7  ;;  %v5855_v2 = vpack.c.bf16 %v8413_v51, %v8413_v51  ;;  %v3579_v50 = vmul.f32 %v5584_v0, %v3569_v31 }
0x1648   : > { %v5856_v54 = vpack.c.bf16 %v8416_v46, %v8416_v46 }
0x1649   : > { %v3627_v24 = vor.u32 %v3625_v9, %v3624_v53  ;;  %v3630_v48 = vshrl.u32 %v5855_v2, 16  ;;  %v8427_v4 = vadd.f32 %v5585_v30, %v3579_v50  ;;  %v3633_v10 = vshll.u32 %v5855_v2, 16 }
0x164a   : > { %v3639_v3 = vshrl.u32 %v5856_v54, 16  ;;  %v3642_v14 = vshll.u32 %v5856_v54, 16  ;;  %v3628_v15 = vrot.slane %v3624_v53, 4 }
0x164b   : > { %v3664_v5 = vsel %vm8421_vm0, %v3627_v24, %v3663_v22  ;;  %v3632_v7 = vrot.slane %v3630_v48, 7  ;;  %v5857_v47 = vpack.c.bf16 %v8427_v4, %v8427_v4  ;;  %v6621_v22 = vld [vmem:[%s7792_s24 + $0x120] sm:$0xff]  }
0x164c   : > { %3665 = vst [vmem:[#allocation4] sm:$0xf] %v3664_v5  ;;  %v3641_v33 = vrot.slane %v3639_v3, 7 }
0x164d   : > { %v3635_v16 = vor.u32 %v3633_v10, %v3632_v7  ;;  %v3637_v18 = vrot.slane %v3632_v7, 4  ;;  %v3647_v23 = vshrl.u32 %v5857_v47, 16  ;;  %v3650_v62 = vshll.u32 %v5857_v47, 16 }
0x164e   : > { %v3644_v21 = vor.u32 %v3642_v14, %v3641_v33  ;;  %v3645_v34 = vrot.slane %v3641_v33, 4 }
0x164f   : > { %v3636_v25 = vsel %vm8432_vm2, %v3628_v15, %v3635_v16  ;;  %v3668_v57 = vsel %vm8336_vm13, %v3637_v18, %v3667_v13  ;;  %v3649_v58 = vrot.slane %v3647_v23, 7  ;;  %v6558_v13 = vld [vmem:[%s7788_s19 + $0x170] ss:$8 sps:$4 sm:$0xff]   ;;  %v6563_v18 = vld [vmem:[%s7788_s19 + $0x164] ss:$8 sps:$4 sm:$0xff]  }
0x1650   : > { %3666 = vst [vmem:[#allocation4 + $0x4] sm:$0xf] %v3636_v25  ;;  %3669 = vst [vmem:[#allocation4 + $0x8] sm:$0x1] %v3668_v57  ;;  %v3671_v26 = vsel %vm8421_vm0, %v3644_v21, %v3670_v20  ;;  %v6561_v23 = vld [vmem:[%s7788_s19 + $0x160] ss:$8 sps:$4 sm:$0xff]  }
0x1651   : > { %3672 = vst [vmem:[#allocation4 + $0xc] sm:$0xf] %v3671_v26  ;;  %v3652_v37 = vor.u32 %v3650_v62, %v3649_v58  ;;  %v3654_v40 = vrot.slane %v3649_v58, 4  ;;  %v6566_v26 = vld [vmem:[%s7788_s19 + $0x154] ss:$8 sps:$4 sm:$0xff]  }
0x1652   : > { %v6564_v62 = vld [vmem:[%s7788_s19 + $0x150] ss:$8 sps:$4 sm:$0xff]  }
0x1653   : > { %v3677_v41 = vld [vmem:[#allocation4] sm:$0xf]  ;;  %v3653_v42 = vsel %vm8432_vm2, %v3645_v34, %v3652_v37  ;;  %v3675_v44 = vsel %vm8336_vm13, %v3654_v40, %v3674_v29  ;;  %v6569_v37 = vld [vmem:[%s7788_s19 + $0x144] ss:$8 sps:$4 sm:$0xff]   ;;  %v6567_v40 = vld [vmem:[%s7788_s19 + $0x140] ss:$8 sps:$4 sm:$0xff]  }
0x1654   : > { %v3703_v55 = vshrl.u32 %v3677_v41, 16  ;;  %v3706_v59 = vshll.u32 %v3677_v41, 16  ;;  %3673 = vst [vmem:[#allocation4 + $0x10] sm:$0xf] %v3653_v42  ;;  %3676 = vst [vmem:[#allocation4 + $0x14] sm:$0x1] %v3675_v44 }
0x1655   : > { %v6570_v42 = vld [vmem:[%s7788_s19 + $0x130] ss:$8 sps:$4 sm:$0xff]   ;;  %v6575_v44 = vld [vmem:[%s7788_s19 + $0x124] ss:$8 sps:$4 sm:$0xff]   ;;  %vm4282_vm13 = vmor %vm4281_vm1, %vm8343_vm14  ;;  %vm4349_vm14 = vcmask 1047556  }
0x1656   : > { %v3705_v60 = vrot.slane %v3703_v55, 4  ;;  %v3708_v61 = vrot.slane %v3706_v59, 5  ;;  %v6573_v55 = vld [vmem:[%s7788_s19 + $0x120] ss:$8 sps:$4 sm:$0xff]   ;;  %v6578_v59 = vld [vmem:[%s7788_s19 + $0x114] ss:$8 sps:$4 sm:$0xff]   ;;  %vm8565_vm3 = vmand %vm4349_vm14, %vm4280_vm12 }
0x1657   : > { %v8448_v0 = vld [vmem:[#allocation4 + $0x4] sm:$0xf]  ;;  %v8452_v45 = vld [vmem:[#allocation4 + $0x8] sm:$0x1]  ;;  %vm4351_vm4 = vmor %vm8565_vm3, %vm8421_vm0 }
0x1658   : > { %v3716_v52 = vshrl.u32 %v8448_v0, 16  ;;  %v5624_v30 = vcombine.low %v3677_v41, %v8448_v0  ;;  %v3679_v32 = vld [vmem:[#allocation4 + $0xc] sm:$0xf]  ;;  %v3709_v49 = vor.u32 %v3708_v61, %v3705_v60  ;;  %v3712_v6 = vshll.u32 %v8448_v0, 16  ;;  %v6572_v41 = vld [vmem:[%s7788_s19 + $0x134] ss:$8 sps:$4 sm:$0xff]  }
0x1659   : > { %v3727_v63 = vshrl.u32 %v3679_v32, 16  ;;  %v3730_v1 = vshll.u32 %v3679_v32, 16  ;;  %v3722_v19 = vshll.u32 %v8452_v45, 16  ;;  %v4064_v60 = vrot.slane %v8448_v0, 5  ;;  %v6576_v61 = vld [vmem:[%s7788_s19 + $0x110] ss:$8 sps:$4 sm:$0xff]  }
0x165a   : > { %4033 = vmatmul.mubr.bf16.vlgmr.msra.gmra.mxu1 %v5624_v30  ;;  %v3718_v8 = vrot.slane %v3716_v52, 4  ;;  %v3714_v17 = vrot.slane %v3712_v6, 5  ;;  %v3710_v31 = vrot.slane %v3709_v49, 4  ;;  %v6581_v52 = vld [vmem:[%s7788_s19 + $0x104] ss:$8 sps:$4 sm:$0xff]   ;;  %v4067_v49 = vrot.slane %v8452_v45, 5 }
0x165b   : > { %4042 = vmatprep.mubr.bf16.mxu1 %v7318_v12  ;;  %v8457_v28 = vld [vmem:[#allocation4 + $0x10] sm:$0xf]  ;;  %v3729_v53 = vrot.slane %v3727_v63, 4  ;;  %v3732_v9 = vrot.slane %v3730_v1, 5  ;;  %v8464_v54 = vld [vmem:[#allocation4 + $0x14] sm:$0x1] }
0x165c   : > { %v3740_v2 = vshrl.u32 %v8457_v28, 16  ;;  %v3719_v50 = vor.u32 %v3718_v8, %v3714_v17  ;;  %v3736_v24 = vshll.u32 %v8457_v28, 16  ;;  %v3724_v3 = vrot.slane %v3722_v19, 5  ;;  %v6579_v63 = vld [vmem:[%s7788_s19 + $0x100] ss:$8 sps:$4 sm:$0xff]  }
0x165d   : > { %v5625_v7 = vcombine.low %v3679_v32, %v8457_v28  ;;  %v3715_v33 = vsel %vm8460_vm5, %v3710_v31, %v3714_v17  ;;  %v3733_v47 = vor.u32 %v3732_v9, %v3729_v53  ;;  %v3746_v15 = vshll.u32 %v8464_v54, 16  ;;  %v4053_v32 = vld [vmem:[#allocation4] sm:$0xe]  ;;  %v4054_v31 = vld [vmem:[#allocation4 + $0xc] sm:$0xe] }
0x165e   : > { %v3720_v48 = vrot.slane %v3719_v50, 4  ;;  %v3742_v5 = vrot.slane %v3740_v2, 4  ;;  %v3738_v10 = vrot.slane %v3736_v24, 5  ;;  %v4066_v30 = vrot.slane %v4064_v60, 4  ;;  %v6582_v24 = vld [vmem:[%s7792_s24 + $0x78] sm:$0xff]  }
0x165f   : > { %v3734_v25 = vrot.slane %v3733_v47, 4  ;;  %v3748_v57 = vrot.slane %v3746_v15, 5  ;;  %v5642_v6 = vrot.slane %v4053_v32, 9  ;;  %v4071_v8 = vrot.slane %v8457_v28, 5  ;;  %v4283_v47 = vld [vmem:[#allocation5 + $0x10] sm:$0x11] }
0x1660   : > { %v3725_v14 = vsel %vm8460_vm5, %v3720_v48, %v3724_v3  ;;  %v3743_v20 = vor.u32 %v3742_v5, %v3738_v10  ;;  %v4068_v0 = vsel %vm8496_vm8, %v4066_v30, %v4067_v49  ;;  %v4074_v53 = vrot.slane %v8464_v54, 5  ;;  %v6583_v48 = vld [vmem:[%s7792_s24 + $0x38] sm:$0xff]   ;;  %v6585_v3 = vld [vmem:[%s7792_s24 + $0x30] sm:$0xff]   ;;  %v6587_v54 = vld [vmem:[%s7792_s24 + $0x68] sm:$0xff]  }
0x1661   : > { %v5606_v16 = vcombine.low %v3715_v33, %v3725_v14  ;;  %v3739_v29 = vsel %vm8460_vm5, %v3734_v25, %v3738_v10  ;;  %v4065_v17 = vsel %vm8496_vm8, %v5642_v6, %v4064_v60  ;;  %v4073_v19 = vrot.slane %v4071_v8, 4  ;;  %v6589_v5 = vld [vmem:[%s7792_s24 + $0x28] sm:$0xff]   ;;  %v6591_v10 = vld [vmem:[%s7792_s24 + $0x60] sm:$0xff]   ;;  %v4274_v14 = vld [vmem:[#allocation5] sm:$0x11] }
0x1662   : > { %4043 = vmatmul.mubr.bf16.gmra.mxu1 %v5625_v7  ;;  %v3744_v21 = vrot.slane %v3743_v20, 4  ;;  %v5660_v45 = vcombine.low %v4065_v17, %v4068_v0  ;;  %v5643_v9 = vrot.slane %v4054_v31, 9  ;;  %v6586_v7 = vld [vmem:[%s7792_s24 + $0xf8] sm:$0xff]   ;;  %v6593_v33 = vld [vmem:[%s7792_s24 + $0x20] sm:$0xff]   ;;  %v4286_v15 = vld [vmem:[#allocation5 + $0x20] sm:$0x11] }
0x1663   : > { %3888 = vmatmul.mubr.bf16.vlgmr.msra.gmra.mxu0 %v5606_v16  ;;  %v4075_v28 = vsel %vm8496_vm8, %v4073_v19, %v4074_v53  ;;  %5948 = vmatprep.subr.bf16.mxu1 %v6586_v7  ;;  %v6595_v20 = vld [vmem:[%s7792_s24 + $0x58] sm:$0xff]   ;;  %v4284_v27 = vsel %vm4282_vm13, 0, %v4283_v47  ;;  %v6609_v60 = vld [vmem:[%s7792_s24] sm:$0xff]   ;;  %v6610_v30 = vld [vmem:[%s7792_s24 + $0xc8] sm:$0xff]  }
0x1664   : > { %4182 = vmatpush1.bf16.msra.mxu0 %v6558_v13  ;;  %3897 = vmatprep.mubr.bf16.mxu0 %v7318_v12  ;;  %v3749_v58 = vsel %vm8460_vm5, %v3744_v21, %v3748_v57  ;;  %v4072_v2 = vsel %vm8496_vm8, %v5643_v9, %v4071_v8  ;;  %v6588_v13 = vld [vmem:[%s7792_s24 + $0xb8] sm:$0xff]   ;;  %v4275_v21 = vsel %vm8524_vm15, 0, %v4274_v14  ;;  %v4287_v57 = vsel %vm4282_vm13, 0, %v4286_v15  ;;  %4285 = vst [vmem:[#allocation5 + $0x10] sm:$0x11] %v4284_v27  ;;  %v6611_v32 = vld [vmem:[%s7792_s24 + $0x88] sm:$0xff]  }
0x1665   : > { %4183 = vmatprep.subr.bf16.mxu0 %v6563_v18  ;;  %v5607_v34 = vcombine.low %v3739_v29, %v3749_v58  ;;  %v5661_v50 = vcombine.low %v4072_v2, %v4075_v28  ;;  %5949 = vmatpush3.bf16.msra.mxu1 %v6588_v13  ;;  %v6590_v18 = vld [vmem:[%s7792_s24 + $0xf0] sm:$0xff]   ;;  %v6597_v25 = vld [vmem:[%s7792_s24 + $0x18] sm:$0xff]   ;;  %4276 = vst [vmem:[#allocation5] sm:$0x11] %v4275_v21  ;;  %4288 = vst [vmem:[#allocation5 + $0x20] sm:$0x11] %v4287_v57 }
0x1666   : > { %5950 = vmatprep.subr.bf16.mxu1 %v6590_v18  ;;  %v6599_v58 = vld [vmem:[%s7792_s24 + $0x50] sm:$0xff]   ;;  %v6612_v49 = vld [vmem:[%s7792_s24 + $0xc0] sm:$0xff]   ;;  %v6614_v6 = vld [vmem:[%s7792_s24 + $0x178] sm:$0xff]  }
0x1667   : > { %v6601_v29 = vld [vmem:[%s7792_s24 + $0x10] sm:$0xff]  }
0x1668   : > { %4184 = vmatpush1.bf16.msra.mxu0 %v6561_v23  ;;  %v6592_v23 = vld [vmem:[%s7792_s24 + $0xb0] sm:$0xff]  }
0x1669   : > { %4185 = vmatprep.subr.bf16.mxu0 %v6566_v26  ;;  %5951 = vmatpush3.bf16.msra.mxu1 %v6592_v23  ;;  %v6594_v26 = vld [vmem:[%s7792_s24 + $0xe8] sm:$0xff]  }
0x166a   : > { %5952 = vmatprep.subr.bf16.mxu1 %v6594_v26 }
0x166b   : > { %3898 = vmatmul.mubr.bf16.gmra.mxu0 %v5607_v34  ;;  %v6598_v34 = vld [vmem:[%s7792_s24 + $0xe0] sm:$0xff]  }
0x166c   : > { %4186 = vmatpush1.bf16.msra.mxu0 %v6564_v62  ;;  %4213 = vmatprep.mubr.bf16.mxu0 %v7318_v12  ;;  %v6596_v62 = vld [vmem:[%s7792_s24 + $0xa8] sm:$0xff]  }
0x166d   : > { %4187 = vmatprep.subr.bf16.mxu0 %v6569_v37  ;;  %5953 = vmatpush3.bf16.msra.mxu1 %v6596_v62  ;;  %v4278_v37 = vsel %vm8524_vm15, 0, %v4277_v39 }
0x166e   : > { %4279 = vst [vmem:[#allocation5 + $0x18] sm:$0x11] %v4278_v37  ;;  %5954 = vmatprep.subr.bf16.mxu1 %v6598_v34 }
0x1670   : > { %4188 = vmatpush1.bf16.msra.mxu0 %v6567_v40  ;;  %v6600_v40 = vld [vmem:[%s7792_s24 + $0xa0] sm:$0xff]  }
0x1671   : > { %4189 = vmatprep.subr.bf16.mxu0 %v6572_v41  ;;  %v6603_v41 = vld [vmem:[%s7792_s24 + $0x48] sm:$0xff]   ;;  %5955 = vmatpush3.bf16.msra.mxu1 %v6600_v40 }
0x1674   : > { %4190 = vmatpush1.bf16.msra.mxu0 %v6570_v42  ;;  %v6605_v42 = vld [vmem:[%s7792_s24 + $0x8] sm:$0xff]  }
0x1675   : > { %4191 = vmatprep.subr.bf16.mxu0 %v6575_v44  ;;  %v6602_v44 = vld [vmem:[%s7792_s24 + $0xd8] sm:$0xff]  }
0x1676   : > { %5956 = vmatprep.subr.bf16.mxu1 %v6602_v44 }
0x1678   : > { %4192 = vmatpush1.bf16.msra.mxu0 %v6573_v55  ;;  %v6607_v55 = vld [vmem:[%s7792_s24 + $0x40] sm:$0xff]  }
0x1679   : > { %4193 = vmatprep.subr.bf16.mxu0 %v6578_v59  ;;  %v6604_v59 = vld [vmem:[%s7792_s24 + $0x98] sm:$0xff]  }
0x167a   : > { %5957 = vmatpush3.bf16.msra.mxu1 %v6604_v59 }
0x167c   : > { %4194 = vmatpush1.bf16.msra.mxu0 %v6576_v61  ;;  %v6606_v61 = vld [vmem:[%s7792_s24 + $0xd0] sm:$0xff]  }
0x167d   : > { %4195 = vmatprep.subr.bf16.mxu0 %v6581_v52  ;;  %v6608_v52 = vld [vmem:[%s7792_s24 + $0x90] sm:$0xff]   ;;  %5958 = vmatprep.subr.bf16.mxu1 %v6606_v61 }
0x167e   : > { %5959 = vmatpush3.bf16.msra.mxu1 %v6608_v52 }
0x167f   : > { %5960 = vmatprep.subr.bf16.mxu1 %v6610_v30 }
0x1680   : > { %4196 = vmatpush1.bf16.msra.mxu0 %v6579_v63  ;;  %v6613_v63 = vld [vmem:[%s7792_s24 + $0x80] sm:$0xff]  }
0x1681   : > { %5976 = vmatprep.subr.bf16.mxu0 %v6582_v24 }
0x1682   : > { %5961 = vmatpush3.bf16.msra.mxu1 %v6611_v32 }
0x1683   : > { %4214 = vmatmul.mubr.bf16.vlgmr.msra.gmra.mxu0 %v5660_v45  ;;  %5962 = vmatprep.subr.bf16.mxu1 %v6612_v49 }
0x1684   : > { %4223 = vmatprep.mubr.bf16.mxu0 %v7318_v12  ;;  %5977 = vmatpush3.bf16.msra.mxu0 %v6583_v48  ;;  %v6584_v12 = vld [vmem:[%s7792_s24 + $0x70] sm:$0xff]  }
0x1685   : > { %5978 = vmatprep.subr.bf16.mxu0 %v6584_v12 }
0x1686   : > { %5963 = vmatpush3.bf16.msra.mxu1 %v6613_v63 }
0x1687   : > { %6004 = vmatprep.subr.bf16.mxu1 %v6614_v6 }
0x1688   : > { %5979 = vmatpush3.bf16.msra.mxu0 %v6585_v3 }
0x1689   : > { %5980 = vmatprep.subr.bf16.mxu0 %v6587_v54 }
0x168b   : > { %4224 = vmatmul.mubr.bf16.gmra.mxu0 %v5661_v50  ;;  %v4242_v50 = vld [vmem:[%s7790_s26] sm:$0x3] }
0x168c   : > { %5981 = vmatpush3.bf16.msra.mxu0 %v6589_v5  ;;  %v4247_v3 = vrot.slane %v4242_v50, %v981_v43  ;;  %v4251_v13 = vrot.slane %v4242_v50, %v985_v36 }
0x168d   : > { %5982 = vmatprep.subr.bf16.mxu0 %v6591_v10 }
0x1690   : > { %5983 = vmatpush3.bf16.msra.mxu0 %v6593_v33 }
0x1691   : > { %5984 = vmatprep.subr.bf16.mxu0 %v6595_v20 }
0x1694   : > { %5985 = vmatpush3.bf16.msra.mxu0 %v6597_v25 }
0x1695   : > { %5986 = vmatprep.subr.bf16.mxu0 %v6599_v58 }
0x1698   : > { %5987 = vmatpush3.bf16.msra.mxu0 %v6601_v29 }
0x1699   : > { %5988 = vmatprep.subr.bf16.mxu0 %v6603_v41 }
0x169c   : > { %5989 = vmatpush3.bf16.msra.mxu0 %v6605_v42 }
0x169d   : > { %5990 = vmatprep.subr.bf16.mxu0 %v6607_v55 }
0x16a0   : > { %5991 = vmatpush3.bf16.msra.mxu0 %v6609_v60 }
0x171a   : > { %v4034_v19 = vpop.f32.mrf.mxu1 }
0x171c   : > { %v4036_v53 = vpop.f32.mrf.mxu1 }
0x171e   : > { %v4038_v28 = vpop.f32.mrf.mxu1 }
0x1720   : > { %v4040_v24 = vpop.f32.mrf.mxu1 }
0x1722   : > { %v4044_v5 = vpop.f32.mrf.mxu1 }
0x1723   : > { %v3889_v0 = vpop.f32.mrf.mxu0 }
0x1724   : > { %v4035_v12 = vadd.f32 %v4034_v19, %v3889_v0  ;;  %v4046_v20 = vpop.f32.mrf.mxu1 }
0x1725   : > { %v3891_v8 = vpop.f32.mrf.mxu0 }
0x1726   : > { %v4037_v7 = vadd.f32 %v4036_v53, %v3891_v8  ;;  %v4048_v39 = vpop.f32.mrf.mxu1  ;;  %v4352_v8 = vld [vmem:[#allocation5] sm:$0xff] }
0x1727   : > { %v3893_v17 = vpop.f32.mrf.mxu0 }
0x1728   : > { %v4039_v14 = vadd.f32 %v4038_v28, %v3893_v17  ;;  %v4050_v30 = vpop.f32.mrf.mxu1 }
0x1729   : > { %v3895_v45 = vpop.f32.mrf.mxu0 }
0x172a   : > { %v4041_v21 = vadd.f32 %v4040_v24, %v3895_v45 }
0x172b   : > { %v3899_v31 = vpop.f32.mrf.mxu0 }
0x172c   : > { %v4045_v27 = vadd.f32 %v4044_v5, %v3899_v31 }
0x172d   : > { %v3901_v9 = vpop.f32.mrf.mxu0 }
0x172e   : > { %v4047_v37 = vadd.f32 %v4046_v20, %v3901_v9 }
0x172f   : > { %v3903_v2 = vpop.f32.mrf.mxu0 }
0x1730   : > { %v4049_v41 = vadd.f32 %v4048_v39, %v3903_v2 }
0x1731   : > { %v3905_v48 = vpop.f32.mrf.mxu0 }
0x1732   : > { %v4051_v0 = vadd.f32 %v4050_v30, %v3905_v48 }
0x1743   : > { %v4215_v54 = vpop.f32.mrf.mxu0 }
0x1744   : > { %v4234_v10 = vadd.f32 %v4215_v54, %v4035_v12  ;;  %v4356_v12 = vld [vmem:[#allocation5 + $0x10] sm:$0x11] }
0x1745   : > { %v4217_v33 = vpop.f32.mrf.mxu0 }
0x1746   : > { %v4254_v47 = vadd.f32 %v4247_v3, %v4234_v10  ;;  %v4235_v15 = vadd.f32 %v4217_v33, %v4037_v7 }
0x1747   : > { %v4219_v18 = vpop.f32.mrf.mxu0 }
0x1748   : > { %v4255_v23 = vadd.f32 %v4251_v13, %v4235_v15  ;;  %v4236_v25 = vadd.f32 %v4219_v18, %v4039_v14  ;;  %v4262_v26 = vmax.f32 %v4254_v47, 0.0 }
0x1749   : > { %v4221_v57 = vpop.f32.mrf.mxu0 }
0x174a   : > { %v4263_v43 = vmax.f32 %v4255_v23, 0.0  ;;  %v4256_v58 = vadd.f32 %v4247_v3, %v4236_v25  ;;  %v4237_v62 = vadd.f32 %v4221_v57, %v4041_v21 }
0x174b   : > { %v4225_v29 = vpop.f32.mrf.mxu0 }
0x174c   : > { %v5858_v35 = vpack.c.bf16 %v4263_v43, %v4262_v26  ;;  %v4257_v36 = vadd.f32 %v4251_v13, %v4237_v62  ;;  %v4238_v34 = vadd.f32 %v4225_v29, %v4045_v27  ;;  %v4264_v55 = vmax.f32 %v4256_v58, 0.0  ;;  %v4359_v58 = vld [vmem:[#allocation5 + $0x18] sm:$0xff] }
0x174d   : > { %v4227_v40 = vpop.f32.mrf.mxu0 }
0x174e   : > { %v4310_v42 = vshrl.u32 %v5858_v35, 16  ;;  %v4265_v59 = vmax.f32 %v4257_v36, 0.0  ;;  %v4258_v60 = vadd.f32 %v4247_v3, %v4238_v34  ;;  %v4239_v61 = vadd.f32 %v4227_v40, %v4047_v37 }
0x174f   : > { %v4229_v52 = vpop.f32.mrf.mxu0  ;;  %v4313_v49 = vshll.u32 %v5858_v35, 16 }
0x1750   : > { %v4312_v32 = vrot.slane %v4310_v42, 7  ;;  %v5859_v63 = vpack.c.bf16 %v4265_v59, %v4264_v55  ;;  %v4240_v6 = vadd.f32 %v4229_v52, %v4049_v41  ;;  %v4259_v17 = vadd.f32 %v4251_v13, %v4239_v61  ;;  %v4363_v55 = vld [vmem:[#allocation5 + $0x20] sm:$0x11] }
0x1751   : > { %v4231_v45 = vpop.f32.mrf.mxu0  ;;  %v4266_v53 = vmax.f32 %v4258_v60, 0.0 }
0x1752   : > { %v4315_v19 = vor.u32 %v4313_v49, %v4312_v32  ;;  %v4318_v31 = vshrl.u32 %v5859_v63, 16  ;;  %v4267_v9 = vmax.f32 %v4259_v17, 0.0  ;;  %v4260_v28 = vadd.f32 %v4247_v3, %v4240_v6 }
0x1753   : > { %v4241_v2 = vadd.f32 %v4231_v45, %v4051_v0  ;;  %v4321_v48 = vshll.u32 %v5859_v63, 16  ;;  %v4316_v10 = vrot.slane %v4312_v32, 4 }
0x1754   : > { %v4353_v50 = vsel %vm4351_vm4, %v4315_v19, %v4352_v8  ;;  %v4320_v24 = vrot.slane %v4318_v31, 7  ;;  %v5860_v54 = vpack.c.bf16 %v4267_v9, %v4266_v53  ;;  %v4268_v18 = vmax.f32 %v4260_v28, 0.0 }
0x1755   : > { %4354 = vst [vmem:[#allocation5] sm:$0xff] %v4353_v50  ;;  %v4261_v5 = vadd.f32 %v4251_v13, %v4241_v2  ;;  %v4405_v7 = vshrl.u32 %v4353_v50, 16  ;;  %v4408_v47 = vshll.u32 %v4353_v50, 16 }
0x1756   : > { %v4323_v33 = vor.u32 %v4321_v48, %v4320_v24  ;;  %v4325_v14 = vrot.slane %v4320_v24, 4  ;;  %v4327_v15 = vshrl.u32 %v5860_v54, 16  ;;  %v4330_v3 = vshll.u32 %v5860_v54, 16  ;;  %v6615_v48 = vld [vmem:[%s7792_s24 + $0x138] sm:$0xff]   ;;  %v6616_v54 = vld [vmem:[%s7792_s24 + $0x170] sm:$0xff]  }
0x1757   : > { %v4269_v20 = vmax.f32 %v4261_v5, 0.0  ;;  %v4407_v25 = vrot.slane %v4405_v7, 4  ;;  %v4410_v27 = vrot.slane %v4408_v47, 5 }
0x1758   : > { %v8580_v21 = vsel %vm8432_vm2, %v4316_v10, %v4323_v33  ;;  %v4357_v23 = vsel %vm8524_vm15, %v4325_v14, %v4356_v12  ;;  %v4329_v13 = vrot.slane %v4327_v15, 7  ;;  %v6617_v14 = vld [vmem:[%s7792_s24 + $0x130] sm:$0xff]  }
0x1759   : > { %4358 = vst [vmem:[#allocation5 + $0x10] sm:$0x11] %v4357_v23  ;;  %v5861_v57 = vpack.c.bf16 %v4269_v20, %v4268_v18  ;;  %v5735_v26 = vcombine.high %v4353_v50, %v8580_v21  ;;  %v5734_v43 = vcombine.low %v4353_v50, %v8580_v21  ;;  %v4414_v62 = vshll.u32 %v8580_v21, 16  ;;  %v6618_v18 = vld [vmem:[%s7792_s24 + $0x168] sm:$0xff]  }
0x175a   : > { %v4418_v29 = vshrl.u32 %v8580_v21, 16  ;;  %v4332_v39 = vor.u32 %v4330_v3, %v4329_v13  ;;  %v4411_v36 = vor.u32 %v4410_v27, %v4407_v25  ;;  %v4333_v61 = vrot.slane %v4329_v13, 4 }
0x175b   : > { %v4335_v35 = vshrl.u32 %v5861_v57, 16  ;;  %4794 = vmatprep.mubr.bf16.mxu0 %v5735_v26  ;;  %v4416_v34 = vrot.slane %v4414_v62, 5  ;;  %v4338_v42 = vshll.u32 %v5861_v57, 16  ;;  %v4819_v7 = vrot.slane %v8580_v21, 5 }
0x175c   : > { %4795 = vmatmul.mubr.bf16.vlgmr.msra.gmra.mxu0 %v5734_v43  ;;  %v4420_v37 = vrot.slane %v4418_v29, 4  ;;  %v4360_v40 = vsel %vm4351_vm4, %v4332_v39, %v4359_v58  ;;  %v4412_v63 = vrot.slane %v4411_v36, 4  ;;  %v4811_v33 = vld [vmem:[#allocation5] sm:$0xee]  ;;  %v6619_v58 = vld [vmem:[%s7792_s24 + $0x128] sm:$0xff]   ;;  %v6620_v29 = vld [vmem:[%s7792_s24 + $0x160] sm:$0xff]  }
0x175d   : > { %v4337_v41 = vrot.slane %v4335_v35, 7  ;;  %4361 = vst [vmem:[#allocation5 + $0x18] sm:$0xff] %v4360_v40  ;;  %v4429_v59 = vshrl.u32 %v4360_v40, 16  ;;  %v4432_v60 = vshll.u32 %v4360_v40, 16  ;;  %v5754_v25 = vrot.slane %v4811_v33, 9  ;;  %v6622_v35 = vld [vmem:[%s7792_s24 + $0x158] sm:$0xff]  }
0x175e   : > { %v4421_v32 = vor.u32 %v4420_v37, %v4416_v34  ;;  %v4417_v16 = vsel %vm8460_vm5, %v4412_v63, %v4416_v34  ;;  %v4821_v27 = vrot.slane %v4819_v7, 4  ;;  %v6623_v36 = vld [vmem:[%s7792_s24 + $0x118] sm:$0xff]   ;;  %v6624_v34 = vld [vmem:[%s7792_s24 + $0x150] sm:$0xff]  }
0x175f   : > { %v4340_v52 = vor.u32 %v4338_v42, %v4337_v41  ;;  %v4342_v30 = vrot.slane %v4337_v41, 4  ;;  %v4431_v0 = vrot.slane %v4429_v59, 4  ;;  %v4434_v45 = vrot.slane %v4432_v60, 5  ;;  %v6625_v37 = vld [vmem:[%s7792_s24 + $0x110] sm:$0xff]   ;;  %v6627_v41 = vld [vmem:[%s7792_s24 + $0x108] sm:$0xff]   ;;  %v6628_v42 = vld [vmem:[%s7792_s24 + $0x140] sm:$0xff]  }
0x1760   : > { %v4402_v49 = vld [vmem:[#allocation5 + $0x10] sm:$0x11]  ;;  %v4422_v31 = vrot.slane %v4421_v32, 4  ;;  %v4820_v62 = vsel %vm8496_vm8, %v5754_v25, %v4819_v7 }
0x1761   : > { %v8595_v6 = vsel %vm8432_vm2, %v4333_v61, %v4340_v52  ;;  %v4364_v11 = vsel %vm8524_vm15, %v4342_v30, %v4363_v55  ;;  %v4424_v44 = vshll.u32 %v4402_v49, 16  ;;  %v4435_v12 = vor.u32 %v4434_v45, %v4431_v0  ;;  %v6629_v61 = vld [vmem:[%s7792_s24 + $0x100] sm:$0xff]  }
0x1762   : > { %4365 = vst [vmem:[#allocation5 + $0x20] sm:$0x11] %v4364_v11  ;;  %v5737_v8 = vcombine.high %v4360_v40, %v8595_v6  ;;  %v5736_v17 = vcombine.low %v4360_v40, %v8595_v6  ;;  %v4438_v19 = vshll.u32 %v8595_v6, 16  ;;  %v4442_v56 = vshrl.u32 %v8595_v6, 16  ;;  %v6626_v40 = vld [vmem:[%s7792_s24 + $0x148] sm:$0xff]  }
0x1763   : > { %v4426_v53 = vrot.slane %v4424_v44, 5  ;;  %v4436_v47 = vrot.slane %v4435_v12, 4  ;;  %v4822_v3 = vrot.slane %v4402_v49, 5  ;;  %v4826_v55 = vrot.slane %v8595_v6, 5 }
0x1764   : > { %4802 = vmatprep.mubr.bf16.mxu0 %v5737_v8  ;;  %v4440_v9 = vrot.slane %v4438_v19, 5  ;;  %v4444_v2 = vrot.slane %v4442_v56, 4  ;;  %v4812_v59 = vld [vmem:[#allocation5 + $0x18] sm:$0xee] }
0x1765   : > { %v4427_v28 = vsel %vm8460_vm5, %v4422_v31, %v4426_v53  ;;  %4803 = vmatmul.mubr.bf16.gmra.mxu0 %v5736_v17  ;;  %v4823_v57 = vsel %vm8496_vm8, %v4821_v27, %v4822_v3  ;;  %v5755_v52 = vrot.slane %v4812_v59, 9  ;;  %v4828_v30 = vrot.slane %v4826_v55, 4 }
0x1766   : > { %v5714_v50 = vcombine.low %v4417_v16, %v4427_v28  ;;  %v5715_v24 = vcombine.high %v4417_v16, %v4427_v28  ;;  %v4445_v5 = vor.u32 %v4444_v2, %v4440_v9  ;;  %v4441_v21 = vsel %vm8460_vm5, %v4436_v47, %v4440_v9 }
0x1767   : > { %v5789_v39 = vcombine.high %v4820_v62, %v4823_v57  ;;  %v5788_v49 = vcombine.low %v4820_v62, %v4823_v57  ;;  %v4827_v63 = vsel %vm8496_vm8, %v5755_v52, %v4826_v55 }
0x1768   : > { %4629 = vmatprep.mubr.bf16.mxu1 %v5715_v24  ;;  %v4446_v20 = vrot.slane %v4445_v5, 4 }
0x1769   : > { %4630 = vmatmul.mubr.bf16.vlgmr.msra.gmra.mxu1 %v5714_v50  ;;  %v4403_v10 = vld [vmem:[#allocation5 + $0x20] sm:$0x11] }
0x176a   : > { %6005 = vmatpush3.bf16.msra.mxu1 %v6615_v48  ;;  %v4448_v15 = vshll.u32 %v4403_v10, 16  ;;  %v4829_v60 = vrot.slane %v4403_v10, 5  ;;  %v5808_v10 = vld [vmem:[%s803_s25] ss:$0 sm:$0xff] }
0x176b   : > { %6006 = vmatprep.subr.bf16.mxu1 %v6616_v54 }
0x176c   : > { %v4450_v23 = vrot.slane %v4448_v15, 5  ;;  %v4830_v32 = vsel %vm8496_vm8, %v4828_v30, %v4829_v60 }
0x176d   : > { %v5791_v11 = vcombine.high %v4827_v63, %v4830_v32  ;;  %v5790_v44 = vcombine.low %v4827_v63, %v4830_v32 }
0x176e   : > { %6007 = vmatpush3.bf16.msra.mxu1 %v6617_v14  ;;  %v4451_v13 = vsel %vm8460_vm5, %v4446_v20, %v4450_v23 }
0x176f   : > { %v5717_v26 = vcombine.high %v4441_v21, %v4451_v13  ;;  %6008 = vmatprep.subr.bf16.mxu1 %v6618_v18  ;;  %v5716_v43 = vcombine.low %v4441_v21, %v4451_v13 }
0x1771   : > { %4637 = vmatprep.mubr.bf16.mxu1 %v5717_v26 }
0x1772   : > { %4638 = vmatmul.mubr.bf16.gmra.mxu1 %v5716_v43 }
0x1773   : > { %6009 = vmatpush3.bf16.msra.mxu1 %v6619_v58  ;;  %5008 = vmatprep.mubr.bf16.mxu1 %v5789_v39 }
0x1774   : > { %6010 = vmatprep.subr.bf16.mxu1 %v6620_v29 }
0x1777   : > { %6011 = vmatpush3.bf16.msra.mxu1 %v6621_v22 }
0x1778   : > { %6012 = vmatprep.subr.bf16.mxu1 %v6622_v35 }
0x177b   : > { %6013 = vmatpush3.bf16.msra.mxu1 %v6623_v36 }
0x177c   : > { %6014 = vmatprep.subr.bf16.mxu1 %v6624_v34 }
0x177f   : > { %6015 = vmatpush3.bf16.msra.mxu1 %v6625_v37 }
0x1780   : > { %6016 = vmatprep.subr.bf16.mxu1 %v6626_v40 }
0x1783   : > { %6017 = vmatpush3.bf16.msra.mxu1 %v6627_v41 }
0x1784   : > { %6018 = vmatprep.subr.bf16.mxu1 %v6628_v42 }
0x1787   : > { %6019 = vmatpush3.bf16.msra.mxu1 %v6629_v61 }
0x178a   : > { %5009 = vmatmul.mubr.bf16.vlgmr.msra.gmra.mxu1 %v5788_v49 }
0x178b   : > { %5016 = vmatprep.mubr.bf16.mxu1 %v5791_v11 }
0x1792   : > { %5017 = vmatmul.mubr.bf16.gmra.mxu1 %v5790_v44 }
0x181c   : > { %v5992_v17 = vpop.f32.mrf.mxu0 }
0x181e   : > { %v5993_v19 = vpop.f32.mrf.mxu0 }
0x181f   : > { %v5994_v24 = vadd.f32 %v5993_v19, %v5992_v17 }
0x1820   : > { %v5995_v53 = vpop.f32.mrf.mxu0 }
0x1822   : > { %v5996_v9 = vpop.f32.mrf.mxu0 }
0x1823   : > { %v5997_v14 = vadd.f32 %v5996_v9, %v5995_v53 }
0x1825   : > { %v5998_v28 = vpop.f32.mrf.mxu0 }
0x1827   : > { %v5999_v48 = vpop.f32.mrf.mxu0 }
0x1828   : > { %v6000_v21 = vadd.f32 %v5999_v48, %v5998_v28 }
0x1829   : > { %v5964_v6 = vpop.f32.mrf.mxu1  ;;  %v6001_v15 = vpop.f32.mrf.mxu0 }
0x182b   : > { %v5965_v0 = vpop.f32.mrf.mxu1  ;;  %v6002_v26 = vpop.f32.mrf.mxu0 }
0x182c   : > { %v5966_v2 = vadd.f32 %v5965_v0, %v5964_v6  ;;  %v6003_v35 = vadd.f32 %v6002_v26, %v6001_v15 }
0x182d   : > { %v5967_v8 = vpop.f32.mrf.mxu1 }
0x182e   : > { %v4797_v54 = vadd.f32 %v5994_v24, %v5966_v2 }
0x182f   : > { %v5968_v45 = vpop.f32.mrf.mxu1 }
0x1830   : > { %v5969_v5 = vadd.f32 %v5968_v45, %v5967_v8 }
0x1832   : > { %v5970_v31 = vpop.f32.mrf.mxu1  ;;  %v4800_v18 = vadd.f32 %v5997_v14, %v5969_v5 }
0x1834   : > { %v5971_v56 = vpop.f32.mrf.mxu1 }
0x1835   : > { %v5972_v20 = vadd.f32 %v5971_v56, %v5970_v31 }
0x1836   : > { %v5973_v16 = vpop.f32.mrf.mxu1 }
0x1837   : > { %v4805_v58 = vadd.f32 %v6000_v21, %v5972_v20 }
0x1838   : > { %v5974_v1 = vpop.f32.mrf.mxu1 }
0x1839   : > { %v5975_v62 = vadd.f32 %v5974_v1, %v5973_v16 }
0x183b   : > { %v4808_v40 = vadd.f32 %v6003_v35, %v5975_v62 }
0x184a   : > { %v6020_v50 = vpop.f32.mrf.mxu1 }
0x184c   : > { %v6021_v12 = vpop.f32.mrf.mxu1 }
0x184d   : > { %v6022_v7 = vadd.f32 %v6021_v12, %v6020_v50 }
0x184e   : > { %v6023_v33 = vpop.f32.mrf.mxu1 }
0x184f   : > { %v5025_v47 = vadd.f32 %v6022_v7, %v4797_v54  ;;  %v5809_v54 = vld [vmem:[%s811_s1] ss:$0 sm:$0xff] }
0x1850   : > { %v6024_v3 = vpop.f32.mrf.mxu1  ;;  %v5810_v7 = vld [vmem:[%s819_s22] ss:$0 sm:$0xff] }
0x1851   : > { %v5036_v23 = vadd.f32 %v5808_v10, %v5025_v47  ;;  %v6025_v25 = vadd.f32 %v6024_v3, %v6023_v33 }
0x1852   : > { %v6026_v27 = vpop.f32.mrf.mxu1 }
0x1853   : > { %v5026_v13 = vadd.f32 %v6025_v25, %v4800_v18  ;;  %v5040_v57 = vadd.f32 %v5036_v23, %v8407_v38 }
0x1854   : > { %v6027_v43 = vpop.f32.mrf.mxu1 }
0x1855   : > { %v5037_v29 = vadd.f32 %v5808_v10, %v5026_v13  ;;  %v6028_v39 = vadd.f32 %v6027_v43, %v6026_v27  ;;  %5046 = vadd.xlane.f32.xlu0 %v5040_v57 }
0x1856   : > { %v6029_v22 = vpop.f32.mrf.mxu1 }
0x1857   : > { %v5027_v36 = vadd.f32 %v6028_v39, %v4805_v58  ;;  %v5041_v34 = vadd.f32 %v5037_v29, %v8413_v51 }
0x1858   : > { %v6030_v37 = vpop.f32.mrf.mxu1 }
0x1859   : > { %v5038_v41 = vadd.f32 %v5808_v10, %v5027_v36  ;;  %v6031_v42 = vadd.f32 %v6030_v37, %v6029_v22  ;;  %5048 = vadd.xlane.f32.xlu1 %v5041_v34 }
0x185b   : > { %v5028_v55 = vadd.f32 %v6031_v42, %v4808_v40  ;;  %v5042_v38 = vadd.f32 %v5038_v41, %v8416_v46 }
0x185d   : > { %v5039_v59 = vadd.f32 %v5808_v10, %v5028_v55  ;;  %5050 = vadd.xlane.f32.xlu0 %v5042_v38 }
0x185f   : > { %v5043_v60 = vadd.f32 %v5039_v59, %v8427_v4 }
0x1861   : > { %5052 = vadd.xlane.f32.xlu1 %v5043_v60 }
0x18de   : > { %v5047_v61 = vpop.xlane.xlu0 %5046 }
0x18df   : > { %v5054_v52 = vmul.f32 0.0078125, %v5047_v61 }
0x18e1   : > { %v5058_v30 = vsub.f32 %v5040_v57, %v5054_v52 }
0x18e2   : > { %v5049_v32 = vpop.xlane.xlu1 %5048 }
0x18e3   : > { %v5055_v49 = vmul.f32 0.0078125, %v5049_v32  ;;  %v5062_v63 = vmul.f32 %v5058_v30, %v5058_v30 }
0x18e5   : > { %v5059_v51 = vsub.f32 %v5041_v34, %v5055_v49  ;;  %5066 = vadd.xlane.f32.xlu0 %v5062_v63 }
0x18e6   : > { %v5051_v11 = vpop.xlane.xlu0 %5050 }
0x18e7   : > { %v5056_v44 = vmul.f32 0.0078125, %v5051_v11  ;;  %v5063_v6 = vmul.f32 %v5059_v51, %v5059_v51 }
0x18e9   : > { %v5060_v0 = vsub.f32 %v5042_v38, %v5056_v44  ;;  %5068 = vadd.xlane.f32.xlu1 %v5063_v6 }
0x18ea   : > { %v5053_v8 = vpop.xlane.xlu1 %5052 }
0x18eb   : > { %v5057_v46 = vmul.f32 0.0078125, %v5053_v8  ;;  %v5064_v17 = vmul.f32 %v5060_v0, %v5060_v0 }
0x18ed   : > { %v5061_v45 = vsub.f32 %v5043_v60, %v5057_v46  ;;  %5070 = vadd.xlane.f32.xlu0 %v5064_v17 }
0x18ef   : > { %v5065_v4 = vmul.f32 %v5061_v45, %v5061_v45 }
0x18f1   : > { %5072 = vadd.xlane.f32.xlu1 %v5065_v4 }
0x196e   : > { %v5067_v19 = vpop.xlane.xlu0 %5066 }
0x196f   : > { %v5074_v31 = vmul.f32 0.0078125, %v5067_v19 }
0x1971   : > { %v5078_v53 = vadd.f32 1e-05, %v5074_v31 }
0x1972   : > { %v5069_v56 = vpop.xlane.xlu1 %5068 }
0x1973   : > { %6766 = vrsqrt.f32 %v5078_v53  ;;  %v5075_v9 = vmul.f32 0.0078125, %v5069_v56 }
0x1975   : > { %v5079_v16 = vadd.f32 1e-05, %v5075_v9 }
0x1976   : > { %v5071_v28 = vpop.xlane.xlu0 %5070 }
0x1977   : > { %6768 = vrsqrt.f32 %v5079_v16  ;;  %v5076_v1 = vmul.f32 0.0078125, %v5071_v28 }
0x1979   : > { %v5080_v2 = vadd.f32 1e-05, %v5076_v1 }
0x197a   : > { %v5073_v50 = vpop.xlane.xlu1 %5072 }
0x197b   : > { %6770 = vrsqrt.f32 %v5080_v2  ;;  %v5077_v24 = vmul.f32 0.0078125, %v5073_v50 }
0x197d   : > { %v5081_v48 = vadd.f32 1e-05, %v5077_v24 }
0x197f   : > { %6772 = vrsqrt.f32 %v5081_v48 }
0x1980   : > { %v6767_v12 = vpop.eup %6766 }
0x1981   : > { %v5086_v5 = vmul.f32 %v6767_v12, %v5058_v30 }
0x1983   : > { %v5096_v10 = vmul.f32 %v5809_v54, %v5086_v5 }
0x1984   : > { %v6769_v33 = vpop.eup %6768 }
0x1985   : > { %v5106_v14 = vadd.f32 %v5810_v7, %v5096_v10  ;;  %v5087_v47 = vmul.f32 %v6769_v33, %v5059_v51 }
0x1987   : > { %5110 = vst [vmem:[#allocation2 + $0x10] sm:$0xff] %v5106_v14  ;;  %v5097_v15 = vmul.f32 %v5809_v54, %v5087_v47 }
0x1988   : > { %v6771_v3 = vpop.eup %6770 }
0x1989   : > { %v5107_v18 = vadd.f32 %v5810_v7, %v5097_v15  ;;  %v5088_v20 = vmul.f32 %v6771_v3, %v5060_v0 }
0x198b   : > { %5111 = vst [vmem:[#allocation2] sm:$0xff] %v5107_v18  ;;  %v5098_v23 = vmul.f32 %v5809_v54, %v5088_v20 }
0x198c   : > { %v6773_v25 = vpop.eup %6772 }
0x198d   : > { %v5108_v27 = vadd.f32 %v5810_v7, %v5098_v23  ;;  %v5089_v21 = vmul.f32 %v6773_v25, %v5061_v45 }
0x198f   : > { %5112 = vst [vmem:[#allocation2 + $0x18] sm:$0xff] %v5108_v27  ;;  %v5099_v13 = vmul.f32 %v5809_v54, %v5089_v21  ;;  %5117 = sbr.rel (%p5811_p8) target bundleno = 6550 (0x1996), region = 140 }
0x1991   : > { %v5109_v57 = vadd.f32 %v5810_v7, %v5099_v13 }
0x1993   : > { %5113 = vst [vmem:[#allocation2 + $0x8] sm:$0xff] %v5109_v57 }
0x1994   : > { %5118 = vst [vmem:[%s7797_s29] sm:$0xff] %v5106_v14  ;;  %5119 = vst [vmem:[%s7797_s29 + $0x8] sm:$0xff] %v5107_v18 }
0x1995   : > { %5120 = vst [vmem:[%s7797_s29 + $0x10] sm:$0xff] %v5108_v27  ;;  %5121 = vst [vmem:[%s7797_s29 + $0x18] sm:$0xff] %v5109_v57 }
0x1996 PF: > { %s8840_s15 = sld [smem:[#allocation35_spill]]  ;;  %s5137_s26 = sshll.u32 %s7797_s29, 4  ;;  %s8658_s26 = int_to_ptr.vmem [resolvable:$true] %s5137_s26 }
0x1997   : > { %s8841_s30 = sld [smem:[#allocation32_spill]]  ;;  %s7168_s1 = scalar_lea.vmem %s8658_s26, 512 }
0x1998   : > { %s8842_s5 = sld [smem:[#allocation49_spill]]  ;;  %p7169_p0 = scmp.ne.s32.totalorder %s8658_s26, %s7168_s1 }
0x1999   : > { %p8844_p6 = scmp.ne.s32.totalorder %s8810_s0, 0  ;;  %s7328_s22 = smov [#allocation23]  }
0x199a   : > { %s7172_s16 = sshll.u32 %s7328_s22, 4  ;;  %s7173_s16 = int_to_ptr.vmem [resolvable:$false] %s7172_s16 }
0x199b   : > { %p7170_p7 = pnand %p7169_p0, %p8844_p6  ;;  %s7174_s28 = scalar_lea.vmem %s7173_s16, 1024 }
0x199c   : > { %s5863_s12 = sshll.u32 %s8840_s15, 9  ;;  %p7175_p10 = scmp.lt.s32.totalorder %s8658_s26, %s7173_s16 }
0x199d   : > { %s8843_s24 = sand.u32 1, %s8841_s30   ;;  %p7171_p1 = pneg %p7170_p7 }
0x199e   : > { %s8655_s19 = scalar_lea.hbm %s8842_s5, %s5863_s12  ;;  %s8662_s25 = scalar_lea.sflag [#allocation8], %s8843_s24 }
0x199f   : > { %p7176_p12 = scmp.lt.s32.totalorder %s7174_s28, %s7168_s1 }
0x19a1   : > { %p7177_p5 = por %p7176_p12, %p7175_p10 }
0x19a3   : > { %p7178_p4 = pnand %p7177_p5, %p7171_p1 }
0x19a5   : > { %7181 = shalt.err (!%p7178_p4)
}
0x19a6   : > { %s7182_s29 = scalar_lea.hbm %s8655_s19, 512  ;;  %s7186_s2 = scalar_lea.hbm %s8842_s5, 1024 }
0x19a7   : > { %p7183_p11 = scmp.ne.s32.totalorder %s8655_s19, %s7182_s29  ;;  %p7187_p2 = scmp.lt.s32.totalorder %s8655_s19, %s8842_s5 }
0x19a8   : > { %p7188_p3 = scmp.lt.s32.totalorder %s7186_s2, %s7182_s29 }
0x19a9   : > { %p7184_p9 = pnand %p7183_p11, %p8844_p6 }
0x19aa   : > { %p7189_p8 = por %p7188_p3, %p7187_p2 }
0x19ab   : > { %p7185_p13 = pneg %p7184_p9 }
0x19ad   : > { %p7190_p0 = pnand %p7189_p8, %p7185_p13 }
0x19af   : > { %7193 = shalt.err (!%p7190_p0)
}
0x19b0   : > { %s7329_s27 = smov 128   ;;  %s7330_s15 = smov 8  }
0x19b1   : > { %6305 = dma.vmem_to_hbm [thread:$0]  (%p8844_p6), %s8658_s26, 512, %s8655_s19, %s8662_s25, %s7329_s27, %s7329_s27, %s7330_s15  }
0x19b2 PF: > { %s8845_s30 = sld [smem:[#allocation31_spill]]  ;;  %p6358_p7 = scmp.ge.s32.totalorder %s7296_s23, 2 }
0x19b3   : > { %p8846_p1 = scmp.ne.s32.totalorder %s8811_s20, 0 }
0x19b5   : > { %p6352_p10 = pnand %p6358_p7, %p8846_p1 }
0x19b7   : > { %p6353_p12 = pneg %p6352_p10 }
0x19b8   : > { %s5152_s12 = sand.u32 1, %s8845_s30  }
0x19b9   : > { %s5153_s18 = scalar_lea.sflag [#allocation8], %s5152_s12 }
0x19ba   : > { %7251 = dma.done.wait (%p6353_p12), %s5153_s18, 512  }
0x19bb   : > { %7253 = vsyncadd (%p6353_p12), %s5153_s18, 4294966784  ;;  %s31_s23 = sadd.s32 1, %s7296_s23   ;;  %s8847_s29 = sld [smem:[#allocation29_spill]] }
0x19bc   : > { %p28_p5 = scmp.ge.s32.totalorder %s31_s23, 14   ;;  %s8848_s30 = sld [smem:[#allocation30_spill]] }
0x19bd   : > { %s8849_s15 = sld [smem:[#allocation39_spill]]  ;;  %s8856_s19 = smov %s7288_s21 }
0x19be   : > { %s8850_s16 = sld [smem:[#allocation32_spill]] }
0x19bf   : > { %s8851_s17 = sld [smem:[#allocation33_spill]] }
0x19c0   : > { %s8852_s18 = sld [smem:[#allocation40_spill]] }
0x19c1   : > { %s8853_s20 = sld [smem:[#allocation36_spill]] }
0x19c2   : > { %s8854_s0 = sld [smem:[#allocation37_spill]] }
0x19c3   : > { %s8855_s22 = sld [smem:[#allocation38_spill]] }
0x19c4   :  { %30 = sbr.rel (!%p28_p5) target bundleno = 20 (0x14), region = 269 }
0x19c8   : > { %s8857_s21 = smov %s8854_s0 }
0x19c9   :  { %5158 = vsyncpa [#allocation7], 1 }
0x19ca   :  { %5160 = vsyncpa [#allocation7 + $0x1], 1 }
0x19cb   :  { %5161 = vsyncpa [#allocation10], 1 }
0x19cc   :  { %5162 = vsyncpa [#allocation8], 1 }
0x19cd   :  { %5164 = vsyncpa [#allocation8 + $0x1], 1 }

</bundles_post_ra>
